<compile_context>
chip_gen: v6e
topology: v6e:2x2x1
jax: 0.10.0
libtpu: 0.0.40
codegen_flags: <defaults>
</compile_context>

<pallas_src>
import jax
import jax.numpy as jnp
import numpy as np
from jax.experimental import pallas as pl
from jax.experimental.pallas import tpu as pltpu


# ----------------------------------------------------------------------------------
# Pallas kernel: whole-batch multi-step graph reasoning + hop / answer-type mixing
# ----------------------------------------------------------------------------------
def _reasoning_kernel(
    text_ref, qw_ref, laste0_ref, margin_ref,
    sub_oh_ref, obj_oh_ref, rel_oh_ref,
    step_w_ref, step_b_ref,
    ent_emb_ref, rel_emb_ref,
    rel_w_ref, rel_b_ref,
    ent_w_ref, ent_b_ref,
    type_w_ref, type_b_ref,
    sel_w_ref, sel_b_ref,
    pred_ref, logit_ref, ent_seq_ref, rel_seq_ref,
):
    f32, bf16 = jnp.float32, jnp.bfloat16
    B, D = text_ref.shape
    L = qw_ref.shape[1]
    T = sub_oh_ref.shape[1]
    E = laste0_ref.shape[1]
    R = rel_oh_ref.shape[2]
    S = ent_seq_ref.shape[1] // E

    text_bf = text_ref[...]                   # [B, D]   bf16 (MXU operand only)
    qw = qw_ref[...]                          # [B, L, D] f32
    laste = laste0_ref[...]                   # [B, E]   f32
    margin = margin_ref[...]                  # [B, 1]   f32
    sub_oh = sub_oh_ref[...]                  # [B, T, E] bf16 (exact 0/1; zero rows = pad)
    obj_oh = obj_oh_ref[...]                  # [B, T, E] bf16
    rel_oh = rel_oh_ref[...]                  # [B, T, R] bf16

    # ---- hop / answer-type selectors first (depend only on text); exact softmax ---
    logits = jnp.dot(text_bf, sel_w_ref[...], preferred_element_type=f32) + sel_b_ref[...]
    logit_ref[...] = logits                                              # [B, S+2]
    hop_logit = logits[:, :S]
    ans_logit = logits[:, S:]
    he = jnp.exp(hop_logit - jnp.max(hop_logit, axis=-1, keepdims=True))
    hop_attn = he / jnp.sum(he, axis=-1, keepdims=True)                  # [B, S]
    ae = jnp.exp(ans_logit - jnp.max(ans_logit, axis=-1, keepdims=True))
    ans_attn = ae / jnp.sum(ae, axis=-1, keepdims=True)                  # [B, 2]

    # ---- fused step encoders: one [B,D] @ [D,S*D] bf16 MXU pass, f32 accumulate ---
    cq = jnp.tanh(
        jnp.dot(text_bf, step_w_ref[...], preferred_element_type=f32)
        + step_b_ref[...]).reshape(B, S, D)                              # [B, S, D]

    # ---- question-word attention, batched over all S steps (laste-independent) ----
    q_logits = jnp.sum(cq[:, :, None, :] * qw[:, None, :, :], axis=-1)   # [B, S, L]
    q_logits = q_logits - jnp.max(q_logits, axis=-1, keepdims=True)
    q_exp = jnp.exp(q_logits)
    q_dist = q_exp / jnp.sum(q_exp, axis=-1, keepdims=True)
    q_dist = q_dist / (jnp.sum(q_dist, axis=-1, keepdims=True) + 1e-6)
    ctx = jnp.sum(q_dist[:, :, :, None] * qw[:, None, :, :], axis=2) + cq  # [B, S, D]

    # ---- loop-invariant one-hot embedding gathers (bf16 in / bf16 out, bit-exact) --
    rel_feat = jnp.dot(rel_oh.reshape(B * T, R), rel_emb_ref[...],
                       preferred_element_type=f32).reshape(B, T, D).astype(bf16)
    ent_feat = jnp.dot(obj_oh.reshape(B * T, E), ent_emb_ref[...],
                       preferred_element_type=f32).reshape(B, T, D).astype(bf16)

    # ---- per-triple transfer probabilities for every step at once: t_prob [B,S,T] --
    r_logits = jnp.sum((ctx * rel_w_ref[...])[:, :, None, :] * rel_feat[:, None, :, :],
                       axis=-1) + rel_b_ref[...]                          # [B, S, T]
    e_logits = jnp.sum((ctx * ent_w_ref[...])[:, :, None, :] * ent_feat[:, None, :, :],
                       axis=-1) + ent_b_ref[...]                          # [B, S, T]
    r_prob = jax.nn.sigmoid(r_logits)
    e_prob = jax.nn.sigmoid(e_logits)
    type_s = jax.nn.sigmoid(
        jnp.sum(ctx * type_w_ref[...], axis=-1, keepdims=True) + type_b_ref[...])  # [B,S,1]
    t_prob = type_s * r_prob + (1.0 - type_s) * e_prob                   # [B, S, T]

    # ---- serial tail: activation threshold, scatter-add, L1-normalize, hop-mix -----
    final_ent = jnp.zeros((B, E), f32)
    final_rel = jnp.zeros((B, R), f32)
    for t in range(S):
        # subject score from previous step vs strict margin (exact f32 VPU path)
        laste_sub = jnp.sum(sub_oh * laste[:, None, :], axis=-1)          # [B, T]
        active = (laste_sub > margin).astype(f32)                         # [B, T]
        tp = t_prob[:, t, :]                                              # [B, T]
        w_e = laste_sub * tp * active
        w_r = tp * active

        # follow(): scatter-add into entity / relation vocabularies (masked one-hots)
        e_new = jnp.sum(obj_oh * w_e[:, :, None], axis=1)                 # [B, E]
        r_new = jnp.sum(rel_oh * w_r[:, :, None], axis=1)                 # [B, R]

        # F.normalize(p=1, dim=1) — exact division (feeds next step's threshold)
        laste = e_new / jnp.maximum(jnp.sum(jnp.abs(e_new), axis=-1, keepdims=True), 1e-12)
        lastr = r_new / jnp.maximum(jnp.sum(jnp.abs(r_new), axis=-1, keepdims=True), 1e-12)

        # lane-dense stores (E, R multiples of 128 -> unmasked vst)
        ent_seq_ref[:, t * E:(t + 1) * E] = laste
        rel_seq_ref[:, t * R:(t + 1) * R] = lastr

        # hop mixing folded into the loop as accumulators
        final_ent = final_ent + hop_attn[:, t:t + 1] * laste
        final_rel = final_rel + hop_attn[:, t:t + 1] * lastr

    # ---- final answer distribution: two direct lane-slice stores (no concatenate) --
    pred_ref[:, :E] = ans_attn[:, 0:1] * final_ent
    pred_ref[:, E:] = ans_attn[:, 1:2] * final_rel


# ----------------------------------------------------------------------------------
# wrapper
# ----------------------------------------------------------------------------------
def vision_reasoning_forward(text_emb, q_word, laste0, margin,
                             sub_oh, obj_oh, rel_oh, p, batch_block=None):
    bsz, D = text_emb.shape
    L = q_word.shape[1]
    E = laste0.shape[1]
    T = sub_oh.shape[1]
    R = rel_oh.shape[2]
    S = p["step_w"].shape[0]

    # Batch tiling: default = whole batch in one grid step (small bsz).  For large
    # batches choose batch_block as a multiple of 8 with >= 2 grid steps so the
    # "parallel" grid axis shards across v7x's two TensorCores, and size it so each
    # step presents M >= 128 (v5e) / 256 (v6e, v7x) rows to the MXU.
    bb = bsz if batch_block is None else min(batch_block, bsz)
    assert bsz % bb == 0, "batch must be divisible by batch_block"
    assert bb == bsz or bb % 8 == 0, \
        "batch_block must be a multiple of 8 (sublane rule) or the full batch"
    nblk = bsz // bb

    f32, bf16 = jnp.float32, jnp.bfloat16

    # fold the S step-encoder weights into one [D, S*D] operand (column t*D+j = W_t[:, j])
    step_w_flat = jnp.transpose(p["step_w"], (1, 0, 2)).reshape(D, S * D).astype(bf16)
    step_b_flat = jnp.reshape(p["step_b"], (1, S * D)).astype(f32)
    # fuse hop / anstype selectors into one [D, S+2] matmul
    sel_w = jnp.concatenate([p["hop_w"], p["ans_w"]], axis=1).astype(bf16)    # [D, S+2]
    sel_b = jnp.concatenate([p["hop_b"], p["ans_b"]], axis=1).astype(f32)     # [1, S+2]

    # bf16 MXU / streamed operands: one-hots (exact 0/1), tables, pooled text
    text_bf = text_emb.astype(bf16)
    sub_bf = sub_oh.astype(bf16)
    obj_bf = obj_oh.astype(bf16)
    rel_bf = rel_oh.astype(bf16)
    ent_tbl = p["ent_emb"].astype(bf16)
    rel_tbl = p["rel_emb"].astype(bf16)

    def per_batch(shape):
        return pl.BlockSpec((bb,) + shape, lambda i: (i,) + (0,) * len(shape))

    def shared(shape):
        return pl.BlockSpec(shape, lambda i: (0,) * len(shape))

    in_specs = [
        per_batch((D,)),            # text_emb (bf16)
        per_batch((L, D)),          # q_word
        per_batch((E,)),            # laste0
        per_batch((1,)),            # margin
        per_batch((T, E)),          # sub one-hot
        per_batch((T, E)),          # obj one-hot
        per_batch((T, R)),          # rel one-hot
        shared((D, S * D)),         # fused step_w (bf16)
        shared((1, S * D)),         # fused step_b
        shared((E, D)),             # ent embedding table (bf16)
        shared((R, D)),             # rel embedding table (bf16)
        shared((1, D)), shared((1, 1)),   # rel classifier
        shared((1, D)), shared((1, 1)),   # ent classifier
        shared((1, D)), shared((1, 1)),   # type classifier
        shared((D, S + 2)), shared((1, S + 2)),   # fused hop+anstype selector (bf16/f32)
    ]
    out_specs = [
        per_batch((E + R,)),
        per_batch((S + 2,)),
        per_batch((S * E,)),        # lane-dense per-step entity distributions
        per_batch((S * R,)),        # lane-dense per-step relation distributions
    ]
    out_shape = [
        jax.ShapeDtypeStruct((bsz, E + R), f32),
        jax.ShapeDtypeStruct((bsz, S + 2), f32),
        jax.ShapeDtypeStruct((bsz, S * E), f32),
        jax.ShapeDtypeStruct((bsz, S * R), f32),
    ]

    operands = (
        text_bf, q_word.astype(f32), laste0.astype(f32), margin.astype(f32),
        sub_bf, obj_bf, rel_bf,
        step_w_flat, step_b_flat, ent_tbl, rel_tbl,
        p["rel_w"].astype(f32), p["rel_b"].astype(f32),
        p["ent_w"].astype(f32), p["ent_b"].astype(f32),
        p["type_w"].astype(f32), p["type_b"].astype(f32),
        sel_w, sel_b,
    )

    # cost estimate (advisory)
    flops = int(
        2 * bsz * D * S * D                         # fused step encoders (MXU)
        + 2 * bsz * T * D * (E + R)                 # hoisted one-hot gathers (MXU)
        + 2 * bsz * D * (S + 2)                     # hop/anstype selector (MXU)
        + 4 * bsz * S * L * D                       # batched q-attention (VPU)
        + 4 * bsz * S * T * D                       # batched r/e logits (VPU)
        + 2 * bsz * S * (T * (E + R) + T * E))      # scatter-adds + threshold (VPU)
    transcendentals = int(bsz * S * (D + L + 2 * T + 1) + bsz * (S + 2))
    out_bytes = 4 * bsz * (E + R + S + 2 + S * E + S * R)
    bytes_accessed = int(sum(int(np.prod(a.shape)) * a.dtype.itemsize for a in operands)
                         + out_bytes)

    # generation-aware VMEM limit derived from the actual block footprints
    # (double-buffered blocks + slack for in-kernel temporaries), capped well under
    # v7x's 64 MiB physical VMEM.
    in_blk_bytes = int(
        bb * (D * 2 + L * D * 4 + E * 4 + 4 + T * E * 2 * 2 + T * R * 2)
        + D * S * D * 2 + S * D * 4 + (E + R) * D * 2
        + 6 * D * 4 + 3 * 4 + D * (S + 2) * 2 + (S + 2) * 4)
    out_blk_bytes = int(bb * (E + R + S + 2 + S * E + S * R) * 4)
    vmem_limit = int(min(max(4 * (in_blk_bytes + out_blk_bytes) + (8 << 20), 32 << 20),
                         56 << 20))

    outs = pl.pallas_call(
        _reasoning_kernel,
        out_shape=out_shape,
        grid_spec=pltpu.PrefetchScalarGridSpec(
            num_scalar_prefetch=0,
            grid=(nblk,),
            in_specs=in_specs,
            out_specs=out_specs,
        ),
        compiler_params=pltpu.CompilerParams(
            dimension_semantics=("parallel",),
            vmem_limit_bytes=vmem_limit,
        ),
        cost_estimate=pl.CostEstimate(flops=flops,
                                      transcendentals=transcendentals,
                                      bytes_accessed=bytes_accessed),
    )(*operands)

    pred, logits, ent_seq_flat, rel_seq_flat = outs
    return {
        "qa_pred": pred,
        "hop_pred": logits[:, :S],
        "anstype_pred": logits[:, S:],
        "ent_prob_seq": ent_seq_flat.reshape(bsz, S, E),
        "rel_prob_seq": rel_seq_flat.reshape(bsz, S, R),
        "topic_prob": laste0,
        "margin": margin,
    }


# ----------------------------------------------------------------------------------
# pure-JAX reference (same masked-dense formulation) for correctness checking.
# MXU operands (text, step_w, hop_w, ans_w) are rounded to bf16 exactly as in the
# kernel so the strict `> margin` activation test is deterministic; all other math
# is f32 — matching the kernel's f32 accumulation / elementwise path.
# ----------------------------------------------------------------------------------
def reference_forward(text_emb, q_word, laste0, margin, sub_oh, obj_oh, rel_oh, p):
    f32 = jnp.float32

    def bf(x):
        return x.astype(jnp.bfloat16).astype(f32)

    te = bf(text_emb)
    ent_tbl = p["ent_emb"].astype(f32)      # stored bf16 -> exact in f32
    rel_tbl = p["rel_emb"].astype(f32)
    laste = laste0
    ent_seq, rel_seq = [], []
    S = p["step_w"].shape[0]
    for t in range(S):
        cq = jnp.tanh(te @ bf(p["step_w"][t]) + p["step_b"][t])
        q_logits = jnp.sum(cq[:, None, :] * q_word, axis=2)
        q_dist = jax.nn.softmax(q_logits, axis=1)
        q_dist = q_dist / (jnp.sum(q_dist, axis=1, keepdims=True) + 1e-6)
        ctx = jnp.sum(q_dist[:, :, None] * q_word, axis=1) + cq
        rel_feat = jnp.einsum("btr,rd->btd", rel_oh, rel_tbl)
        ent_feat = jnp.einsum("bte,ed->btd", obj_oh, ent_tbl)
        r_prob = jax.nn.sigmoid(
            jnp.sum((ctx * p["rel_w"][0])[:, None, :] * rel_feat, axis=-1) + p["rel_b"][0, 0])
        e_prob = jax.nn.sigmoid(
            jnp.sum((ctx * p["ent_w"][0])[:, None, :] * ent_feat, axis=-1) + p["ent_b"][0, 0])
        type_s = jax.nn.sigmoid(
            jnp.sum(ctx * p["type_w"][0], axis=-1, keepdims=True) + p["type_b"][0, 0])
        t_prob = type_s * r_prob + (1.0 - type_s) * e_prob
        laste_sub = jnp.sum(sub_oh * laste[:, None, :], axis=-1)
        active = (laste_sub > margin).astype(f32)
        e_new = jnp.sum(obj_oh * (laste_sub * t_prob * active)[:, :, None], axis=1)
        r_new = jnp.sum(rel_oh * (t_prob * active)[:, :, None], axis=1)
        laste = e_new / jnp.maximum(jnp.sum(jnp.abs(e_new), axis=1, keepdims=True), 1e-12)
        lastr = r_new / jnp.maximum(jnp.sum(jnp.abs(r_new), axis=1, keepdims=True), 1e-12)
        ent_seq.append(laste)
        rel_seq.append(lastr)
    ent_seq = jnp.stack(ent_seq, 1)
    rel_seq = jnp.stack(rel_seq, 1)
    hop_logit = te @ bf(p["hop_w"]) + p["hop_b"][0]
    ans_logit = te @ bf(p["ans_w"]) + p["ans_b"][0]
    hop_attn = jax.nn.softmax(hop_logit, axis=1)
    ans_attn = jax.nn.softmax(ans_logit, axis=1)
    final_ent = jnp.sum(ent_seq * hop_attn[:, :, None], axis=1)
    final_rel = jnp.sum(rel_seq * hop_attn[:, :, None], axis=1)
    pred = jnp.concatenate(
        [ans_attn[:, 0:1] * final_ent, ans_attn[:, 1:2] * final_rel], axis=1)
    return pred, hop_logit, ans_logit, ent_seq, rel_seq


# ----------------------------------------------------------------------------------
# main
# ----------------------------------------------------------------------------------
if __name__ == "__main__":
    bsz, D = 2, 128            # dim_word / dim_emb (ViLT hidden size, scaled down)
    Lq = 9                     # question length (incl. leading [CLS]); q_word uses 1:Lq
    L = Lq - 1
    num_ent, num_rel = 128, 128
    T = 16                     # padded triples per batch (scenegraph + kb, merged)
    num_steps = 3
    C, H, W = 3, 32, 32
    vocab_size = 50

    ks = jax.random.split(jax.random.PRNGKey(0), 24)

    # ---- raw inputs (PyTorch forward signature analogues) -------------------------
    questions = jax.random.randint(ks[0], (bsz, Lq), 0, vocab_size)
    processed_image = jax.random.normal(ks[1], (bsz, C, H, W), jnp.float32)  # NCHW

    # ---- synthetic ViLT stand-in (plain JAX glue) ----------------------------------
    word_table = 0.05 * jax.random.normal(ks[2], (vocab_size, D), jnp.float32)
    img_proj = 0.05 * jax.random.normal(ks[3], (C, D), jnp.float32)
    q_word_full = word_table[questions]                                  # [bsz, Lq, D]
    img_feat = jnp.tanh(processed_image.mean(axis=(2, 3)) @ img_proj)    # [bsz, D]
    text_emb = jnp.tanh(q_word_full.mean(axis=1) + img_feat)             # pooler_output
    q_word = q_word_full[:, 1:Lq]                                        # last_hidden_state[:,1:Lq]

    # ---- keyconcepts -> initial topic distribution + margin ------------------------
    keyconcepts = jnp.array([[3, 10, -1], [7, 20, 41]], jnp.int32)       # pad = -1
    kc_onehot = jax.nn.one_hot(keyconcepts, num_ent, dtype=jnp.float32)  # -1 -> all zeros
    laste_init = kc_onehot.sum(axis=1)                                   # [bsz, num_ent]
    z = laste_init.sum(axis=1, keepdims=True)
    margin = 1.0 / z - 1e-6
    laste0 = laste_init / jnp.maximum(z, 1e-12)                          # F.normalize p=1

    # ---- merged scenegraph + kb triples (padded), as masked one-hots ----------------
    sub = jax.random.randint(ks[4], (bsz, T), 0, num_ent)
    rel = jax.random.randint(ks[5], (bsz, T), 0, num_rel)
    obj = jax.random.randint(ks[6], (bsz, T), 0, num_ent)
    # guarantee some triples start at the key concepts
    sub = sub.at[:, :6].set(jnp.array([[3, 3, 10, 10, 3, 10],
                                       [7, 20, 41, 7, 20, 41]], jnp.int32))
    valid = jnp.ones((bsz, T), bool).at[:, T - 4:].set(False)            # padding triples
    vmask = valid[..., None].astype(jnp.float32)
    sub_oh = jax.nn.one_hot(sub, num_ent, dtype=jnp.float32) * vmask
    obj_oh = jax.nn.one_hot(obj, num_ent, dtype=jnp.float32) * vmask
    rel_oh = jax.nn.one_hot(rel, num_rel, dtype=jnp.float32) * vmask

    # ---- deterministic parameter init (shapes from __init__) ------------------------
    def norm(k, shape):
        return 0.05 * jax.random.normal(k, shape, jnp.float32)

    params = {
        "step_w": norm(ks[7], (num_steps, D, D)),
        "step_b": jnp.zeros((num_steps, 1, D), jnp.float32),
        # embedding tables stored in bf16 (MXU-native; one-hot gathers remain exact)
        "ent_emb": norm(ks[8], (num_ent, D)).astype(jnp.bfloat16),
        "rel_emb": norm(ks[9], (num_rel, D)).astype(jnp.bfloat16),
        "rel_w": norm(ks[10], (1, D)), "rel_b": jnp.zeros((1, 1), jnp.float32),
        "ent_w": norm(ks[11], (1, D)), "ent_b": jnp.zeros((1, 1), jnp.float32),
        "type_w": norm(ks[12], (1, D)), "type_b": jnp.zeros((1, 1), jnp.float32),
        "hop_w": norm(ks[13], (D, num_steps)), "hop_b": jnp.zeros((1, num_steps), jnp.float32),
        "ans_w": norm(ks[14], (D, 2)), "ans_b": jnp.zeros((1, 2), jnp.float32),
    }

    # ---- run kernel ------------------------------------------------------------------
    out = vision_reasoning_forward(text_emb, q_word, laste0, margin,
                                   sub_oh, obj_oh, rel_oh, params)
    out = jax.tree_util.tree_map(jax.block_until_ready, out)

    # ---- correctness vs pure-JAX reference --------------------------------------------
    pred_ref, hop_ref, ans_ref, ent_ref, rel_ref = reference_forward(
        text_emb, q_word, laste0, margin, sub_oh, obj_oh, rel_oh, params)
    np.testing.assert_allclose(np.asarray(out["hop_pred"]), np.asarray(hop_ref),
                               rtol=2e-3, atol=2e-4)
    np.testing.assert_allclose(np.asarray(out["anstype_pred"]), np.asarray(ans_ref),
                               rtol=2e-3, atol=2e-4)
    np.testing.assert_allclose(np.asarray(out["ent_prob_seq"]), np.asarray(ent_ref),
                               rtol=5e-3, atol=5e-4)
    np.testing.assert_allclose(np.asarray(out["rel_prob_seq"]), np.asarray(rel_ref),
                               rtol=5e-3, atol=5e-4)
    np.testing.assert_allclose(np.asarray(out["qa_pred"]), np.asarray(pred_ref),
                               rtol=5e-3, atol=5e-4)
    assert bool(jnp.all(jnp.isfinite(out["qa_pred"])))
    assert out["qa_pred"].shape == (bsz, num_ent + num_rel)
    assert out["ent_prob_seq"].shape == (bsz, num_steps, num_ent)

    print("KERNEL_OK")
</pallas_src>

<mosaic_0001>
module attributes {stable_mosaic.version = 11 : i64} {
  func.func @_reasoning_kernel(%arg0: i32, %arg1: memref<2x128xbf16, #tpu.memory_space<vmem>>, %arg2: memref<2x8x128xf32, #tpu.memory_space<vmem>>, %arg3: memref<2x128xf32, #tpu.memory_space<vmem>>, %arg4: memref<2x1xf32, #tpu.memory_space<vmem>>, %arg5: memref<2x16x128xbf16, #tpu.memory_space<vmem>>, %arg6: memref<2x16x128xbf16, #tpu.memory_space<vmem>>, %arg7: memref<2x16x128xbf16, #tpu.memory_space<vmem>>, %arg8: memref<128x384xbf16, #tpu.memory_space<vmem>>, %arg9: memref<1x384xf32, #tpu.memory_space<vmem>>, %arg10: memref<128x128xbf16, #tpu.memory_space<vmem>>, %arg11: memref<128x128xbf16, #tpu.memory_space<vmem>>, %arg12: memref<1x128xf32, #tpu.memory_space<vmem>>, %arg13: memref<1x1xf32, #tpu.memory_space<vmem>>, %arg14: memref<1x128xf32, #tpu.memory_space<vmem>>, %arg15: memref<1x1xf32, #tpu.memory_space<vmem>>, %arg16: memref<1x128xf32, #tpu.memory_space<vmem>>, %arg17: memref<1x1xf32, #tpu.memory_space<vmem>>, %arg18: memref<128x5xbf16, #tpu.memory_space<vmem>>, %arg19: memref<1x5xf32, #tpu.memory_space<vmem>>, %arg20: memref<2x256xf32, #tpu.memory_space<vmem>>, %arg21: memref<2x5xf32, #tpu.memory_space<vmem>>, %arg22: memref<2x384xf32, #tpu.memory_space<vmem>>, %arg23: memref<2x384xf32, #tpu.memory_space<vmem>>) attributes {dimension_semantics = [#tpu.dimension_semantics<parallel>], iteration_bounds = array<i64: 1>, scalar_prefetch = 0 : i64, scratch_operands = 0 : i64, tpu.core_type = #tpu.core_type<tc>, window_params = [{transform_indices = @transform_0, window_bounds = array<i64: 2, 128>}, {transform_indices = @transform_1, window_bounds = array<i64: 2, 8, 128>}, {transform_indices = @transform_2, window_bounds = array<i64: 2, 128>}, {transform_indices = @transform_3, window_bounds = array<i64: 2, 1>}, {transform_indices = @transform_4, window_bounds = array<i64: 2, 16, 128>}, {transform_indices = @transform_5, window_bounds = array<i64: 2, 16, 128>}, {transform_indices = @transform_6, window_bounds = array<i64: 2, 16, 128>}, {pipeline_mode = #tpu.pipeline_mode<synchronous>, transform_indices = @transform_7, window_bounds = array<i64: 128, 384>}, {pipeline_mode = #tpu.pipeline_mode<synchronous>, transform_indices = @transform_8, window_bounds = array<i64: 1, 384>}, {pipeline_mode = #tpu.pipeline_mode<synchronous>, transform_indices = @transform_9, window_bounds = array<i64: 128, 128>}, {pipeline_mode = #tpu.pipeline_mode<synchronous>, transform_indices = @transform_10, window_bounds = array<i64: 128, 128>}, {pipeline_mode = #tpu.pipeline_mode<synchronous>, transform_indices = @transform_11, window_bounds = array<i64: 1, 128>}, {pipeline_mode = #tpu.pipeline_mode<synchronous>, transform_indices = @transform_12, window_bounds = array<i64: 1, 1>}, {pipeline_mode = #tpu.pipeline_mode<synchronous>, transform_indices = @transform_13, window_bounds = array<i64: 1, 128>}, {pipeline_mode = #tpu.pipeline_mode<synchronous>, transform_indices = @transform_14, window_bounds = array<i64: 1, 1>}, {pipeline_mode = #tpu.pipeline_mode<synchronous>, transform_indices = @transform_15, window_bounds = array<i64: 1, 128>}, {pipeline_mode = #tpu.pipeline_mode<synchronous>, transform_indices = @transform_16, window_bounds = array<i64: 1, 1>}, {pipeline_mode = #tpu.pipeline_mode<synchronous>, transform_indices = @transform_17, window_bounds = array<i64: 128, 5>}, {pipeline_mode = #tpu.pipeline_mode<synchronous>, transform_indices = @transform_18, window_bounds = array<i64: 1, 5>}, {transform_indices = @transform_19, window_bounds = array<i64: 2, 256>}, {transform_indices = @transform_20, window_bounds = array<i64: 2, 5>}, {transform_indices = @transform_21, window_bounds = array<i64: 2, 384>}, {transform_indices = @transform_22, window_bounds = array<i64: 2, 384>}]} {
    %c0 = arith.constant 0 : index
    %c0_0 = arith.constant 0 : index
    %0 = vector.load %arg1[%c0, %c0_0] : memref<2x128xbf16, #tpu.memory_space<vmem>>, vector<2x128xbf16>
    %c0_1 = arith.constant 0 : index
    %c0_2 = arith.constant 0 : index
    %c0_3 = arith.constant 0 : index
    %1 = vector.load %arg2[%c0_1, %c0_2, %c0_3] : memref<2x8x128xf32, #tpu.memory_space<vmem>>, vector<2x8x128xf32>
    %c0_4 = arith.constant 0 : index
    %c0_5 = arith.constant 0 : index
    %2 = vector.load %arg3[%c0_4, %c0_5] : memref<2x128xf32, #tpu.memory_space<vmem>>, vector<2x128xf32>
    %c0_6 = arith.constant 0 : index
    %c0_7 = arith.constant 0 : index
    %3 = vector.load %arg4[%c0_6, %c0_7] : memref<2x1xf32, #tpu.memory_space<vmem>>, vector<2x1xf32>
    %c0_8 = arith.constant 0 : index
    %c0_9 = arith.constant 0 : index
    %c0_10 = arith.constant 0 : index
    %4 = vector.load %arg5[%c0_8, %c0_9, %c0_10] : memref<2x16x128xbf16, #tpu.memory_space<vmem>>, vector<2x16x128xbf16>
    %c0_11 = arith.constant 0 : index
    %c0_12 = arith.constant 0 : index
    %c0_13 = arith.constant 0 : index
    %5 = vector.load %arg6[%c0_11, %c0_12, %c0_13] : memref<2x16x128xbf16, #tpu.memory_space<vmem>>, vector<2x16x128xbf16>
    %c0_14 = arith.constant 0 : index
    %c0_15 = arith.constant 0 : index
    %c0_16 = arith.constant 0 : index
    %6 = vector.load %arg7[%c0_14, %c0_15, %c0_16] : memref<2x16x128xbf16, #tpu.memory_space<vmem>>, vector<2x16x128xbf16>
    %c0_17 = arith.constant 0 : index
    %c0_18 = arith.constant 0 : index
    %7 = vector.load %arg18[%c0_17, %c0_18] : memref<128x5xbf16, #tpu.memory_space<vmem>>, vector<128x5xbf16>
    %cst = arith.constant dense<0.000000e+00> : vector<2x5xf32>
    %8 = tpu.matmul %0, %7, %cst {dimension_numbers = #tpu.dot_dimension_numbers<[1], [0], [0], [1], [0, 0, 1, 1], [], []>} : vector<2x128xbf16>, vector<128x5xbf16>, vector<2x5xf32> -> vector<2x5xf32>
    %c0_19 = arith.constant 0 : index
    %c0_20 = arith.constant 0 : index
    %9 = vector.load %arg19[%c0_19, %c0_20] : memref<1x5xf32, #tpu.memory_space<vmem>>, vector<1x5xf32>
    %10 = vector.broadcast %9 : vector<1x5xf32> to vector<2x5xf32>
    %11 = arith.addf %8, %10 : vector<2x5xf32>
    %c0_21 = arith.constant 0 : index
    %c0_22 = arith.constant 0 : index
    %12 = vector.load %arg21[%c0_21, %c0_22] : memref<2x5xf32, #tpu.memory_space<vmem>>, vector<2x5xf32>
    tpu.vector_store %arg21[%c0_21, %c0_22], %11 {strides = array<i32>} : memref<2x5xf32, #tpu.memory_space<vmem>>, vector<2x5xf32>,
    %13 = vector.extract_strided_slice %11 {offsets = [0, 0], sizes = [2, 3], strides = [1, 1]} : vector<2x5xf32> to vector<2x3xf32>
    %14 = vector.extract_strided_slice %11 {offsets = [0, 3], sizes = [2, 2], strides = [1, 1]} : vector<2x5xf32> to vector<2x2xf32>
    %cst_23 = arith.constant dense<0xFF800000> : vector<2xf32>
    %15 = vector.multi_reduction <maximumf>, %13, %cst_23 [1] : vector<2x3xf32> to vector<2xf32>
    %16 = vector.shape_cast %15 : vector<2xf32> to vector<2x1xf32>
    %17 = vector.broadcast %16 : vector<2x1xf32> to vector<2x3xf32>
    %18 = arith.subf %13, %17 : vector<2x3xf32>
    %19 = math.exp %18 : vector<2x3xf32>
    %cst_24 = arith.constant dense<0.000000e+00> : vector<2xf32>
    %20 = vector.multi_reduction <add>, %19, %cst_24 [1] : vector<2x3xf32> to vector<2xf32>
    %21 = vector.shape_cast %20 : vector<2xf32> to vector<2x1xf32>
    %22 = vector.broadcast %21 : vector<2x1xf32> to vector<2x3xf32>
    %23 = arith.divf %19, %22 : vector<2x3xf32>
    %cst_25 = arith.constant dense<0xFF800000> : vector<2xf32>
    %24 = vector.multi_reduction <maximumf>, %14, %cst_25 [1] : vector<2x2xf32> to vector<2xf32>
    %25 = vector.shape_cast %24 : vector<2xf32> to vector<2x1xf32>
    %26 = vector.broadcast %25 : vector<2x1xf32> to vector<2x2xf32>
    %27 = arith.subf %14, %26 : vector<2x2xf32>
    %28 = math.exp %27 : vector<2x2xf32>
    %cst_26 = arith.constant dense<0.000000e+00> : vector<2xf32>
    %29 = vector.multi_reduction <add>, %28, %cst_26 [1] : vector<2x2xf32> to vector<2xf32>
    %30 = vector.shape_cast %29 : vector<2xf32> to vector<2x1xf32>
    %31 = vector.broadcast %30 : vector<2x1xf32> to vector<2x2xf32>
    %32 = arith.divf %28, %31 : vector<2x2xf32>
    %c0_27 = arith.constant 0 : index
    %c0_28 = arith.constant 0 : index
    %33 = vector.load %arg8[%c0_27, %c0_28] : memref<128x384xbf16, #tpu.memory_space<vmem>>, vector<128x384xbf16>
    %cst_29 = arith.constant dense<0.000000e+00> : vector<2x384xf32>
    %34 = tpu.matmul %0, %33, %cst_29 {dimension_numbers = #tpu.dot_dimension_numbers<[1], [0], [0], [1], [0, 0, 1, 1], [], []>} : vector<2x128xbf16>, vector<128x384xbf16>, vector<2x384xf32> -> vector<2x384xf32>
    %c0_30 = arith.constant 0 : index
    %c0_31 = arith.constant 0 : index
    %35 = vector.load %arg9[%c0_30, %c0_31] : memref<1x384xf32, #tpu.memory_space<vmem>>, vector<1x384xf32>
    %36 = vector.broadcast %35 : vector<1x384xf32> to vector<2x384xf32>
    %37 = arith.addf %34, %36 : vector<2x384xf32>
    %38 = math.tanh %37 : vector<2x384xf32>
    %39 = vector.shape_cast %38 : vector<2x384xf32> to vector<2x3x128xf32>
    %40 = vector.shape_cast %39 : vector<2x3x128xf32> to vector<2x3x1x128xf32>
    %41 = vector.shape_cast %1 : vector<2x8x128xf32> to vector<2x1x8x128xf32>
    %42 = vector.broadcast %40 : vector<2x3x1x128xf32> to vector<2x3x8x128xf32>
    %43 = vector.broadcast %41 : vector<2x1x8x128xf32> to vector<2x3x8x128xf32>
    %44 = arith.mulf %42, %43 : vector<2x3x8x128xf32>
    %cst_32 = arith.constant dense<0.000000e+00> : vector<2x3x8xf32>
    %45 = vector.multi_reduction <add>, %44, %cst_32 [3] : vector<2x3x8x128xf32> to vector<2x3x8xf32>
    %cst_33 = arith.constant dense<0xFF800000> : vector<2x3xf32>
    %46 = vector.multi_reduction <maximumf>, %45, %cst_33 [2] : vector<2x3x8xf32> to vector<2x3xf32>
    %47 = vector.shape_cast %46 : vector<2x3xf32> to vector<2x3x1xf32>
    %48 = vector.broadcast %47 : vector<2x3x1xf32> to vector<2x3x8xf32>
    %49 = arith.subf %45, %48 : vector<2x3x8xf32>
    %50 = math.exp %49 : vector<2x3x8xf32>
    %cst_34 = arith.constant dense<0.000000e+00> : vector<2x3xf32>
    %51 = vector.multi_reduction <add>, %50, %cst_34 [2] : vector<2x3x8xf32> to vector<2x3xf32>
    %52 = vector.shape_cast %51 : vector<2x3xf32> to vector<2x3x1xf32>
    %53 = vector.broadcast %52 : vector<2x3x1xf32> to vector<2x3x8xf32>
    %54 = arith.divf %50, %53 : vector<2x3x8xf32>
    %cst_35 = arith.constant dense<0.000000e+00> : vector<2x3xf32>
    %55 = vector.multi_reduction <add>, %54, %cst_35 [2] : vector<2x3x8xf32> to vector<2x3xf32>
    %56 = vector.shape_cast %55 : vector<2x3xf32> to vector<2x3x1xf32>
    %cst_36 = arith.constant 9.99999997E-7 : f32
    %57 = vector.broadcast %cst_36 : f32 to vector<2x3x1xf32>
    %58 = arith.addf %56, %57 : vector<2x3x1xf32>
    %59 = vector.broadcast %58 : vector<2x3x1xf32> to vector<2x3x8xf32>
    %60 = arith.divf %54, %59 : vector<2x3x8xf32>
    %61 = vector.shape_cast %60 : vector<2x3x8xf32> to vector<2x3x8x1xf32>
    %62 = vector.shape_cast %1 : vector<2x8x128xf32> to vector<2x1x8x128xf32>
    %63 = vector.broadcast %61 : vector<2x3x8x1xf32> to vector<2x3x8x128xf32>
    %64 = vector.broadcast %62 : vector<2x1x8x128xf32> to vector<2x3x8x128xf32>
    %65 = arith.mulf %63, %64 : vector<2x3x8x128xf32>
    %cst_37 = arith.constant dense<0.000000e+00> : vector<2x3x128xf32>
    %66 = vector.multi_reduction <add>, %65, %cst_37 [2] : vector<2x3x8x128xf32> to vector<2x3x128xf32>
    %67 = arith.addf %66, %39 : vector<2x3x128xf32>
    %68 = vector.shape_cast %6 : vector<2x16x128xbf16> to vector<32x128xbf16>
    %c0_38 = arith.constant 0 : index
    %c0_39 = arith.constant 0 : index
    %69 = vector.load %arg11[%c0_38, %c0_39] : memref<128x128xbf16, #tpu.memory_space<vmem>>, vector<128x128xbf16>
    %cst_40 = arith.constant dense<0.000000e+00> : vector<32x128xf32>
    %70 = tpu.matmul %68, %69, %cst_40 {dimension_numbers = #tpu.dot_dimension_numbers<[1], [0], [0], [1], [0, 0, 1, 1], [], []>} : vector<32x128xbf16>, vector<128x128xbf16>, vector<32x128xf32> -> vector<32x128xf32>
    %71 = vector.shape_cast %70 : vector<32x128xf32> to vector<2x16x128xf32>
    %72 = arith.truncf %71 : vector<2x16x128xf32> to vector<2x16x128xbf16>
    %73 = vector.shape_cast %5 : vector<2x16x128xbf16> to vector<32x128xbf16>
    %c0_41 = arith.constant 0 : index
    %c0_42 = arith.constant 0 : index
    %74 = vector.load %arg10[%c0_41, %c0_42] : memref<128x128xbf16, #tpu.memory_space<vmem>>, vector<128x128xbf16>
    %cst_43 = arith.constant dense<0.000000e+00> : vector<32x128xf32>
    %75 = tpu.matmul %73, %74, %cst_43 {dimension_numbers = #tpu.dot_dimension_numbers<[1], [0], [0], [1], [0, 0, 1, 1], [], []>} : vector<32x128xbf16>, vector<128x128xbf16>, vector<32x128xf32> -> vector<32x128xf32>
    %76 = vector.shape_cast %75 : vector<32x128xf32> to vector<2x16x128xf32>
    %77 = arith.truncf %76 : vector<2x16x128xf32> to vector<2x16x128xbf16>
    %c0_44 = arith.constant 0 : index
    %c0_45 = arith.constant 0 : index
    %78 = vector.load %arg12[%c0_44, %c0_45] : memref<1x128xf32, #tpu.memory_space<vmem>>, vector<1x128xf32>
    %79 = vector.shape_cast %78 : vector<1x128xf32> to vector<1x1x128xf32>
    %80 = vector.broadcast %79 : vector<1x1x128xf32> to vector<2x3x128xf32>
    %81 = arith.mulf %67, %80 : vector<2x3x128xf32>
    %82 = vector.shape_cast %81 : vector<2x3x128xf32> to vector<2x3x1x128xf32>
    %83 = vector.shape_cast %72 : vector<2x16x128xbf16> to vector<2x1x16x128xbf16>
    %84 = arith.extf %83 : vector<2x1x16x128xbf16> to vector<2x1x16x128xf32>
    %85 = vector.broadcast %82 : vector<2x3x1x128xf32> to vector<2x3x16x128xf32>
    %86 = vector.broadcast %84 : vector<2x1x16x128xf32> to vector<2x3x16x128xf32>
    %87 = arith.mulf %85, %86 : vector<2x3x16x128xf32>
    %cst_46 = arith.constant dense<0.000000e+00> : vector<2x3x16xf32>
    %88 = vector.multi_reduction <add>, %87, %cst_46 [3] : vector<2x3x16x128xf32> to vector<2x3x16xf32>
    %c0_47 = arith.constant 0 : index
    %c0_48 = arith.constant 0 : index
    %89 = vector.load %arg13[%c0_47, %c0_48] : memref<1x1xf32, #tpu.memory_space<vmem>>, vector<1x1xf32>
    %90 = vector.shape_cast %89 : vector<1x1xf32> to vector<1x1x1xf32>
    %91 = vector.broadcast %90 : vector<1x1x1xf32> to vector<2x3x16xf32>
    %92 = arith.addf %88, %91 : vector<2x3x16xf32>
    %c0_49 = arith.constant 0 : index
    %c0_50 = arith.constant 0 : index
    %93 = vector.load %arg14[%c0_49, %c0_50] : memref<1x128xf32, #tpu.memory_space<vmem>>, vector<1x128xf32>
    %94 = vector.shape_cast %93 : vector<1x128xf32> to vector<1x1x128xf32>
    %95 = vector.broadcast %94 : vector<1x1x128xf32> to vector<2x3x128xf32>
    %96 = arith.mulf %67, %95 : vector<2x3x128xf32>
    %97 = vector.shape_cast %96 : vector<2x3x128xf32> to vector<2x3x1x128xf32>
    %98 = vector.shape_cast %77 : vector<2x16x128xbf16> to vector<2x1x16x128xbf16>
    %99 = arith.extf %98 : vector<2x1x16x128xbf16> to vector<2x1x16x128xf32>
    %100 = vector.broadcast %97 : vector<2x3x1x128xf32> to vector<2x3x16x128xf32>
    %101 = vector.broadcast %99 : vector<2x1x16x128xf32> to vector<2x3x16x128xf32>
    %102 = arith.mulf %100, %101 : vector<2x3x16x128xf32>
    %cst_51 = arith.constant dense<0.000000e+00> : vector<2x3x16xf32>
    %103 = vector.multi_reduction <add>, %102, %cst_51 [3] : vector<2x3x16x128xf32> to vector<2x3x16xf32>
    %c0_52 = arith.constant 0 : index
    %c0_53 = arith.constant 0 : index
    %104 = vector.load %arg15[%c0_52, %c0_53] : memref<1x1xf32, #tpu.memory_space<vmem>>, vector<1x1xf32>
    %105 = vector.shape_cast %104 : vector<1x1xf32> to vector<1x1x1xf32>
    %106 = vector.broadcast %105 : vector<1x1x1xf32> to vector<2x3x16xf32>
    %107 = arith.addf %103, %106 : vector<2x3x16xf32>
    %108 = arith.negf %92 : vector<2x3x16xf32>
    %109 = math.exp %108 : vector<2x3x16xf32>
    %cst_54 = arith.constant 1.000000e+00 : f32
    %110 = vector.broadcast %cst_54 : f32 to vector<2x3x16xf32>
    %111 = arith.addf %110, %109 : vector<2x3x16xf32>
    %112 = arith.divf %110, %111 : vector<2x3x16xf32>
    %113 = arith.negf %107 : vector<2x3x16xf32>
    %114 = math.exp %113 : vector<2x3x16xf32>
    %cst_55 = arith.constant 1.000000e+00 : f32
    %115 = vector.broadcast %cst_55 : f32 to vector<2x3x16xf32>
    %116 = arith.addf %115, %114 : vector<2x3x16xf32>
    %117 = arith.divf %115, %116 : vector<2x3x16xf32>
    %c0_56 = arith.constant 0 : index
    %c0_57 = arith.constant 0 : index
    %118 = vector.load %arg16[%c0_56, %c0_57] : memref<1x128xf32, #tpu.memory_space<vmem>>, vector<1x128xf32>
    %119 = vector.shape_cast %118 : vector<1x128xf32> to vector<1x1x128xf32>
    %120 = vector.broadcast %119 : vector<1x1x128xf32> to vector<2x3x128xf32>
    %121 = arith.mulf %67, %120 : vector<2x3x128xf32>
    %cst_58 = arith.constant dense<0.000000e+00> : vector<2x3xf32>
    %122 = vector.multi_reduction <add>, %121, %cst_58 [2] : vector<2x3x128xf32> to vector<2x3xf32>
    %123 = vector.shape_cast %122 : vector<2x3xf32> to vector<2x3x1xf32>
    %c0_59 = arith.constant 0 : index
    %c0_60 = arith.constant 0 : index
    %124 = vector.load %arg17[%c0_59, %c0_60] : memref<1x1xf32, #tpu.memory_space<vmem>>, vector<1x1xf32>
    %125 = vector.shape_cast %124 : vector<1x1xf32> to vector<1x1x1xf32>
    %126 = vector.broadcast %125 : vector<1x1x1xf32> to vector<2x3x1xf32>
    %127 = arith.addf %123, %126 : vector<2x3x1xf32>
    %128 = arith.negf %127 : vector<2x3x1xf32>
    %129 = math.exp %128 : vector<2x3x1xf32>
    %cst_61 = arith.constant 1.000000e+00 : f32
    %130 = vector.broadcast %cst_61 : f32 to vector<2x3x1xf32>
    %131 = arith.addf %130, %129 : vector<2x3x1xf32>
    %132 = arith.divf %130, %131 : vector<2x3x1xf32>
    %133 = vector.broadcast %132 : vector<2x3x1xf32> to vector<2x3x16xf32>
    %134 = arith.mulf %133, %112 : vector<2x3x16xf32>
    %cst_62 = arith.constant 1.000000e+00 : f32
    %135 = vector.broadcast %cst_62 : f32 to vector<2x3x1xf32>
    %136 = arith.subf %135, %132 : vector<2x3x1xf32>
    %137 = vector.broadcast %136 : vector<2x3x1xf32> to vector<2x3x16xf32>
    %138 = arith.mulf %137, %117 : vector<2x3x16xf32>
    %139 = arith.addf %134, %138 : vector<2x3x16xf32>
    %cst_63 = arith.constant 0.000000e+00 : f32
    %140 = vector.broadcast %cst_63 : f32 to vector<2x128xf32>
    %cst_64 = arith.constant 0.000000e+00 : f32
    %141 = vector.broadcast %cst_64 : f32 to vector<2x128xf32>
    %142 = vector.shape_cast %2 : vector<2x128xf32> to vector<2x1x128xf32>
    %143 = arith.extf %4 : vector<2x16x128xbf16> to vector<2x16x128xf32>
    %144 = vector.broadcast %142 : vector<2x1x128xf32> to vector<2x16x128xf32>
    %145 = arith.mulf %143, %144 : vector<2x16x128xf32>
    %cst_65 = arith.constant dense<0.000000e+00> : vector<2x16xf32>
    %146 = vector.multi_reduction <add>, %145, %cst_65 [2] : vector<2x16x128xf32> to vector<2x16xf32>
    %147 = vector.broadcast %3 : vector<2x1xf32> to vector<2x16xf32>
    %148 = arith.cmpf ogt, %146, %147 : vector<2x16xf32>
    %149 = arith.extui %148 : vector<2x16xi1> to vector<2x16xi32>
    %150 = arith.sitofp %149 : vector<2x16xi32> to vector<2x16xf32>
    %151 = vector.extract_strided_slice %139 {offsets = [0, 0, 0], sizes = [2, 1, 16], strides = [1, 1, 1]} : vector<2x3x16xf32> to vector<2x1x16xf32>
    %152 = vector.shape_cast %151 : vector<2x1x16xf32> to vector<2x16xf32>
    %153 = arith.mulf %146, %152 : vector<2x16xf32>
    %154 = arith.mulf %153, %150 : vector<2x16xf32>
    %155 = arith.mulf %152, %150 : vector<2x16xf32>
    %156 = vector.shape_cast %154 : vector<2x16xf32> to vector<2x16x1xf32>
    %157 = arith.extf %5 : vector<2x16x128xbf16> to vector<2x16x128xf32>
    %158 = vector.broadcast %156 : vector<2x16x1xf32> to vector<2x16x128xf32>
    %159 = arith.mulf %157, %158 : vector<2x16x128xf32>
    %cst_66 = arith.constant dense<0.000000e+00> : vector<2x128xf32>
    %160 = vector.multi_reduction <add>, %159, %cst_66 [1] : vector<2x16x128xf32> to vector<2x128xf32>
    %161 = vector.shape_cast %155 : vector<2x16xf32> to vector<2x16x1xf32>
    %162 = arith.extf %6 : vector<2x16x128xbf16> to vector<2x16x128xf32>
    %163 = vector.broadcast %161 : vector<2x16x1xf32> to vector<2x16x128xf32>
    %164 = arith.mulf %162, %163 : vector<2x16x128xf32>
    %cst_67 = arith.constant dense<0.000000e+00> : vector<2x128xf32>
    %165 = vector.multi_reduction <add>, %164, %cst_67 [1] : vector<2x16x128xf32> to vector<2x128xf32>
    %166 = math.absf %160 : vector<2x128xf32>
    %cst_68 = arith.constant dense<0.000000e+00> : vector<2xf32>
    %167 = vector.multi_reduction <add>, %166, %cst_68 [1] : vector<2x128xf32> to vector<2xf32>
    %168 = vector.shape_cast %167 : vector<2xf32> to vector<2x1xf32>
    %cst_69 = arith.constant 9.99999996E-13 : f32
    %169 = vector.broadcast %cst_69 : f32 to vector<2x1xf32>
    %170 = arith.maximumf %168, %169 : vector<2x1xf32>
    %171 = vector.broadcast %170 : vector<2x1xf32> to vector<2x128xf32>
    %172 = arith.divf %160, %171 : vector<2x128xf32>
    %173 = math.absf %165 : vector<2x128xf32>
    %cst_70 = arith.constant dense<0.000000e+00> : vector<2xf32>
    %174 = vector.multi_reduction <add>, %173, %cst_70 [1] : vector<2x128xf32> to vector<2xf32>
    %175 = vector.shape_cast %174 : vector<2xf32> to vector<2x1xf32>
    %cst_71 = arith.constant 9.99999996E-13 : f32
    %176 = vector.broadcast %cst_71 : f32 to vector<2x1xf32>
    %177 = arith.maximumf %175, %176 : vector<2x1xf32>
    %178 = vector.broadcast %177 : vector<2x1xf32> to vector<2x128xf32>
    %179 = arith.divf %165, %178 : vector<2x128xf32>
    %c0_72 = arith.constant 0 : index
    %c0_73 = arith.constant 0 : index
    %180 = vector.load %arg22[%c0_72, %c0_73] : memref<2x384xf32, #tpu.memory_space<vmem>>, vector<2x128xf32>
    tpu.vector_store %arg22[%c0_72, %c0_73], %172 {strides = array<i32>} : memref<2x384xf32, #tpu.memory_space<vmem>>, vector<2x128xf32>,
    %c0_74 = arith.constant 0 : index
    %c0_75 = arith.constant 0 : index
    %181 = vector.load %arg23[%c0_74, %c0_75] : memref<2x384xf32, #tpu.memory_space<vmem>>, vector<2x128xf32>
    tpu.vector_store %arg23[%c0_74, %c0_75], %179 {strides = array<i32>} : memref<2x384xf32, #tpu.memory_space<vmem>>, vector<2x128xf32>,
    %182 = vector.extract_strided_slice %23 {offsets = [0, 0], sizes = [2, 1], strides = [1, 1]} : vector<2x3xf32> to vector<2x1xf32>
    %183 = vector.broadcast %182 : vector<2x1xf32> to vector<2x128xf32>
    %184 = arith.mulf %183, %172 : vector<2x128xf32>
    %185 = arith.addf %140, %184 : vector<2x128xf32>
    %186 = vector.extract_strided_slice %23 {offsets = [0, 0], sizes = [2, 1], strides = [1, 1]} : vector<2x3xf32> to vector<2x1xf32>
    %187 = vector.broadcast %186 : vector<2x1xf32> to vector<2x128xf32>
    %188 = arith.mulf %187, %179 : vector<2x128xf32>
    %189 = arith.addf %141, %188 : vector<2x128xf32>
    %190 = vector.shape_cast %172 : vector<2x128xf32> to vector<2x1x128xf32>
    %191 = arith.extf %4 : vector<2x16x128xbf16> to vector<2x16x128xf32>
    %192 = vector.broadcast %190 : vector<2x1x128xf32> to vector<2x16x128xf32>
    %193 = arith.mulf %191, %192 : vector<2x16x128xf32>
    %cst_76 = arith.constant dense<0.000000e+00> : vector<2x16xf32>
    %194 = vector.multi_reduction <add>, %193, %cst_76 [2] : vector<2x16x128xf32> to vector<2x16xf32>
    %195 = vector.broadcast %3 : vector<2x1xf32> to vector<2x16xf32>
    %196 = arith.cmpf ogt, %194, %195 : vector<2x16xf32>
    %197 = arith.extui %196 : vector<2x16xi1> to vector<2x16xi32>
    %198 = arith.sitofp %197 : vector<2x16xi32> to vector<2x16xf32>
    %199 = vector.extract_strided_slice %139 {offsets = [0, 1, 0], sizes = [2, 1, 16], strides = [1, 1, 1]} : vector<2x3x16xf32> to vector<2x1x16xf32>
    %200 = vector.shape_cast %199 : vector<2x1x16xf32> to vector<2x16xf32>
    %201 = arith.mulf %194, %200 : vector<2x16xf32>
    %202 = arith.mulf %201, %198 : vector<2x16xf32>
    %203 = arith.mulf %200, %198 : vector<2x16xf32>
    %204 = vector.shape_cast %202 : vector<2x16xf32> to vector<2x16x1xf32>
    %205 = arith.extf %5 : vector<2x16x128xbf16> to vector<2x16x128xf32>
    %206 = vector.broadcast %204 : vector<2x16x1xf32> to vector<2x16x128xf32>
    %207 = arith.mulf %205, %206 : vector<2x16x128xf32>
    %cst_77 = arith.constant dense<0.000000e+00> : vector<2x128xf32>
    %208 = vector.multi_reduction <add>, %207, %cst_77 [1] : vector<2x16x128xf32> to vector<2x128xf32>
    %209 = vector.shape_cast %203 : vector<2x16xf32> to vector<2x16x1xf32>
    %210 = arith.extf %6 : vector<2x16x128xbf16> to vector<2x16x128xf32>
    %211 = vector.broadcast %209 : vector<2x16x1xf32> to vector<2x16x128xf32>
    %212 = arith.mulf %210, %211 : vector<2x16x128xf32>
    %cst_78 = arith.constant dense<0.000000e+00> : vector<2x128xf32>
    %213 = vector.multi_reduction <add>, %212, %cst_78 [1] : vector<2x16x128xf32> to vector<2x128xf32>
    %214 = math.absf %208 : vector<2x128xf32>
    %cst_79 = arith.constant dense<0.000000e+00> : vector<2xf32>
    %215 = vector.multi_reduction <add>, %214, %cst_79 [1] : vector<2x128xf32> to vector<2xf32>
    %216 = vector.shape_cast %215 : vector<2xf32> to vector<2x1xf32>
    %cst_80 = arith.constant 9.99999996E-13 : f32
    %217 = vector.broadcast %cst_80 : f32 to vector<2x1xf32>
    %218 = arith.maximumf %216, %217 : vector<2x1xf32>
    %219 = vector.broadcast %218 : vector<2x1xf32> to vector<2x128xf32>
    %220 = arith.divf %208, %219 : vector<2x128xf32>
    %221 = math.absf %213 : vector<2x128xf32>
    %cst_81 = arith.constant dense<0.000000e+00> : vector<2xf32>
    %222 = vector.multi_reduction <add>, %221, %cst_81 [1] : vector<2x128xf32> to vector<2xf32>
    %223 = vector.shape_cast %222 : vector<2xf32> to vector<2x1xf32>
    %cst_82 = arith.constant 9.99999996E-13 : f32
    %224 = vector.broadcast %cst_82 : f32 to vector<2x1xf32>
    %225 = arith.maximumf %223, %224 : vector<2x1xf32>
    %226 = vector.broadcast %225 : vector<2x1xf32> to vector<2x128xf32>
    %227 = arith.divf %213, %226 : vector<2x128xf32>
    %c0_83 = arith.constant 0 : index
    %c128 = arith.constant 128 : index
    %228 = vector.load %arg22[%c0_83, %c128] : memref<2x384xf32, #tpu.memory_space<vmem>>, vector<2x128xf32>
    tpu.vector_store %arg22[%c0_83, %c128], %220 {strides = array<i32>} : memref<2x384xf32, #tpu.memory_space<vmem>>, vector<2x128xf32>,
    %c0_84 = arith.constant 0 : index
    %c128_85 = arith.constant 128 : index
    %229 = vector.load %arg23[%c0_84, %c128_85] : memref<2x384xf32, #tpu.memory_space<vmem>>, vector<2x128xf32>
    tpu.vector_store %arg23[%c0_84, %c128_85], %227 {strides = array<i32>} : memref<2x384xf32, #tpu.memory_space<vmem>>, vector<2x128xf32>,
    %230 = vector.extract_strided_slice %23 {offsets = [0, 1], sizes = [2, 1], strides = [1, 1]} : vector<2x3xf32> to vector<2x1xf32>
    %231 = vector.broadcast %230 : vector<2x1xf32> to vector<2x128xf32>
    %232 = arith.mulf %231, %220 : vector<2x128xf32>
    %233 = arith.addf %185, %232 : vector<2x128xf32>
    %234 = vector.extract_strided_slice %23 {offsets = [0, 1], sizes = [2, 1], strides = [1, 1]} : vector<2x3xf32> to vector<2x1xf32>
    %235 = vector.broadcast %234 : vector<2x1xf32> to vector<2x128xf32>
    %236 = arith.mulf %235, %227 : vector<2x128xf32>
    %237 = arith.addf %189, %236 : vector<2x128xf32>
    %238 = vector.shape_cast %220 : vector<2x128xf32> to vector<2x1x128xf32>
    %239 = arith.extf %4 : vector<2x16x128xbf16> to vector<2x16x128xf32>
    %240 = vector.broadcast %238 : vector<2x1x128xf32> to vector<2x16x128xf32>
    %241 = arith.mulf %239, %240 : vector<2x16x128xf32>
    %cst_86 = arith.constant dense<0.000000e+00> : vector<2x16xf32>
    %242 = vector.multi_reduction <add>, %241, %cst_86 [2] : vector<2x16x128xf32> to vector<2x16xf32>
    %243 = vector.broadcast %3 : vector<2x1xf32> to vector<2x16xf32>
    %244 = arith.cmpf ogt, %242, %243 : vector<2x16xf32>
    %245 = arith.extui %244 : vector<2x16xi1> to vector<2x16xi32>
    %246 = arith.sitofp %245 : vector<2x16xi32> to vector<2x16xf32>
    %247 = vector.extract_strided_slice %139 {offsets = [0, 2, 0], sizes = [2, 1, 16], strides = [1, 1, 1]} : vector<2x3x16xf32> to vector<2x1x16xf32>
    %248 = vector.shape_cast %247 : vector<2x1x16xf32> to vector<2x16xf32>
    %249 = arith.mulf %242, %248 : vector<2x16xf32>
    %250 = arith.mulf %249, %246 : vector<2x16xf32>
    %251 = arith.mulf %248, %246 : vector<2x16xf32>
    %252 = vector.shape_cast %250 : vector<2x16xf32> to vector<2x16x1xf32>
    %253 = arith.extf %5 : vector<2x16x128xbf16> to vector<2x16x128xf32>
    %254 = vector.broadcast %252 : vector<2x16x1xf32> to vector<2x16x128xf32>
    %255 = arith.mulf %253, %254 : vector<2x16x128xf32>
    %cst_87 = arith.constant dense<0.000000e+00> : vector<2x128xf32>
    %256 = vector.multi_reduction <add>, %255, %cst_87 [1] : vector<2x16x128xf32> to vector<2x128xf32>
    %257 = vector.shape_cast %251 : vector<2x16xf32> to vector<2x16x1xf32>
    %258 = arith.extf %6 : vector<2x16x128xbf16> to vector<2x16x128xf32>
    %259 = vector.broadcast %257 : vector<2x16x1xf32> to vector<2x16x128xf32>
    %260 = arith.mulf %258, %259 : vector<2x16x128xf32>
    %cst_88 = arith.constant dense<0.000000e+00> : vector<2x128xf32>
    %261 = vector.multi_reduction <add>, %260, %cst_88 [1] : vector<2x16x128xf32> to vector<2x128xf32>
    %262 = math.absf %256 : vector<2x128xf32>
    %cst_89 = arith.constant dense<0.000000e+00> : vector<2xf32>
    %263 = vector.multi_reduction <add>, %262, %cst_89 [1] : vector<2x128xf32> to vector<2xf32>
    %264 = vector.shape_cast %263 : vector<2xf32> to vector<2x1xf32>
    %cst_90 = arith.constant 9.99999996E-13 : f32
    %265 = vector.broadcast %cst_90 : f32 to vector<2x1xf32>
    %266 = arith.maximumf %264, %265 : vector<2x1xf32>
    %267 = vector.broadcast %266 : vector<2x1xf32> to vector<2x128xf32>
    %268 = arith.divf %256, %267 : vector<2x128xf32>
    %269 = math.absf %261 : vector<2x128xf32>
    %cst_91 = arith.constant dense<0.000000e+00> : vector<2xf32>
    %270 = vector.multi_reduction <add>, %269, %cst_91 [1] : vector<2x128xf32> to vector<2xf32>
    %271 = vector.shape_cast %270 : vector<2xf32> to vector<2x1xf32>
    %cst_92 = arith.constant 9.99999996E-13 : f32
    %272 = vector.broadcast %cst_92 : f32 to vector<2x1xf32>
    %273 = arith.maximumf %271, %272 : vector<2x1xf32>
    %274 = vector.broadcast %273 : vector<2x1xf32> to vector<2x128xf32>
    %275 = arith.divf %261, %274 : vector<2x128xf32>
    %c0_93 = arith.constant 0 : index
    %c256 = arith.constant 256 : index
    %276 = vector.load %arg22[%c0_93, %c256] : memref<2x384xf32, #tpu.memory_space<vmem>>, vector<2x128xf32>
    tpu.vector_store %arg22[%c0_93, %c256], %268 {strides = array<i32>} : memref<2x384xf32, #tpu.memory_space<vmem>>, vector<2x128xf32>,
    %c0_94 = arith.constant 0 : index
    %c256_95 = arith.constant 256 : index
    %277 = vector.load %arg23[%c0_94, %c256_95] : memref<2x384xf32, #tpu.memory_space<vmem>>, vector<2x128xf32>
    tpu.vector_store %arg23[%c0_94, %c256_95], %275 {strides = array<i32>} : memref<2x384xf32, #tpu.memory_space<vmem>>, vector<2x128xf32>,
    %278 = vector.extract_strided_slice %23 {offsets = [0, 2], sizes = [2, 1], strides = [1, 1]} : vector<2x3xf32> to vector<2x1xf32>
    %279 = vector.broadcast %278 : vector<2x1xf32> to vector<2x128xf32>
    %280 = arith.mulf %279, %268 : vector<2x128xf32>
    %281 = arith.addf %233, %280 : vector<2x128xf32>
    %282 = vector.extract_strided_slice %23 {offsets = [0, 2], sizes = [2, 1], strides = [1, 1]} : vector<2x3xf32> to vector<2x1xf32>
    %283 = vector.broadcast %282 : vector<2x1xf32> to vector<2x128xf32>
    %284 = arith.mulf %283, %275 : vector<2x128xf32>
    %285 = arith.addf %237, %284 : vector<2x128xf32>
    %286 = vector.extract_strided_slice %32 {offsets = [0, 0], sizes = [2, 1], strides = [1, 1]} : vector<2x2xf32> to vector<2x1xf32>
    %287 = vector.broadcast %286 : vector<2x1xf32> to vector<2x128xf32>
    %288 = arith.mulf %287, %281 : vector<2x128xf32>
    %c0_96 = arith.constant 0 : index
    %c0_97 = arith.constant 0 : index
    %289 = vector.load %arg20[%c0_96, %c0_97] : memref<2x256xf32, #tpu.memory_space<vmem>>, vector<2x128xf32>
    tpu.vector_store %arg20[%c0_96, %c0_97], %288 {strides = array<i32>} : memref<2x256xf32, #tpu.memory_space<vmem>>, vector<2x128xf32>,
    %290 = vector.extract_strided_slice %32 {offsets = [0, 1], sizes = [2, 1], strides = [1, 1]} : vector<2x2xf32> to vector<2x1xf32>
    %291 = vector.broadcast %290 : vector<2x1xf32> to vector<2x128xf32>
    %292 = arith.mulf %291, %285 : vector<2x128xf32>
    %c0_98 = arith.constant 0 : index
    %c128_99 = arith.constant 128 : index
    %293 = vector.load %arg20[%c0_98, %c128_99] : memref<2x256xf32, #tpu.memory_space<vmem>>, vector<2x128xf32>
    tpu.vector_store %arg20[%c0_98, %c128_99], %292 {strides = array<i32>} : memref<2x256xf32, #tpu.memory_space<vmem>>, vector<2x128xf32>,
    return
  }
  func.func @transform_0(%arg0: i32) -> (i32, i32) {
    %c0_i32 = arith.constant 0 : i32
    %c0_i32_0 = arith.constant 0 : i32
    return %arg0, %c0_i32 : i32, i32
  }
  func.func @transform_1(%arg0: i32) -> (i32, i32, i32) {
    %c0_i32 = arith.constant 0 : i32
    %c0_i32_0 = arith.constant 0 : i32
    %c0_i32_1 = arith.constant 0 : i32
    return %arg0, %c0_i32, %c0_i32_0 : i32, i32, i32
  }
  func.func @transform_2(%arg0: i32) -> (i32, i32) {
    %c0_i32 = arith.constant 0 : i32
    %c0_i32_0 = arith.constant 0 : i32
    return %arg0, %c0_i32 : i32, i32
  }
  func.func @transform_3(%arg0: i32) -> (i32, i32) {
    %c0_i32 = arith.constant 0 : i32
    %c0_i32_0 = arith.constant 0 : i32
    return %arg0, %c0_i32 : i32, i32
  }
  func.func @transform_4(%arg0: i32) -> (i32, i32, i32) {
    %c0_i32 = arith.constant 0 : i32
    %c0_i32_0 = arith.constant 0 : i32
    %c0_i32_1 = arith.constant 0 : i32
    return %arg0, %c0_i32, %c0_i32_0 : i32, i32, i32
  }
  func.func @transform_5(%arg0: i32) -> (i32, i32, i32) {
    %c0_i32 = arith.constant 0 : i32
    %c0_i32_0 = arith.constant 0 : i32
    %c0_i32_1 = arith.constant 0 : i32
    return %arg0, %c0_i32, %c0_i32_0 : i32, i32, i32
  }
  func.func @transform_6(%arg0: i32) -> (i32, i32, i32) {
    %c0_i32 = arith.constant 0 : i32
    %c0_i32_0 = arith.constant 0 : i32
    %c0_i32_1 = arith.constant 0 : i32
    return %arg0, %c0_i32, %c0_i32_0 : i32, i32, i32
  }
  func.func @transform_7(%arg0: i32) -> (i32, i32) {
    %c0_i32 = arith.constant 0 : i32
    %c0_i32_0 = arith.constant 0 : i32
    %c0_i32_1 = arith.constant 0 : i32
    return %c0_i32, %c0_i32_0 : i32, i32
  }
  func.func @transform_8(%arg0: i32) -> (i32, i32) {
    %c0_i32 = arith.constant 0 : i32
    %c0_i32_0 = arith.constant 0 : i32
    %c0_i32_1 = arith.constant 0 : i32
    return %c0_i32, %c0_i32_0 : i32, i32
  }
  func.func @transform_9(%arg0: i32) -> (i32, i32) {
    %c0_i32 = arith.constant 0 : i32
    %c0_i32_0 = arith.constant 0 : i32
    %c0_i32_1 = arith.constant 0 : i32
    return %c0_i32, %c0_i32_0 : i32, i32
  }
  func.func @transform_10(%arg0: i32) -> (i32, i32) {
    %c0_i32 = arith.constant 0 : i32
    %c0_i32_0 = arith.constant 0 : i32
    %c0_i32_1 = arith.constant 0 : i32
    return %c0_i32, %c0_i32_0 : i32, i32
  }
  func.func @transform_11(%arg0: i32) -> (i32, i32) {
    %c0_i32 = arith.constant 0 : i32
    %c0_i32_0 = arith.constant 0 : i32
    %c0_i32_1 = arith.constant 0 : i32
    return %c0_i32, %c0_i32_0 : i32, i32
  }
  func.func @transform_12(%arg0: i32) -> (i32, i32) {
    %c0_i32 = arith.constant 0 : i32
    %c0_i32_0 = arith.constant 0 : i32
    %c0_i32_1 = arith.constant 0 : i32
    return %c0_i32, %c0_i32_0 : i32, i32
  }
  func.func @transform_13(%arg0: i32) -> (i32, i32) {
    %c0_i32 = arith.constant 0 : i32
    %c0_i32_0 = arith.constant 0 : i32
    %c0_i32_1 = arith.constant 0 : i32
    return %c0_i32, %c0_i32_0 : i32, i32
  }
  func.func @transform_14(%arg0: i32) -> (i32, i32) {
    %c0_i32 = arith.constant 0 : i32
    %c0_i32_0 = arith.constant 0 : i32
    %c0_i32_1 = arith.constant 0 : i32
    return %c0_i32, %c0_i32_0 : i32, i32
  }
  func.func @transform_15(%arg0: i32) -> (i32, i32) {
    %c0_i32 = arith.constant 0 : i32
    %c0_i32_0 = arith.constant 0 : i32
    %c0_i32_1 = arith.constant 0 : i32
    return %c0_i32, %c0_i32_0 : i32, i32
  }
  func.func @transform_16(%arg0: i32) -> (i32, i32) {
    %c0_i32 = arith.constant 0 : i32
    %c0_i32_0 = arith.constant 0 : i32
    %c0_i32_1 = arith.constant 0 : i32
    return %c0_i32, %c0_i32_0 : i32, i32
  }
  func.func @transform_17(%arg0: i32) -> (i32, i32) {
    %c0_i32 = arith.constant 0 : i32
    %c0_i32_0 = arith.constant 0 : i32
    %c0_i32_1 = arith.constant 0 : i32
    return %c0_i32, %c0_i32_0 : i32, i32
  }
  func.func @transform_18(%arg0: i32) -> (i32, i32) {
    %c0_i32 = arith.constant 0 : i32
    %c0_i32_0 = arith.constant 0 : i32
    %c0_i32_1 = arith.constant 0 : i32
    return %c0_i32, %c0_i32_0 : i32, i32
  }
  func.func @transform_19(%arg0: i32) -> (i32, i32) {
    %c0_i32 = arith.constant 0 : i32
    %c0_i32_0 = arith.constant 0 : i32
    return %arg0, %c0_i32 : i32, i32
  }
  func.func @transform_20(%arg0: i32) -> (i32, i32) {
    %c0_i32 = arith.constant 0 : i32
    %c0_i32_0 = arith.constant 0 : i32
    return %arg0, %c0_i32 : i32, i32
  }
  func.func @transform_21(%arg0: i32) -> (i32, i32) {
    %c0_i32 = arith.constant 0 : i32
    %c0_i32_0 = arith.constant 0 : i32
    return %arg0, %c0_i32 : i32, i32
  }
  func.func @transform_22(%arg0: i32) -> (i32, i32) {
    %c0_i32 = arith.constant 0 : i32
    %c0_i32_0 = arith.constant 0 : i32
    return %arg0, %c0_i32 : i32, i32
  }
}

</mosaic_0001>

<bundles_post_ra>
// kernel: tpu_custom_call.1
= control target key start
LH: loop header
LB: loop body
LE: loop exit
PB: predicated region body
PF: predicated region fallthrough
CT: control target
= control target key end

     0   :  { %s4523_s0 = inlined_call_operand.vmem [shape: bf16[2,128], index: 0, kind: input, shape index: {}]   ;;  %s4524_s1 = inlined_call_operand.vmem [shape: f32[2,8,128], index: 1, kind: input, shape index: {}]   ;;  %s4525_s2 = inlined_call_operand.vmem [shape: f32[2,128], index: 2, kind: input, shape index: {}]   ;;  %s4526_s3 = inlined_call_operand.vmem [shape: f32[2,1], index: 3, kind: input, shape index: {}]   ;;  %s4527_s4 = inlined_call_operand.hbm [shape: bf16[2,16,128], index: 4, kind: input, shape index: {}]   ;;  %s4528_s5 = inlined_call_operand.hbm [shape: bf16[2,16,128], index: 5, kind: input, shape index: {}]   ;;  %s4529_s6 = inlined_call_operand.hbm [shape: bf16[2,16,128], index: 6, kind: input, shape index: {}]   ;;  %s4530_s7 = inlined_call_operand.hbm [shape: bf16[128,384], index: 7, kind: input, shape index: {}]   ;;  %s4531_s8 = inlined_call_operand.vmem [shape: f32[1,384], index: 8, kind: input, shape index: {}]   ;;  %s4532_s9 = inlined_call_operand.vmem [shape: bf16[128,128], index: 9, kind: input, shape index: {}]   ;;  %s4533_s10 = inlined_call_operand.hbm [shape: bf16[128,128], index: 10, kind: input, shape index: {}]   ;;  %s4534_s11 = inlined_call_operand.vmem [shape: f32[1,128], index: 11, kind: input, shape index: {}]   ;;  %s4535_s12 = inlined_call_operand.<no memory space> [shape: f32[1,1], index: 12, kind: input, shape index: {}]   ;;  %s4536_s13 = inlined_call_operand.vmem [shape: f32[1,128], index: 13, kind: input, shape index: {}]   ;;  %s4537_s15 = inlined_call_operand.vmem [shape: f32[1,128], index: 15, kind: input, shape index: {}]   ;;  %s4538_s17 = inlined_call_operand.vmem [shape: bf16[128,5], index: 17, kind: input, shape index: {}]   ;;  %s4539_s18 = inlined_call_operand.vmem [shape: f32[1,5], index: 18, kind: input, shape index: {}]   ;;  %s4540_s19 = inlined_call_operand.hbm [shape: f32[2,256], index: 19, kind: output, shape index: {0}]   ;;  %s4541_s20 = inlined_call_operand.hbm [shape: f32[2,5], index: 20, kind: output, shape index: {1}]   ;;  %s4542_s21 = inlined_call_operand.hbm [shape: f32[2,384], index: 21, kind: output, shape index: {2}]   ;;  %s4543_s22 = inlined_call_operand.hbm [shape: f32[2,384], index: 22, kind: output, shape index: {3}]   ;;  %s4544_s14 = inlined_call_operand.<no memory space> [shape: f32[1,1], index: 14, kind: input, shape index: {}]   ;;  %s4545_s16 = inlined_call_operand.<no memory space> [shape: f32[1,1], index: 16, kind: input, shape index: {}]  }
   0x1   :  { %4547 = sst [smem:[#allocation26_spill]] %s4523_s0  ;;  %v28_v0 = vstv %s4535_s12  ;;  %v30_v1 = vstv %s4544_s14  ;;  %v32_v2 = vstv %s4545_s16 }
   0x2   :  { %4548 = sst [smem:[#allocation27_spill]] %s4524_s1  ;;  %29 = vst [vmem:[#allocation2] sm:$0x1] %v28_v0  ;;  %31 = vst [vmem:[#allocation3] sm:$0x1] %v30_v1 }
   0x3   :  { %4549 = sst [smem:[#allocation28_spill]] %s4525_s2  ;;  %33 = vst [vmem:[#allocation4] sm:$0x1] %v32_v2 }
   0x4   :  { %4550 = sst [smem:[#allocation29_spill]] %s4526_s3 }
   0x5   :  { %4551 = sst [smem:[#allocation30_spill]] %s4527_s4 }
   0x6   :  { %4552 = sst [smem:[#allocation31_spill]] %s4528_s5 }
   0x7   :  { %4553 = sst [smem:[#allocation32_spill]] %s4529_s6 }
   0x8   :  { %34 = vsyncpa [#allocation6], 0 }
   0x9   :  { %35 = vsyncpa [#allocation9], 0 }
   0xa   :  { %36 = vsyncpa [#allocation12], 0 }
   0xb   :  { %37 = vsyncpa [#allocation7], 0 }
   0xc   :  { %38 = vsyncpa [#allocation16], 0 }
   0xd   :  { %39 = vsyncpa [#allocation19], 0  ;;  %s3558_s23 = smov [#allocation8]   ;;  %s3559_s12 = smov [#allocation11]  }
   0xe   :  { %s65_s1 = sshll.u32 %s3558_s23, 4  ;;  %s89_s5 = sshll.u32 %s3559_s12, 4  ;;  %s66_s1 = int_to_ptr.vmem [resolvable:$true] %s65_s1  ;;  %s90_s5 = int_to_ptr.vmem [resolvable:$true] %s89_s5 }
   0xf   :  { %s3374_s14 = scalar_lea.vmem %s66_s1, 256  ;;  %p3379_p1 = scmp.lt.s32.totalorder %s66_s1, %s66_s1 }
  0x10   :  { %p3375_p0 = scmp.ne.s32.totalorder %s66_s1, %s3374_s14  ;;  %p3380_p2 = scmp.lt.s32.totalorder %s3374_s14, %s3374_s14 }
  0x12   :  { %p3381_p3 = por %p3380_p2, %p3379_p1 }
  0x14   :  { %p3382_p4 = pnand %p3381_p3, %p3375_p0 }
  0x16   :  { %3385 = shalt.err (!%p3382_p4)
}
  0x17   :  { %s3560_s16 = smov 64   ;;  %s3561_s24 = smov 4  }
  0x18   :  { %s4554_s26 = sld [smem:[#allocation31_spill]]  ;;  %s3394_s2 = scalar_lea.vmem %s90_s5, 3072 }
  0x19   :  { %p3395_p5 = scmp.ne.s32.totalorder %s90_s5, %s3394_s2  ;;  %p3399_p6 = scmp.lt.s32.totalorder %s90_s5, %s90_s5 }
  0x1a   :  { %p3400_p7 = scmp.lt.s32.totalorder %s3394_s2, %s3394_s2 }
  0x1c   :  { %p3401_p8 = por %p3400_p7, %p3399_p6 }
  0x1e   :  { %71 = dma.hbm_to_vmem [thread:$0]  %s4554_s26, 256, %s66_s1, [#allocation9], %s3560_s16, %s3560_s16, %s3561_s24  }
  0x1f   :  { %p3402_p9 = pnand %p3401_p8, %p3395_p5 }
  0x21   :  { %3405 = shalt.err (!%p3402_p9)
}
  0x22   :  { %s3562_s27 = smov 192   ;;  %s3563_s3 = smov 12  }
  0x23   :  { %95 = dma.hbm_to_vmem [thread:$0]  %s4530_s7, 3072, %s90_s5, [#allocation12], %s3562_s27, %s3562_s27, %s3563_s3  }
  0x24   :  { %s3564_s30 = smov [#allocation5]   ;;  %s3565_s0 = smov [#allocation10]  }
  0x25   :  { %s53_s4 = sshll.u32 %s3564_s30, 4  ;;  %s77_s23 = sshll.u32 %s3565_s0, 4  ;;  %s54_s4 = int_to_ptr.vmem [resolvable:$true] %s53_s4  ;;  %s78_s23 = int_to_ptr.vmem [resolvable:$true] %s77_s23 }
  0x26   :  { %s3414_s1 = scalar_lea.vmem %s54_s4, 256  ;;  %p3419_p11 = scmp.lt.s32.totalorder %s54_s4, %s54_s4 }
  0x27   :  { %p3415_p10 = scmp.ne.s32.totalorder %s54_s4, %s3414_s1  ;;  %p3420_p12 = scmp.lt.s32.totalorder %s3414_s1, %s3414_s1 }
  0x29   :  { %p3421_p13 = por %p3420_p12, %p3419_p11 }
  0x2b   :  { %p3422_p0 = pnand %p3421_p13, %p3415_p10 }
  0x2d   :  { %3425 = shalt.err (!%p3422_p0)
}
  0x2e   :  { %s4555_s6 = sld [smem:[#allocation30_spill]]  ;;  %s3434_s7 = scalar_lea.vmem %s78_s23, 256 }
  0x2f   :  { %p3435_p1 = scmp.ne.s32.totalorder %s78_s23, %s3434_s7  ;;  %p3439_p2 = scmp.lt.s32.totalorder %s78_s23, %s78_s23 }
  0x30   :  { %p3440_p3 = scmp.lt.s32.totalorder %s3434_s7, %s3434_s7 }
  0x32   :  { %p3441_p4 = por %p3440_p3, %p3439_p2 }
  0x34   :  { %59 = dma.hbm_to_vmem [thread:$0]  %s4555_s6, 256, %s54_s4, [#allocation6], %s3560_s16, %s3560_s16, %s3561_s24  }
  0x35   :  { %p3442_p5 = pnand %p3441_p4, %p3435_p1 }
  0x37   :  { %3445 = shalt.err (!%p3442_p5)
}
  0x38   :  { %s4556_s26 = sld [smem:[#allocation32_spill]]  ;;  %s3566_s2 = smov [#allocation13]  }
  0x39   :  { %s105_s27 = sshll.u32 %s3566_s2, 4  ;;  %s106_s27 = int_to_ptr.vmem [resolvable:$true] %s105_s27 }
  0x3a   :  { %s3454_s3 = scalar_lea.vmem %s106_s27, 1024  ;;  %p3459_p7 = scmp.lt.s32.totalorder %s106_s27, %s106_s27 }
  0x3b   :  { %p3455_p6 = scmp.ne.s32.totalorder %s106_s27, %s3454_s3  ;;  %p3460_p8 = scmp.lt.s32.totalorder %s3454_s3, %s3454_s3 }
  0x3d   :  { %p3461_p9 = por %p3460_p8, %p3459_p7 }
  0x3e   :  { %83 = dma.hbm_to_vmem [thread:$0]  %s4556_s26, 256, %s78_s23, [#allocation9], %s3560_s16, %s3560_s16, %s3561_s24  }
  0x3f   :  { %p3462_p10 = pnand %p3461_p9, %p3455_p6 }
  0x41   :  { %3465 = shalt.err (!%p3462_p10)
}
  0x42   :  { %111 = dma.hbm_to_vmem [thread:$0]  %s4533_s10, 1024, %s106_s27, [#allocation12], %s3560_s16, %s3560_s16, %s3561_s24  }
  0x43   :  { %3546 = dma.done.wait [#allocation6], 256  }
  0x44   :  { %3547 = vsyncadd [#allocation6], 4294967040 }
  0x45   :  { %3548 = dma.done.wait [#allocation9], 512  }
  0x46   :  { %3549 = vsyncadd [#allocation9], 4294966784 }
  0x47   :  { %3550 = dma.done.wait [#allocation12], 4096  }
  0x48   :  { %3551 = vsyncadd [#allocation12], 4294963200  ;;  %v3567_v3 = vmov 0.0   ;;  %vm3568_vm0 = vmmov 0   ;;  %v3569_v4 = vmov 0   ;;  %v3120_v5 = vld [vmem:[%s4538_s17 + $0x38] sm:$0xff]   ;;  %v337_v38 = vlaneseq }
  0x49   :  { %2979 = vmatprep.subr.bf16.mxu0 %v3567_v3  ;;  %2995 = vmatprep.mubr.msk.bf16.mxu0 %vm3568_vm0, %v3567_v3  ;;  %v3121_v6 = vld [vmem:[%s4538_s17 + $0x30] sm:$0xff]   ;;  %v3122_v7 = vld [vmem:[%s4538_s17 + $0x28] sm:$0xff]   ;;  %v3123_v12 = vld [vmem:[%s4538_s17 + $0x20] sm:$0xff]   ;;  %s4557_s28 = sld [smem:[#allocation26_spill]]  ;;  %vm272_vm1 = vcmask 33792   ;;  %vm581_vm2 = vcmask 1040384  }
  0x4a   :  { %512 = vmatprep.mubr.bf16.mxu1 %v3569_v4  ;;  %3084 = vset.pattern.permute.xlu1 %v3569_v4  ;;  %v3125_v8 = vld [vmem:[#allocation11 + $0xac] ss:$12 sps:$4 sm:$0xff]   ;;  %v3127_v9 = vld [vmem:[#allocation11 + $0xa8] ss:$12 sps:$4 sm:$0xff]   ;;  %v3131_v11 = vld [vmem:[#allocation11 + $0x90] ss:$12 sps:$4 sm:$0xff]  }
  0x4b   :  { %3083 = vset.pattern.permute.xlu0 %v3569_v4  ;;  %2980 = vmatpush3.bf16.msra.mxu0 %v3120_v5  ;;  %v3129_v10 = vld [vmem:[#allocation11 + $0x94] ss:$12 sps:$4 sm:$0xff]   ;;  %v3133_v13 = vld [vmem:[#allocation11 + $0x7c] ss:$12 sps:$4 sm:$0xff]   ;;  %v3135_v14 = vld [vmem:[#allocation11 + $0x78] ss:$12 sps:$4 sm:$0xff]  }
  0x4c   :  { %2981 = vmatprep.subr.bf16.mxu0 %v3567_v3  ;;  %480 = vmatprep.subr.bf16.mxu1 %v3125_v8  ;;  %v3137_v15 = vld [vmem:[#allocation11 + $0x64] ss:$12 sps:$4 sm:$0xff]   ;;  %v3139_v17 = vld [vmem:[#allocation11 + $0x60] ss:$12 sps:$4 sm:$0xff]   ;;  %v3143_v20 = vld [vmem:[#allocation11 + $0x48] ss:$12 sps:$4 sm:$0xff]  }
  0x4d   :  { %481 = vmatpush1.bf16.msra.mxu1 %v3127_v9  ;;  %v3124_v16 = vld [vmem:[%s4538_s17 + $0x18] sm:$0xff]   ;;  %v3128_v19 = vld [vmem:[%s4538_s17 + $0x10] sm:$0xff]   ;;  %v3132_v22 = vld [vmem:[%s4538_s17 + $0x8] sm:$0xff]   ;;  %v3781_v39 = vshrl.u32 %v337_v38, 7  ;;  %s4558_s10 = sld [smem:[#allocation27_spill]]  ;;  %vm665_vm3 = vcmask 1041409  }
  0x4e   :  { %482 = vmatprep.subr.bf16.mxu1 %v3129_v10  ;;  %v3141_v18 = vld [vmem:[#allocation11 + $0x4c] ss:$12 sps:$4 sm:$0xff]   ;;  %v3145_v21 = vld [vmem:[#allocation11 + $0x34] ss:$12 sps:$4 sm:$0xff]   ;;  %v3147_v24 = vld [vmem:[#allocation11 + $0x30] ss:$12 sps:$4 sm:$0xff]  }
  0x4f   :  { %2982 = vmatpush3.bf16.msra.mxu0 %v3121_v6  ;;  %v3136_v23 = vld [vmem:[%s4538_s17] sm:$0xff]   ;;  %v3149_v25 = vld [vmem:[#allocation11 + $0x1c] ss:$12 sps:$4 sm:$0xff]   ;;  %v3151_v26 = vld [vmem:[#allocation11 + $0x18] ss:$12 sps:$4 sm:$0xff]   ;;  %v3787_v41 = vsub.s32 0, %v3781_v39 }
  0x50   :  { %2983 = vmatprep.subr.bf16.mxu0 %v3567_v3  ;;  %v3153_v27 = vld [vmem:[#allocation11 + $0x4] ss:$12 sps:$4 sm:$0xff]   ;;  %v144_v28 = vld [vmem:[%s4557_s28] sm:$0x1]  ;;  %v3152_v33 = vld [vmem:[#allocation11 + $0x68] ss:$12 sps:$4 sm:$0xff]  }
  0x51   :  { %483 = vmatpush1.bf16.msra.mxu1 %v3131_v11  ;;  %v3140_v29 = vld [vmem:[#allocation11 + $0xb0] ss:$12 sps:$4 sm:$0xff]   ;;  %v3155_v30 = vld [vmem:[#allocation11] ss:$12 sps:$4 sm:$0xff]   ;;  %v3144_v31 = vld [vmem:[#allocation11 + $0x98] ss:$12 sps:$4 sm:$0xff]  }
  0x52   :  { %484 = vmatprep.subr.bf16.mxu1 %v3133_v13  ;;  %v3148_v32 = vld [vmem:[#allocation11 + $0x80] ss:$12 sps:$4 sm:$0xff]   ;;  %v3156_v34 = vld [vmem:[#allocation11 + $0x50] ss:$12 sps:$4 sm:$0xff]   ;;  %v3157_v35 = vld [vmem:[#allocation11 + $0x38] ss:$12 sps:$4 sm:$0xff]  }
  0x53   :  { %2984 = vmatpush3.bf16.msra.mxu0 %v3122_v7  ;;  %v3158_v36 = vld [vmem:[#allocation11 + $0x20] ss:$12 sps:$4 sm:$0xff]   ;;  %v3159_v37 = vld [vmem:[#allocation11 + $0x8] ss:$12 sps:$4 sm:$0xff]   ;;  %v3795_v45 = vsub.s32 1, %v3781_v39  ;;  %v3810_v63 = vsub.s32 2, %v3781_v39 }
  0x54   :  { %2985 = vmatprep.subr.bf16.mxu0 %v3567_v3  ;;  %v2834_v40 = vld [vmem:[%s4539_s18] ss:$0 sm:$0xff]  ;;  %v3815_v0 = vld [vmem:[%s4558_s10 + $0x8] sm:$0xff]  ;;  %vm667_vm4 = vcmask 1042434   ;;  %vm673_vm5 = vcmask 59392   ;;  %vm1655_vm6 = vcmask 1042432  }
  0x55   :  { %485 = vmatpush1.bf16.msra.mxu1 %v3135_v14  ;;  %v335_v43 = vld [vmem:[%s4531_s8] sm:$0x7]  ;;  %vm1714_vm7 = vcmask 130112   ;;  %s4560_s0 = sld [smem:[#allocation29_spill]]  ;;  %vm2098_vm12 = vcmask 1041408   ;;  %vm2151_vm13 = vcmask 1043459  }
  0x56   :  { %486 = vmatprep.subr.bf16.mxu1 %v3137_v15  ;;  %v340_v47 = vrot.slane %v335_v43, %v3787_v41  ;;  %v344_v49 = vrot.slane %v335_v43, %v3795_v45  ;;  %v3803_v58 = vld [vmem:[%s4558_s10] sm:$0xff]  ;;  %s4559_s10 = sld [smem:[#allocation28_spill]]  ;;  %vm2153_vm14 = vcmask 1045509   ;;  %vm2155_vm15 = vcmask 1047559   ;;  %s3573_s23 = smov 125  }
  0x57   :  { %2986 = vmatpush3.bf16.msra.mxu0 %v3123_v12  ;;  %v348_v12 = vrot.slane %v335_v43, %v3810_v63  ;;  %s3578_s1 = smov [#allocation15]  }
  0x58   :  { %2987 = vmatprep.subr.bf16.mxu0 %v3567_v3  ;;  %s2792_s12 = sshll.u32 %s3578_s1, 4  ;;  %s2793_s12 = int_to_ptr.vmem [resolvable:$true] %s2792_s12 }
  0x59   :  { %487 = vmatpush1.bf16.msra.mxu1 %v3139_v17  ;;  %s3466_s14 = scalar_lea.vmem %s2793_s12, 32  ;;  %p3471_p12 = scmp.lt.s32.totalorder %s2793_s12, %s2793_s12 }
  0x5a   :  { %488 = vmatprep.subr.bf16.mxu1 %v3141_v18  ;;  %p3467_p11 = scmp.ne.s32.totalorder %s2793_s12, %s3466_s14  ;;  %p3472_p13 = scmp.lt.s32.totalorder %s3466_s14, %s3466_s14 }
  0x5b   :  { %2988 = vmatpush3.bf16.msra.mxu0 %v3124_v16 }
  0x5c   :  { %2989 = vmatprep.subr.bf16.mxu0 %v3567_v3  ;;  %p3473_p0 = por %p3472_p13, %p3471_p12 }
  0x5d   :  { %489 = vmatpush1.bf16.msra.mxu1 %v3143_v20 }
  0x5e   :  { %490 = vmatprep.subr.bf16.mxu1 %v3145_v21  ;;  %p3474_p1 = pnand %p3473_p0, %p3467_p11 }
  0x5f   :  { %2990 = vmatpush3.bf16.msra.mxu0 %v3128_v19  ;;  %v3570_v19 = vmov 1983009808  }
  0x60   :  { %2991 = vmatprep.subr.bf16.mxu0 %v3567_v3  ;;  %v566_v20 = vunpack.c.l.s4 %v3570_v19 }
  0x61   :  { %491 = vmatpush1.bf16.msra.mxu1 %v3147_v24 }
  0x62   :  { %492 = vmatprep.subr.bf16.mxu1 %v3149_v25  ;;  %v567_v21 = vunpack.c.0.s8 %v566_v20 }
  0x63   :  { %2992 = vmatpush3.bf16.msra.mxu0 %v3132_v22 }
  0x64   :  { %2993 = vmatprep.subr.bf16.mxu0 %v3567_v3  ;;  %v3831_v22 = vsub.s32 %v567_v21, %v3781_v39 }
  0x65   :  { %493 = vmatpush1.bf16.msra.mxu1 %v3151_v26 }
  0x66   :  { %494 = vmatprep.subr.bf16.mxu1 %v3153_v27 }
  0x67   :  { %2994 = vmatpush3.bf16.msra.mxu0 %v3136_v23 }
  0x68   :  { %2999 = vmatprep.subr.bf16.mxu0 %v3567_v3 }
  0x69   :  { %495 = vmatpush1.bf16.msra.mxu1 %v3155_v30 }
  0x6a   :  { %2996 = vmatmul.mubr.bf16.vlgmr.msra.gmra.mxu0 %v144_v28 }
  0x6b   :  { %3000 = vmatpush3.bf16.msra.mxu0 %v3140_v29  ;;  %3015 = vmatprep.mubr.msk.bf16.mxu0 %vm3568_vm0, %v3567_v3 }
  0x6c   :  { %3001 = vmatprep.subr.bf16.mxu0 %v3567_v3  ;;  %513 = vmatmul.mubr.bf16.vlgmr.msra.gmra.mxu1 %v144_v28 }
  0x6f   :  { %3002 = vmatpush3.bf16.msra.mxu0 %v3144_v31 }
  0x70   :  { %3003 = vmatprep.subr.bf16.mxu0 %v3567_v3 }
  0x73   :  { %3004 = vmatpush3.bf16.msra.mxu0 %v3148_v32 }
  0x74   :  { %3005 = vmatprep.subr.bf16.mxu0 %v3567_v3 }
  0x77   :  { %3006 = vmatpush3.bf16.msra.mxu0 %v3152_v33 }
  0x78   :  { %3007 = vmatprep.subr.bf16.mxu0 %v3567_v3 }
  0x7b   :  { %3008 = vmatpush3.bf16.msra.mxu0 %v3156_v34 }
  0x7c   :  { %3009 = vmatprep.subr.bf16.mxu0 %v3567_v3 }
  0x7f   :  { %3010 = vmatpush3.bf16.msra.mxu0 %v3157_v35  ;;  %v3845_v35 = vand.u32 127, %v337_v38 }
  0x80   :  { %3011 = vmatprep.subr.bf16.mxu0 %v3567_v3 }
  0x83   :  { %3012 = vmatpush3.bf16.msra.mxu0 %v3158_v36 }
  0x84   :  { %3013 = vmatprep.subr.bf16.mxu0 %v3567_v3 }
  0x87   :  { %3014 = vmatpush3.bf16.msra.mxu0 %v3159_v37  ;;  %v3849_v37 = vsub.s32 %v3845_v35, %v3781_v39 }
  0x8a   :  { %3016 = vmatmul.mubr.bf16.vlgmr.msra.gmra.mxu0 %v144_v28 }
 0x12a   :  { %v266_v42 = vpop.f32.mrf.mxu0 }
 0x12b   :  { %v3792_v44 = vadd.f32 %v2834_v40, %v266_v42 }
 0x12c   :  { %v2997_v46 = vpop.f32.mrf.mxu0  ;;  %v514_v51 = vpop.f32.mrf.mxu1 }
 0x12d   :  { %273 = vst.msk [vmem:[#allocation15] sm:$0x3] %vm272_vm1, %v3792_v44  ;;  %v515_v52 = vadd.f32 %v514_v51, %v340_v47 }
 0x12e   :  { %v269_v48 = vpop.f32.mrf.mxu0  ;;  %v516_v53 = vpop.f32.mrf.mxu1 }
 0x12f   :  { %3184 = vtanh.f32 %v515_v52  ;;  %v517_v54 = vadd.f32 %v516_v53, %v344_v49 }
 0x130   :  { %v2998_v50 = vpop.f32.mrf.mxu0  ;;  %v518_v55 = vpop.f32.mrf.mxu1 }
 0x131   :  { %3186 = vtanh.f32 %v517_v54 }
 0x132   :  { %v519_v56 = vpop.f32.mrf.mxu1 }
 0x13c   :  { %v3185_v57 = vpop.eup %3184 }
 0x13d   :  { %v582_v59 = vsel %vm581_vm2, %v3185_v57, 0.0  ;;  %v585_v60 = vrot.slane %v3185_v57, 1 }
 0x13e   :  { %v3806_v61 = vpop.eup %3186  ;;  %v594_v62 = vrot.slane %v582_v59, %v3787_v41 }
 0x13f   :  { %v586_v1 = vsel %vm581_vm2, %v585_v60, 0.0  ;;  %v583_v2 = vsel %vm581_vm2, %v3806_v61, 0.0  ;;  %v587_v4 = vrot.slane %v3806_v61, 1 }
 0x140   :  { %v615_v5 = vmul.f32 %v594_v62, %v3803_v58  ;;  %v606_v6 = vrot.slane %v586_v1, %v3787_v41  ;;  %v598_v7 = vrot.slane %v583_v2, %v3787_v41 }
 0x141   :  { %v588_v8 = vsel %vm581_vm2, %v587_v4, 0.0 }
 0x142   :  { %621 = vadd.xlane.f32.xlu0 %v615_v5  ;;  %v618_v9 = vmul.f32 %v606_v6, %v3815_v0  ;;  %v616_v10 = vmul.f32 %v598_v7, %v3803_v58  ;;  %v610_v11 = vrot.slane %v588_v8, %v3787_v41 }
 0x144   :  { %627 = vadd.xlane.f32.xlu1 %v618_v9  ;;  %v619_v13 = vmul.f32 %v610_v11, %v3815_v0 }
 0x146   :  { %623 = vadd.xlane.f32.xlu0 %v616_v10 }
 0x148   :  { %629 = vadd.xlane.f32.xlu1 %v619_v13 }
 0x14a   :  { %v555_v14 = vpop.f32.mrf.mxu0 }
 0x14b   :  { %v556_v15 = vadd.f32 %v555_v14, %v348_v12 }
 0x14c   :  { %v3017_v16 = vpop.f32.mrf.mxu0 }
 0x14d   :  { %3188 = vtanh.f32 %v556_v15 }
 0x14e   :  { %v558_v17 = vpop.f32.mrf.mxu0 }
 0x150   :  { %v3018_v18 = vpop.f32.mrf.mxu0 }
 0x15a   :  { %v3189_v23 = vpop.eup %3188 }
 0x15b   :  { %v584_v24 = vsel %vm581_vm2, %v3189_v23, 0.0  ;;  %v589_v25 = vrot.slane %v3189_v23, 1  ;;  %v564_v26 = vcombine.low %v3185_v57, %v3189_v23 }
 0x15c   :  { %v602_v27 = vrot.slane %v584_v24, %v3787_v41 }
 0x15d   :  { %v590_v28 = vsel %vm581_vm2, %v589_v25, 0.0  ;;  %v3837_v29 = vrot.slane %v564_v26, %v3831_v22 }
 0x15e   :  { %v617_v30 = vmul.f32 %v602_v27, %v3803_v58  ;;  %v614_v31 = vrot.slane %v590_v28, %v3787_v41 }
 0x15f   :  { %v572_v32 = vcombine.low %v3837_v29, %v3806_v61 }
 0x160   :  { %625 = vadd.xlane.f32.xlu0 %v617_v30  ;;  %v620_v33 = vmul.f32 %v614_v31, %v3815_v0 }
 0x162   :  { %631 = vadd.xlane.f32.xlu1 %v620_v33 }
 0x1cb   :  { %v622_v34 = vpop.xlane.xlu0 %621 }
 0x1cc   :  { %v644_v43 = vrot.slane %v622_v34, %v3849_v37 }
 0x1cd   :  { %v628_v36 = vpop.xlane.xlu1 %627 }
 0x1ce   :  { %v656_v47 = vrot.slane %v628_v36, %v3849_v37 }
 0x1cf   :  { %v624_v40 = vpop.xlane.xlu0 %623 }
 0x1d0   :  { %v648_v46 = vrot.slane %v624_v40, %v3849_v37 }
 0x1d1   :  { %v630_v42 = vpop.xlane.xlu1 %629 }
 0x1d2   :  { %v660_v48 = vrot.slane %v630_v42, %v3849_v37  ;;  %v666_v51 = vsel %vm665_vm3, %v648_v46, %v644_v43 }
 0x1d4   :  { %v669_v55 = vsel %vm665_vm3, %v660_v48, %v656_v47 }
 0x1e9   :  { %v626_v49 = vpop.xlane.xlu0 %625 }
 0x1ea   :  { %v652_v38 = vrot.slane %v626_v49, %v3849_v37 }
 0x1eb   :  { %v632_v50 = vpop.xlane.xlu1 %631 }
 0x1ec   :  { %v664_v52 = vrot.slane %v632_v50, %v3849_v37  ;;  %v668_v53 = vsel %vm667_vm4, %v652_v38, %v666_v51 }
 0x1ed   :  { %v674_v54 = vsel %vm673_vm5, %v668_v53, -inf }
 0x1ee   :  { %675 = vmax.xlane.f32.xlu0 %v674_v54  ;;  %v670_v56 = vsel %vm667_vm4, %v664_v52, %v669_v55 }
 0x1ef   :  { %v677_v57 = vsel %vm673_vm5, %v670_v56, -inf }
 0x1f0   :  { %678 = vmax.xlane.f32.xlu1 %v677_v57 }
 0x277   :  { %v676_v59 = vpop.xlane.xlu0 %675 }
 0x278   :  { %v685_v60 = vrot.slane %v676_v59, %v3787_v41  ;;  %v689_v62 = vrot.slane %v676_v59, %v3795_v45  ;;  %v693_v1 = vrot.slane %v676_v59, %v3810_v63 }
 0x279   :  { %v679_v2 = vpop.xlane.xlu1 %678 }
 0x27a   :  { %v712_v4 = vsub.f32 %v622_v34, %v685_v60  ;;  %v713_v5 = vsub.f32 %v624_v40, %v689_v62  ;;  %v714_v6 = vsub.f32 %v626_v49, %v693_v1  ;;  %v697_v7 = vrot.slane %v679_v2, %v3787_v41 }
 0x27b   :  { %v701_v11 = vrot.slane %v679_v2, %v3795_v45  ;;  %v705_v13 = vrot.slane %v679_v2, %v3810_v63 }
 0x27c   :  { %v718_v8 = vmul.f32 1.442695, %v712_v4  ;;  %v720_v9 = vmul.f32 1.442695, %v713_v5  ;;  %v722_v10 = vmul.f32 1.442695, %v714_v6  ;;  %v715_v12 = vsub.f32 %v628_v36, %v697_v7 }
 0x27d   :  { %v716_v14 = vsub.f32 %v630_v42, %v701_v11  ;;  %v717_v16 = vsub.f32 %v632_v50, %v705_v13  ;;  %v3160_v13 = vld [vmem:[#allocation13 + $0x38] sm:$0xff]  }
 0x27e   :  { %3190 = vpow2.f32 %v718_v8  ;;  %v724_v15 = vmul.f32 1.442695, %v715_v12  ;;  %3019 = vmatprep.subr.bf16.mxu1 %v3160_v13 }
 0x27f   :  { %3192 = vpow2.f32 %v720_v9  ;;  %v726_v17 = vmul.f32 1.442695, %v716_v14  ;;  %v728_v19 = vmul.f32 1.442695, %v717_v16  ;;  %v3161_v14 = vld [vmem:[%s4532_s9 + $0x38] sm:$0xff]   ;;  %v3163_v16 = vld [vmem:[%s4532_s9 + $0x30] sm:$0xff]   ;;  %3020 = vmatpush3.bf16.msra.mxu1 %v3160_v13 }
 0x280   :  { %3194 = vpow2.f32 %v722_v10  ;;  %3039 = vmatprep.subr.bf16.mxu0 %v3161_v14 }
 0x281   :  { %3196 = vpow2.f32 %v724_v15  ;;  %v3162_v15 = vld [vmem:[#allocation13 + $0x30] sm:$0xff]   ;;  %3040 = vmatpush3.bf16.msra.mxu0 %v3161_v14 }
 0x282   :  { %3198 = vpow2.f32 %v726_v17  ;;  %3021 = vmatprep.subr.bf16.mxu1 %v3162_v15  ;;  %3041 = vmatprep.subr.bf16.mxu0 %v3163_v16  ;;  %v3164_v17 = vld [vmem:[#allocation13 + $0x28] sm:$0xff]  }
 0x283   :  { %3200 = vpow2.f32 %v728_v19  ;;  %v157_v19 = vld [vmem:[#allocation10] sm:$0xff]   ;;  %3022 = vmatpush3.bf16.msra.mxu1 %v3162_v15 }
 0x284   :  { %3023 = vmatprep.subr.bf16.mxu1 %v3164_v17  ;;  %3035 = vmatprep.mubr.bf16.mxu1 %v157_v19 }
 0x285   :  { %3042 = vmatpush3.bf16.msra.mxu0 %v3163_v16 }
 0x287   :  { %3024 = vmatpush3.bf16.msra.mxu1 %v3164_v17 }
 0x28b   :  { %v3191_v18 = vpop.eup %3190 }
 0x28c   :  { %v3193_v20 = vpop.eup %3192  ;;  %737 = vperm.xlu0 %3083, %v3191_v18  }
 0x28d   :  { %740 = vperm.xlu1 %3084, %v3193_v20   ;;  %v3195_v21 = vpop.eup %3194 }
 0x28e   :  { %v3197_v23 = vpop.eup %3196 }
 0x28f   :  { %v3199_v24 = vpop.eup %3198 }
 0x290   :  { %v3201_v25 = vpop.eup %3200 }
 0x291   :  { %743 = vperm.xlu1 %3084, %v3195_v21  }
 0x295   :  { %746 = vperm.xlu1 %3084, %v3197_v23  }
 0x299   :  { %749 = vperm.xlu1 %3084, %v3199_v24  }
 0x29d   :  { %752 = vperm.xlu1 %3084, %v3201_v25  }
 0x307   :  { %v738_v26 = vpop.permute.xlu0 %737 }
 0x308   :  { %v741_v27 = vpop.permute.xlu1 %740  ;;  %v757_v30 = vrot.slane %v738_v26, %v3849_v37  ;;  %v3170_v26 = vld [vmem:[#allocation13 + $0x10] sm:$0xff]  }
 0x309   :  { %v761_v28 = vrot.slane %v741_v27, %v3849_v37  ;;  %v3171_v27 = vld [vmem:[%s4532_s9 + $0x10] sm:$0xff]  }
 0x30b   :  { %v778_v34 = vsel %vm665_vm3, %v761_v28, %v757_v30  ;;  %v3172_v28 = vld [vmem:[#allocation13 + $0x8] sm:$0xff]   ;;  %v3173_v30 = vld [vmem:[%s4532_s9 + $0x8] sm:$0xff]  }
 0x30c   :  { %v744_v31 = vpop.permute.xlu1 %743 }
 0x30d   :  { %v765_v33 = vrot.slane %v744_v31, %v3849_v37  ;;  %v3174_v31 = vld [vmem:[#allocation13] sm:$0xff]  }
 0x30f   :  { %v779_v36 = vsel %vm667_vm4, %v765_v33, %v778_v34  ;;  %v3175_v33 = vld [vmem:[%s4532_s9] sm:$0xff]   ;;  %v159_v34 = vld [vmem:[#allocation10 + $0x8] sm:$0xff]  }
 0x310   :  { %v747_v40 = vpop.permute.xlu1 %746  ;;  %v784_v42 = vsel %vm673_vm5, %v779_v36, 0.0  ;;  %v155_v36 = vld [vmem:[#allocation8 + $0x8] sm:$0xff]  }
 0x311   :  { %785 = vadd.xlane.f32.xlu1 %v784_v42  ;;  %v769_v47 = vrot.slane %v747_v40, %v3849_v37 }
 0x314   :  { %v750_v43 = vpop.permute.xlu1 %749 }
 0x315   :  { %v773_v46 = vrot.slane %v750_v43, %v3849_v37 }
 0x317   :  { %v780_v38 = vsel %vm665_vm3, %v773_v46, %v769_v47 }
 0x318   :  { %v753_v48 = vpop.permute.xlu1 %752 }
 0x319   :  { %v777_v49 = vrot.slane %v753_v48, %v3849_v37 }
 0x31b   :  { %v781_v50 = vsel %vm667_vm4, %v777_v49, %v780_v38 }
 0x31c   :  { %v787_v51 = vsel %vm673_vm5, %v781_v50, 0.0 }
 0x31d   :  { %788 = vadd.xlane.f32.xlu0 %v787_v51 }
 0x39a   :  { %v786_v52 = vpop.xlane.xlu1 %785 }
 0x39b   :  { %v795_v53 = vrot.slane %v786_v52, %v3787_v41  ;;  %v799_v54 = vrot.slane %v786_v52, %v3795_v45  ;;  %v803_v1 = vrot.slane %v786_v52, %v3810_v63 }
 0x39d   :  { %3202 = vrcp.f32 %v795_v53 }
 0x39e   :  { %3204 = vrcp.f32 %v799_v54 }
 0x3a6   :  { %v789_v55 = vpop.xlane.xlu0 %788 }
 0x3a7   :  { %v807_v56 = vrot.slane %v789_v55, %v3787_v41  ;;  %v811_v57 = vrot.slane %v789_v55, %v3795_v45  ;;  %v815_v59 = vrot.slane %v789_v55, %v3810_v63 }
 0x3a9   :  { %3206 = vrcp.f32 %v807_v56 }
 0x3aa   :  { %v3203_v60 = vpop.eup %3202  ;;  %3208 = vrcp.f32 %v811_v57 }
 0x3ab   :  { %v3205_v62 = vpop.eup %3204  ;;  %3210 = vrcp.f32 %v815_v59  ;;  %v3887_v2 = vmul.f32 %v3203_v60, %v3191_v18  ;;  %v3165_v18 = vld [vmem:[%s4532_s9 + $0x28] sm:$0xff]  }
 0x3ac   :  { %v3889_v4 = vmul.f32 %v3205_v62, %v3193_v20  ;;  %3212 = vrcp.f32 %v803_v1  ;;  %v153_v20 = vld [vmem:[#allocation8] sm:$0xff]   ;;  %3043 = vmatprep.subr.bf16.mxu0 %v3165_v18 }
 0x3ad   :  { %841 = vperm.xlu1 %3084, %v3887_v2   ;;  %3055 = vmatprep.mubr.bf16.mxu0 %v153_v20 }
 0x3ae   :  { %844 = vperm.xlu0 %3083, %v3889_v4   ;;  %3044 = vmatpush3.bf16.msra.mxu0 %v3165_v18 }
 0x3b6   :  { %v3207_v5 = vpop.eup %3206 }
 0x3b7   :  { %v3209_v6 = vpop.eup %3208  ;;  %v3893_v7 = vmul.f32 %v3207_v5, %v3197_v23  ;;  %v3167_v23 = vld [vmem:[%s4532_s9 + $0x20] sm:$0xff]  }
 0x3b8   :  { %v3211_v8 = vpop.eup %3210  ;;  %v3899_v10 = vmul.f32 %v3209_v6, %v3199_v24  ;;  %3045 = vmatprep.subr.bf16.mxu0 %v3167_v23  ;;  %v3168_v24 = vld [vmem:[#allocation13 + $0x18] sm:$0xff]  }
 0x3b9   :  { %v3895_v9 = vmul.f32 %v3211_v8, %v3201_v25  ;;  %850 = vperm.xlu1 %3084, %v3893_v7   ;;  %v3213_v11 = vpop.eup %3212  ;;  %v3169_v25 = vld [vmem:[%s4532_s9 + $0x18] sm:$0xff]   ;;  %3046 = vmatpush3.bf16.msra.mxu0 %v3167_v23 }
 0x3ba   :  { %v3902_v12 = vmul.f32 %v3213_v11, %v3195_v21  ;;  %v3166_v21 = vld [vmem:[#allocation13 + $0x20] sm:$0xff]   ;;  %3047 = vmatprep.subr.bf16.mxu0 %v3169_v25 }
 0x3bb   :  { %856 = vperm.xlu0 %3083, %v3895_v9   ;;  %3025 = vmatprep.subr.bf16.mxu1 %v3166_v21 }
 0x3bc   :  { %3026 = vmatpush3.bf16.msra.mxu1 %v3166_v21 }
 0x3bd   :  { %853 = vperm.xlu1 %3084, %v3899_v10   ;;  %3027 = vmatprep.subr.bf16.mxu1 %v3168_v24 }
 0x3be   :  { %3048 = vmatpush3.bf16.msra.mxu0 %v3169_v25 }
 0x3bf   :  { %3049 = vmatprep.subr.bf16.mxu0 %v3171_v27 }
 0x3c0   :  { %3028 = vmatpush3.bf16.msra.mxu1 %v3168_v24 }
 0x3c1   :  { %847 = vperm.xlu1 %3084, %v3902_v12   ;;  %3029 = vmatprep.subr.bf16.mxu1 %v3170_v26 }
 0x3c2   :  { %3050 = vmatpush3.bf16.msra.mxu0 %v3171_v27 }
 0x3c3   :  { %3051 = vmatprep.subr.bf16.mxu0 %v3173_v30 }
 0x3c4   :  { %3030 = vmatpush3.bf16.msra.mxu1 %v3170_v26 }
 0x3c5   :  { %3031 = vmatprep.subr.bf16.mxu1 %v3172_v28 }
 0x3c6   :  { %3052 = vmatpush3.bf16.msra.mxu0 %v3173_v30 }
 0x3c7   :  { %3053 = vmatprep.subr.bf16.mxu0 %v3175_v33 }
 0x3c8   :  { %3032 = vmatpush3.bf16.msra.mxu1 %v3172_v28 }
 0x3c9   :  { %3033 = vmatprep.subr.bf16.mxu1 %v3174_v31 }
 0x3ca   :  { %3054 = vmatpush3.bf16.msra.mxu0 %v3175_v33 }
 0x3cc   :  { %3034 = vmatpush3.bf16.msra.mxu1 %v3174_v31 }
 0x3cd   :  { %3056 = vmatmul.mubr.bf16.vlgmr.msra.gmra.mxu0 %v155_v36 }
 0x3cf   :  { %3036 = vmatmul.mubr.bf16.vlgmr.msra.gmra.mxu1 %v159_v34 }
 0x428   :  { %v842_v40 = vpop.permute.xlu1 %841 }
 0x429   :  { %v845_v42 = vpop.permute.xlu0 %844  ;;  %v861_v38 = vrot.slane %v842_v40, %v3849_v37 }
 0x42a   :  { %v865_v50 = vrot.slane %v845_v42, %v3849_v37 }
 0x42c   :  { %v882_v57 = vsel %vm665_vm3, %v865_v50, %v861_v38 }
 0x434   :  { %v851_v43 = vpop.permute.xlu1 %850 }
 0x435   :  { %v873_v48 = vrot.slane %v851_v43, %v3849_v37 }
 0x436   :  { %v857_v46 = vpop.permute.xlu0 %856 }
 0x437   :  { %v881_v51 = vrot.slane %v857_v46, %v3849_v37 }
 0x438   :  { %v854_v47 = vpop.permute.xlu1 %853 }
 0x439   :  { %v877_v49 = vrot.slane %v854_v47, %v3849_v37 }
 0x43b   :  { %v884_v52 = vsel %vm665_vm3, %v877_v49, %v873_v48 }
 0x43c   :  { %v848_v53 = vpop.permute.xlu1 %847  ;;  %v885_v54 = vsel %vm667_vm4, %v881_v51, %v884_v52 }
 0x43d   :  { %v869_v55 = vrot.slane %v848_v53, %v3849_v37  ;;  %v891_v56 = vsel %vm673_vm5, %v885_v54, 0.0 }
 0x43e   :  { %892 = vadd.xlane.f32.xlu0 %v891_v56 }
 0x43f   :  { %v883_v59 = vsel %vm667_vm4, %v869_v55, %v882_v57 }
 0x440   :  { %v888_v60 = vsel %vm673_vm5, %v883_v59, 0.0  ;;  %vm274_vm5 = vcmask 17408  }
 0x441   :  { %889 = vadd.xlane.f32.xlu1 %v888_v60 }
 0x48f   :  { %v3958_v55 = vpop.f32.mrf.mxu1 }
 0x4c7   :  { %v893_v62 = vpop.xlane.xlu0 %892 }
 0x4c8   :  { %v895_v1 = vadd.f32 1e-06, %v893_v62 }
 0x4ca   :  { %v890_v5 = vpop.xlane.xlu1 %889  ;;  %v921_v13 = vrot.slane %v895_v1, %v3810_v63  ;;  %v917_v14 = vrot.slane %v895_v1, %v3795_v45  ;;  %v913_v15 = vrot.slane %v895_v1, %v3787_v41 }
 0x4cb   :  { %v894_v6 = vadd.f32 1e-06, %v890_v5 }
 0x4cd   :  { %v905_v8 = vrot.slane %v894_v6, %v3795_v45  ;;  %v909_v11 = vrot.slane %v894_v6, %v3810_v63  ;;  %v901_v16 = vrot.slane %v894_v6, %v3787_v41 }
 0x4cf   :  { %3214 = vrcp.f32 %v905_v8 }
 0x4d0   :  { %3216 = vrcp.f32 %v909_v11 }
 0x4d1   :  { %3218 = vrcp.f32 %v921_v13  ;;  %v1140_v13 = vpop.f32.mrf.mxu1 }
 0x4d2   :  { %3220 = vrcp.f32 %v917_v14 }
 0x4d3   :  { %3222 = vrcp.f32 %v913_v15 }
 0x4d4   :  { %3224 = vrcp.f32 %v901_v16 }
 0x4dc   :  { %v3215_v17 = vpop.eup %3214 }
 0x4dd   :  { %v3217_v18 = vpop.eup %3216  ;;  %v931_v19 = vmul.f32 %v3215_v17, %v3889_v4 }
 0x4de   :  { %v3219_v20 = vpop.eup %3218  ;;  %v933_v21 = vmul.f32 %v3217_v18, %v3902_v12 }
 0x4df   :  { %v3221_v23 = vpop.eup %3220  ;;  %947 = vperm.xlu0 %3083, %v931_v19   ;;  %v939_v24 = vmul.f32 %v3219_v20, %v3895_v9  ;;  %v3571_v9 = vmov 1934713408  }
 0x4e0   :  { %952 = vperm.xlu1 %3084, %v933_v21   ;;  %v3223_v25 = vpop.eup %3222  ;;  %v937_v26 = vmul.f32 %v3221_v23, %v3899_v10  ;;  %v574_v36 = vunpack.c.l.s4 %v3571_v9  ;;  %v3038_v21 = vpop.f32.mrf.mxu1  ;;  %v3971_v9 = vld [vmem:[%s4534_s11] ss:$0 sm:$0xff] }
 0x4e1   :  { %v3225_v27 = vpop.eup %3224  ;;  %v935_v28 = vmul.f32 %v3223_v25, %v3893_v7 }
 0x4e2   :  { %v929_v30 = vmul.f32 %v3225_v27, %v3887_v2  ;;  %v575_v49 = vunpack.c.0.s8 %v574_v36 }
 0x4e3   :  { %967 = vperm.xlu0 %3083, %v939_v24  }
 0x4e4   :  { %962 = vperm.xlu1 %3084, %v937_v26   ;;  %v578_v62 = vsub.s32 %v575_v49, %v3781_v39 }
 0x4e7   :  { %957 = vperm.xlu0 %3083, %v935_v28  }
 0x4e8   :  { %942 = vperm.xlu1 %3084, %v929_v30  }
 0x55a   :  { %v948_v4 = vpop.permute.xlu0 %947 }
 0x55b   :  { %v953_v31 = vpop.permute.xlu1 %952  ;;  %v971_v12 = vmul.f32 %v948_v4, %v3803_v58 }
 0x55c   :  { %v972_v33 = vmul.f32 %v953_v31, %v3803_v58 }
 0x55d   :  { %v982_v34 = vrot.slane %v971_v12, 4 }
 0x55e   :  { %v988_v40 = vrot.slane %v972_v33, 4  ;;  %v968_v10 = vpop.permute.xlu0 %967 }
 0x55f   :  { %v983_v42 = vadd.f32 %v982_v34, %v971_v12  ;;  %v963_v43 = vpop.permute.xlu1 %962  ;;  %v975_v46 = vmul.f32 %v968_v10, %v3815_v0  ;;  %v1143_v12 = vpop.f32.mrf.mxu1  ;;  %v2915_v10 = vld [vmem:[%s4537_s15] ss:$0 sm:$0xff] }
 0x560   :  { %v989_v7 = vadd.f32 %v988_v40, %v972_v33  ;;  %v974_v2 = vmul.f32 %v963_v43, %v3815_v0  ;;  %v1155_v40 = vpack.c.bf16 %v1143_v12, %v1140_v13 }
 0x561   :  { %v984_v47 = vrot.slane %v983_v42, 2  ;;  %v1006_v48 = vrot.slane %v975_v46, 4 }
 0x562   :  { %v1000_v38 = vrot.slane %v974_v2, 4  ;;  %v958_v50 = vpop.permute.xlu0 %957  ;;  %v990_v51 = vrot.slane %v989_v7, 2 }
 0x563   :  { %v1007_v52 = vadd.f32 %v1006_v48, %v975_v46  ;;  %v943_v53 = vpop.permute.xlu1 %942  ;;  %v973_v54 = vmul.f32 %v958_v50, %v3815_v0  ;;  %v985_v56 = vadd.f32 %v984_v47, %v983_v42  ;;  %v579_v0 = vrot.slane %v572_v32, %v578_v62 }
 0x564   :  { %v1001_v57 = vadd.f32 %v1000_v38, %v974_v2  ;;  %v970_v59 = vmul.f32 %v943_v53, %v3803_v58  ;;  %v991_v6 = vadd.f32 %v990_v51, %v989_v7  ;;  %v3986_v50 = vunpack.c.l.bf16 %v1155_v40 }
 0x565   :  { %v994_v60 = vrot.slane %v973_v54, 4  ;;  %v1008_v8 = vrot.slane %v1007_v52, 2  ;;  %v986_v14 = vrot.slane %v985_v56, 1  ;;  %v1014_v27 = vrot.slane %v579_v0, 1 }
 0x566   :  { %v1002_v1 = vrot.slane %v1001_v57, 2  ;;  %v976_v5 = vrot.slane %v970_v59, 4  ;;  %v992_v19 = vrot.slane %v991_v6, 1  ;;  %v580_v4 = vcombine.high %v579_v0, %v3567_v3 }
 0x567   :  { %v995_v11 = vadd.f32 %v994_v60, %v973_v54  ;;  %v1009_v58 = vadd.f32 %v1008_v8, %v1007_v52  ;;  %v987_v23 = vadd.f32 %v986_v14, %v985_v56  ;;  %v1015_v32 = vrot.slane %v579_v0, 2  ;;  %v3057_v54 = vpop.f32.mrf.mxu0 }
 0x568   :  { %v977_v15 = vadd.f32 %v976_v5, %v970_v59  ;;  %v1003_v16 = vadd.f32 %v1002_v1, %v1001_v57  ;;  %v993_v30 = vadd.f32 %v992_v19, %v991_v6  ;;  %v1016_v43 = vrot.slane %v580_v4, 1 }
 0x569   :  { %v996_v17 = vrot.slane %v995_v11, 2  ;;  %v1010_v31 = vrot.slane %v1009_v58, 1  ;;  %v3966_v33 = vadd.f32 %v1014_v27, %v987_v23  ;;  %v1017_v49 = vrot.slane %v580_v4, 2 }
 0x56a   :  { %v978_v18 = vrot.slane %v977_v15, 2  ;;  %v1004_v25 = vrot.slane %v1003_v16, 1  ;;  %v3976_v42 = vadd.f32 %v1015_v32, %v993_v30  ;;  %v3988_v51 = vunpack.c.h.bf16 %v1155_v40 }
 0x56b   :  { %v997_v20 = vadd.f32 %v996_v17, %v995_v11  ;;  %v1011_v46 = vadd.f32 %v1010_v31, %v1009_v58  ;;  %v1292_v47 = vmul.f32 %v3971_v9, %v3966_v33  ;;  %v1634_v38 = vmul.f32 %v2915_v10, %v3966_v33  ;;  %v1267_v11 = vpop.f32.mrf.mxu0 }
 0x56c   :  { %v979_v24 = vadd.f32 %v978_v18, %v977_v15  ;;  %v1005_v34 = vadd.f32 %v1004_v25, %v1003_v16  ;;  %v1635_v57 = vmul.f32 %v2915_v10, %v3976_v42  ;;  %v1156_v8 = vpack.c.bf16 %v3038_v21, %v3958_v55 }
 0x56d   :  { %v998_v26 = vrot.slane %v997_v20, 1  ;;  %v3991_v53 = vadd.f32 %v1017_v49, %v1011_v46  ;;  %v1308_v62 = vrot.slane %v1292_v47, %v3787_v41  ;;  %v1645_v5 = vrot.slane %v1634_v38, 7 }
 0x56e   :  { %v980_v28 = vrot.slane %v979_v24, 1  ;;  %v3983_v48 = vadd.f32 %v1016_v43, %v1005_v34  ;;  %v1647_v14 = vrot.slane %v1635_v57, 6  ;;  %v4007_v58 = vunpack.c.l.bf16 %v1156_v8 }
 0x56f   :  { %v999_v29 = vadd.f32 %v998_v26, %v997_v20  ;;  %v1328_v16 = vmul.f32 %v1308_v62, %v3988_v51  ;;  %v1327_v17 = vmul.f32 %v1308_v62, %v3986_v50  ;;  %v1638_v18 = vmul.f32 %v2915_v10, %v3991_v53  ;;  %v3058_v20 = vpop.f32.mrf.mxu0 }
 0x570   :  { %v981_v61 = vadd.f32 %v980_v28, %v979_v24  ;;  %v1637_v6 = vmul.f32 %v2915_v10, %v3983_v48  ;;  %v1295_v25 = vmul.f32 %v3971_v9, %v3983_v48  ;;  %v1300_v27 = vunpack.c.h.bf16 %v1156_v8 }
 0x571   :  { %v3978_v7 = vadd.f32 %v999_v29, %v580_v4  ;;  %v1651_v24 = vrot.slane %v1638_v18, 6  ;;  %v1270_v30 = vpop.f32.mrf.mxu0  ;;  %v2889_v4 = vld [vmem:[%s4536_s13] ss:$0 sm:$0xff] }
 0x572   :  { %v1024_v36 = vadd.f32 %v981_v61, %v579_v0  ;;  %v1649_v19 = vrot.slane %v1637_v6, 7  ;;  %v1320_v12 = vrot.slane %v1295_v25, %v3787_v41  ;;  %v1282_v32 = vpack.c.bf16 %v1270_v30, %v1267_v11  ;;  %v2916_v25 = vld [vmem:[#allocation4] ss:$0 sm:$0xff] }
 0x573   :  { %v1294_v1 = vmul.f32 %v3971_v9, %v3978_v7  ;;  %v1636_v15 = vmul.f32 %v2915_v10, %v3978_v7  ;;  %v1391_v43 = vmul.f32 %v2889_v4, %v3966_v33  ;;  %v1393_v38 = vmul.f32 %v2889_v4, %v3978_v7 }
 0x574   :  { %v1291_v2 = vmul.f32 %v3971_v9, %v1024_v36  ;;  %v1633_v56 = vmul.f32 %v2915_v10, %v1024_v36  ;;  %v1390_v61 = vmul.f32 %v2889_v4, %v1024_v36  ;;  %v1334_v34 = vmul.f32 %v1320_v12, %v1300_v27 }
 0x575   :  { %v1316_v0 = vrot.slane %v1294_v1, %v3787_v41  ;;  %v1650_v21 = vsel %vm665_vm3, %v1649_v19, %v1636_v15  ;;  %v1333_v40 = vmul.f32 %v1320_v12, %v4007_v58  ;;  %v1396_v46 = vunpack.c.l.bf16 %v1282_v32 }
 0x576   :  { %v1304_v52 = vrot.slane %v1291_v2, %v3787_v41  ;;  %v1646_v13 = vsel %vm665_vm3, %v1645_v5, %v1633_v56  ;;  %v1652_v28 = vsel %vm667_vm4, %v1651_v24, %v1650_v21  ;;  %v1403_v10 = vrot.slane %v1390_v61, %v3787_v41  ;;  %v2888_v21 = vld [vmem:[#allocation2] ss:$0 sm:$0xff] }
 0x577   :  { %v1648_v55 = vsel %vm667_vm4, %v1647_v14, %v1646_v13  ;;  %v1331_v23 = vmul.f32 %v1316_v0, %v4007_v58  ;;  %v1332_v31 = vmul.f32 %v1316_v0, %v1300_v27  ;;  %v1659_v29 = vsel %vm1655_vm6, %v1652_v28, 0.0 }
 0x578   :  { %v1326_v59 = vmul.f32 %v1304_v52, %v3988_v51  ;;  %v1325_v60 = vmul.f32 %v1304_v52, %v3986_v50  ;;  %v1656_v26 = vsel %vm1655_vm6, %v1648_v55, 0.0  ;;  %v1397_v2 = vunpack.c.h.bf16 %v1282_v32 }
 0x579   :  { %v1424_v49 = vmul.f32 %v1403_v10, %v1396_v46  ;;  %v1407_v36 = vrot.slane %v1391_v43, %v3787_v41  ;;  %v1283_v52 = vpack.c.bf16 %v3058_v20, %v3057_v54  ;;  %v1293_v7 = vmul.f32 %v3971_v9, %v3976_v42 }
 0x57a   :  { %1339 = vadd.xlane.f32.xlu1 %v1326_v59  ;;  %1337 = vadd.xlane.f32.xlu0 %v1325_v60  ;;  %v1425_v47 = vmul.f32 %v1403_v10, %v1397_v2  ;;  %v1415_v59 = vrot.slane %v1393_v38, %v3787_v41  ;;  %v1394_v60 = vmul.f32 %v2889_v4, %v3983_v48  ;;  %vm286_vm6 = vcmask 33816  }
 0x57b   :  { %v1427_v56 = vmul.f32 %v1407_v36, %v1397_v2  ;;  %v1426_v57 = vmul.f32 %v1407_v36, %v1396_v46  ;;  %v1398_v33 = vunpack.c.l.bf16 %v1283_v52  ;;  %v1399_v62 = vunpack.c.h.bf16 %v1283_v52 }
 0x57c   :  { %v1419_v6 = vrot.slane %v1394_v60, %v3787_v41  ;;  %v1312_v11 = vrot.slane %v1293_v7, %v3787_v41  ;;  %v1296_v48 = vmul.f32 %v3971_v9, %v3991_v53  ;;  %v1395_v19 = vmul.f32 %v2889_v4, %v3991_v53 }
 0x57d   :  { %v1431_v1 = vmul.f32 %v1415_v59, %v1399_v62  ;;  %v1430_v5 = vmul.f32 %v1415_v59, %v1398_v33 }
 0x57e   :  { %1343 = vadd.xlane.f32.xlu1 %v1328_v16  ;;  %1341 = vadd.xlane.f32.xlu0 %v1327_v17  ;;  %v1433_v54 = vmul.f32 %v1419_v6, %v1399_v62  ;;  %v1432_v8 = vmul.f32 %v1419_v6, %v1398_v33  ;;  %v1330_v13 = vmul.f32 %v1312_v11, %v3988_v51 }
 0x57f   :  { %v1329_v14 = vmul.f32 %v1312_v11, %v3986_v50  ;;  %v1324_v15 = vrot.slane %v1296_v48, %v3787_v41  ;;  %v1392_v16 = vmul.f32 %v2889_v4, %v3976_v42  ;;  %v1423_v51 = vrot.slane %v1395_v19, %v3787_v41  ;;  %v2890_v42 = vld [vmem:[#allocation3] ss:$0 sm:$0xff] }
 0x580   :  { %v2919_v19 = vld.sshfl [vmem:[%s4559_s10] sm:$0x11 pattern:$0x75316420] }
 0x581   :  { %v1336_v17 = vmul.f32 %v1324_v15, %v1300_v27  ;;  %v1335_v0 = vmul.f32 %v1324_v15, %v4007_v58  ;;  %v1411_v18 = vrot.slane %v1392_v16, %v3787_v41  ;;  %v1435_v50 = vmul.f32 %v1423_v51, %v1399_v62 }
 0x582   :  { %1657 = vadd.xlane.f32.xlu1 %v1656_v26  ;;  %1349 = vadd.xlane.f32.xlu0 %v1331_v23  ;;  %v1434_v20 = vmul.f32 %v1423_v51, %v1398_v33  ;;  %v1865_v51 = vcombine.high %v2919_v19, %v2919_v19 }
 0x583   :  { %v1429_v9 = vmul.f32 %v1411_v18, %v1397_v2  ;;  %v1428_v55 = vmul.f32 %v1411_v18, %v1396_v46 }
 0x586   :  { %1351 = vadd.xlane.f32.xlu1 %v1332_v31  ;;  %1660 = vadd.xlane.f32.xlu0 %v1659_v29 }
 0x58a   :  { %1355 = vadd.xlane.f32.xlu1 %v1334_v34  ;;  %1353 = vadd.xlane.f32.xlu0 %v1333_v40 }
 0x58e   :  { %1438 = vadd.xlane.f32.xlu1 %v1425_v47  ;;  %1436 = vadd.xlane.f32.xlu0 %v1424_v49 }
 0x592   :  { %1442 = vadd.xlane.f32.xlu1 %v1427_v56  ;;  %1440 = vadd.xlane.f32.xlu0 %v1426_v57 }
 0x596   :  { %1450 = vadd.xlane.f32.xlu1 %v1431_v1  ;;  %1448 = vadd.xlane.f32.xlu0 %v1430_v5  ;;  %v3572_v5 = vmov 1966171168  }
 0x597   :  { %v1867_v6 = vunpack.c.l.s4 %v3572_v5  ;;  %v1709_v5 = vadd.s32 4294967288, %v3845_v35 }
 0x59a   :  { %1454 = vadd.xlane.f32.xlu1 %v1433_v54  ;;  %1452 = vadd.xlane.f32.xlu0 %v1432_v8 }
 0x59e   :  { %1347 = vadd.xlane.f32.xlu1 %v1330_v13  ;;  %1345 = vadd.xlane.f32.xlu0 %v1329_v14 }
 0x5a2   :  { %1359 = vadd.xlane.f32.xlu1 %v1336_v17  ;;  %1357 = vadd.xlane.f32.xlu0 %v1335_v0  ;;  %v1868_v17 = vunpack.c.0.s8 %v1867_v6 }
 0x5a4   :  { %v1871_v18 = vsub.s32 %v1868_v17, %v3781_v39 }
 0x5a6   :  { %1446 = vadd.xlane.f32.xlu1 %v1429_v9  ;;  %1444 = vadd.xlane.f32.xlu0 %v1428_v55  ;;  %v1872_v9 = vrot.slane %v2919_v19, %v1871_v18  ;;  %v2933_v55 = vld [vmem:[#allocation5] sm:$0xff]  }
 0x5aa   :  { %1458 = vadd.xlane.f32.xlu1 %v1435_v50  ;;  %1456 = vadd.xlane.f32.xlu0 %v1434_v20  ;;  %v4084_v20 = vunpack.c.h.bf16 %v2933_v55 }
 0x5bb   :  { %1467 = vperm.xlu1 %3084, %v2890_v42   ;;  %v1887_v42 = vrot.slane %v1872_v9, %v3787_v41 }
 0x5c0   :  { %1368 = vperm.xlu0 %3083, %v2888_v21  }
 0x603   :  { %v1340_v58 = vpop.xlane.xlu1 %1339  ;;  %v1338_v23 = vpop.xlane.xlu0 %1337 }
 0x607   :  { %v1344_v24 = vpop.xlane.xlu1 %1343  ;;  %v1342_v53 = vpop.xlane.xlu0 %1341 }
 0x60b   :  { %v1658_v26 = vpop.xlane.xlu1 %1657  ;;  %v4042_v27 = vpop.xlane.xlu0 %1349 }
 0x60c   :  { %v1669_v28 = vadd.f32 %v2916_v25, %v1658_v26 }
 0x60e   :  { %v2917_v30 = vmul.f32 -1.442695, %v1669_v28 }
 0x60f   :  { %v1661_v4 = vpop.xlane.xlu0 %1660  ;;  %v4058_v36 = vpop.xlane.xlu1 %1351 }
 0x610   :  { %3226 = vpow2.f32 %v2917_v30  ;;  %v1670_v31 = vadd.f32 %v2916_v25, %v1661_v4 }
 0x612   :  { %v2918_v12 = vmul.f32 -1.442695, %v1670_v31  ;;  %v1895_v31 = vmul.f32 %v4084_v20, %v1887_v42 }
 0x613   :  { %v4044_v61 = vpop.xlane.xlu0 %1353  ;;  %v4062_v59 = vpop.xlane.xlu1 %1355 }
 0x614   :  { %3228 = vpow2.f32 %v2918_v12 }
 0x617   :  { %v4046_v29 = vpop.xlane.xlu0 %1436  ;;  %v4066_v62 = vpop.xlane.xlu1 %1438 }
 0x61b   :  { %v4048_v32 = vpop.xlane.xlu0 %1440  ;;  %v4074_v48 = vpop.xlane.xlu1 %1442 }
 0x61d   :  { %v3227_v34 = vpop.eup %3226 }
 0x61e   :  { %v1677_v40 = vadd.f32 1.0, %v3227_v34 }
 0x61f   :  { %v4050_v10 = vpop.xlane.xlu0 %1448  ;;  %v4076_v0 = vpop.xlane.xlu1 %1450 }
 0x620   :  { %3230 = vrcp.f32 %v1677_v40 }
 0x621   :  { %v3229_v43 = vpop.eup %3228 }
 0x622   :  { %v1678_v46 = vadd.f32 1.0, %v3229_v43 }
 0x623   :  { %v4052_v2 = vpop.xlane.xlu0 %1452  ;;  %v4082_v50 = vpop.xlane.xlu1 %1454 }
 0x624   :  { %3232 = vrcp.f32 %v1678_v46 }
 0x627   :  { %v4054_v47 = vpop.xlane.xlu0 %1345  ;;  %v1348_v4 = vpop.xlane.xlu1 %1347 }
 0x62b   :  { %v4056_v49 = vpop.xlane.xlu0 %1357 }
 0x62d   :  { %v3231_v38 = vpop.eup %3230 }
 0x62e   :  { %1685 = vperm.xlu1 %3084, %v3231_v38   ;;  %v1769_v52 = vsub.f32 1.0, %v3231_v38 }
 0x62f   :  { %v4060_v57 = vpop.xlane.xlu0 %1444 }
 0x631   :  { %v3233_v56 = vpop.eup %3232 }
 0x632   :  { %1773 = vperm.xlu1 %3084, %v1769_v52   ;;  %1690 = vperm.xlu0 %3083, %v3233_v56   ;;  %v1770_v60 = vsub.f32 1.0, %v3233_v56  ;;  %v4097_v56 = vpop.xlane.xlu1 %1359 }
 0x633   :  { %v4064_v33 = vpop.xlane.xlu0 %1456 }
 0x636   :  { %1778 = vperm.xlu0 %3083, %v1770_v60   ;;  %v1447_v6 = vpop.xlane.xlu1 %1446 }
 0x63b   :  { %v4068_v1 = vpop.permute.xlu0 %1368 }
 0x63c   :  { %v1371_v7 = vadd.f32 %v4068_v1, %v1338_v23  ;;  %v1372_v54 = vadd.f32 %v4068_v1, %v1340_v58  ;;  %v1373_v8 = vadd.f32 %v4068_v1, %v1342_v53  ;;  %v1374_v11 = vadd.f32 %v4068_v1, %v1344_v24  ;;  %v2940_v24 = vld [vmem:[#allocation5 + $0x8] sm:$0xff]  }
 0x63d   :  { %v1879_v58 = vrot.slane %v1865_v51, %v1871_v18  ;;  %v4087_v53 = vunpack.c.l.bf16 %v2933_v55  ;;  %v4090_v34 = vunpack.c.l.bf16 %v2940_v24  ;;  %v4094_v38 = vunpack.c.h.bf16 %v2940_v24  ;;  %v1459_v18 = vpop.xlane.xlu1 %1458  ;;  %v148_v51 = vld [vmem:[%s4560_s0] sm:$0x3] }
 0x63e   :  { %v2891_v13 = vmul.f32 -1.442695, %v1371_v7  ;;  %v2892_v14 = vmul.f32 -1.442695, %v1372_v54  ;;  %v2893_v15 = vmul.f32 -1.442695, %v1373_v8  ;;  %v4102_v54 = vsub.s32 %v1709_v5, %v3781_v39 }
 0x63f   :  { %v2894_v16 = vmul.f32 -1.442695, %v1374_v11  ;;  %v1891_v40 = vrot.slane %v1879_v58, %v3787_v41  ;;  %v1894_v46 = vmul.f32 %v4087_v53, %v1887_v42  ;;  %v1375_v58 = vadd.f32 %v4068_v1, %v4054_v47 }
 0x640   :  { %3234 = vpow2.f32 %v2891_v13 }
 0x641   :  { %3236 = vpow2.f32 %v2892_v14  ;;  %v1896_v52 = vmul.f32 %v4090_v34, %v1891_v40  ;;  %v1897_v60 = vmul.f32 %v4094_v38, %v1891_v40  ;;  %v1468_v9 = vpop.permute.xlu1 %1467 }
 0x642   :  { %3238 = vpow2.f32 %v2893_v15  ;;  %v1471_v55 = vadd.f32 %v1468_v9, %v4066_v62  ;;  %v1473_v42 = vadd.f32 %v1468_v9, %v4074_v48  ;;  %v1472_v62 = vadd.f32 %v1468_v9, %v4048_v32 }
 0x643   :  { %3240 = vpow2.f32 %v2894_v16  ;;  %v1377_v48 = vadd.f32 %v4068_v1, %v4042_v27  ;;  %v1478_v5 = vadd.f32 %v1468_v9, %v4052_v2 }
 0x644   :  { %v2904_v24 = vmul.f32 -1.442695, %v1471_v55  ;;  %v2905_v40 = vmul.f32 -1.442695, %v1472_v62 }
 0x645   :  { %v2897_v27 = vmul.f32 -1.442695, %v1377_v48 }
 0x64d   :  { %v3235_v21 = vpop.eup %3234 }
 0x64e   :  { %v3237_v23 = vpop.eup %3236  ;;  %v1518_v25 = vadd.f32 1.0, %v3235_v21  ;;  %v1475_v21 = vadd.f32 %v1468_v9, %v1447_v6 }
 0x64f   :  { %v3239_v26 = vpop.eup %3238  ;;  %v1519_v28 = vadd.f32 1.0, %v3237_v23  ;;  %v1376_v23 = vadd.f32 %v4068_v1, %v1348_v4  ;;  %v1378_v4 = vadd.f32 %v4068_v1, %v4058_v36 }
 0x650   :  { %v3241_v30 = vpop.eup %3240  ;;  %v1520_v12 = vadd.f32 1.0, %v3239_v26  ;;  %3242 = vrcp.f32 %v1518_v25  ;;  %v2906_v25 = vmul.f32 -1.442695, %v1473_v42  ;;  %v1470_v26 = vadd.f32 %v1468_v9, %v4046_v29 }
 0x651   :  { %v1521_v43 = vadd.f32 1.0, %v3241_v30  ;;  %3244 = vrcp.f32 %v1519_v28  ;;  %v2908_v28 = vmul.f32 -1.442695, %v1475_v21  ;;  %v2895_v30 = vmul.f32 -1.442695, %v1375_v58 }
 0x652   :  { %3246 = vrcp.f32 %v1520_v12  ;;  %v2896_v12 = vmul.f32 -1.442695, %v1376_v23  ;;  %v2903_v47 = vmul.f32 -1.442695, %v1470_v26  ;;  %v1379_v29 = vadd.f32 %v4068_v1, %v4044_v61 }
 0x653   :  { %3248 = vrcp.f32 %v1521_v43  ;;  %v1381_v43 = vadd.f32 %v4068_v1, %v4056_v49  ;;  %v1382_v49 = vadd.f32 %v4068_v1, %v4097_v56 }
 0x654   :  { %3250 = vpow2.f32 %v2904_v24  ;;  %v2899_v36 = vmul.f32 -1.442695, %v1379_v29 }
 0x655   :  { %1900 = vadd.xlane.f32.xlu0 %v1895_v31  ;;  %v1474_v31 = vadd.f32 %v1468_v9, %v4060_v57  ;;  %3252 = vpow2.f32 %v2906_v25  ;;  %v1380_v57 = vadd.f32 %v4068_v1, %v4062_v59  ;;  %v2901_v6 = vmul.f32 -1.442695, %v1381_v43 }
 0x656   :  { %1898 = vadd.xlane.f32.xlu1 %v1894_v46  ;;  %3254 = vpow2.f32 %v2908_v28  ;;  %v2898_v46 = vmul.f32 -1.442695, %v1378_v4  ;;  %v1479_v59 = vadd.f32 %v1468_v9, %v4082_v50  ;;  %v2902_v2 = vmul.f32 -1.442695, %v1382_v49 }
 0x657   :  { %3256 = vpow2.f32 %v2895_v30  ;;  %v2907_v32 = vmul.f32 -1.442695, %v1474_v31  ;;  %v2900_v61 = vmul.f32 -1.442695, %v1380_v57 }
 0x658   :  { %3258 = vpow2.f32 %v2896_v12 }
 0x659   :  { %1902 = vadd.xlane.f32.xlu0 %v1896_v52  ;;  %3260 = vpow2.f32 %v2903_v47  ;;  %v1476_v52 = vadd.f32 %v1468_v9, %v4050_v10  ;;  %v1480_v10 = vadd.f32 %v1468_v9, %v4064_v33 }
 0x65a   :  { %1904 = vadd.xlane.f32.xlu1 %v1897_v60  ;;  %3262 = vpow2.f32 %v2905_v40  ;;  %v1477_v60 = vadd.f32 %v1468_v9, %v4076_v0  ;;  %v2911_v0 = vmul.f32 -1.442695, %v1478_v5 }
 0x65b   :  { %3264 = vpow2.f32 %v2907_v32  ;;  %v2913_v50 = vmul.f32 -1.442695, %v1480_v10 }
 0x65c   :  { %3266 = vpow2.f32 %v2897_v27 }
 0x65d   :  { %v3243_v7 = vpop.eup %3242  ;;  %3268 = vpow2.f32 %v2898_v46 }
 0x65e   :  { %v3245_v8 = vpop.eup %3244  ;;  %v1708_v11 = vrot.slane %v3243_v7, %v3849_v37  ;;  %v2909_v7 = vmul.f32 -1.442695, %v1476_v52  ;;  %3270 = vpow2.f32 %v2899_v36 }
 0x65f   :  { %v3247_v13 = vpop.eup %3246  ;;  %v1713_v14 = vrot.slane %v3245_v8, %v4102_v54  ;;  %v2910_v8 = vmul.f32 -1.442695, %v1477_v60  ;;  %3272 = vpow2.f32 %v2900_v61 }
 0x660   :  { %v3249_v15 = vpop.eup %3248  ;;  %v1719_v16 = vrot.slane %v3247_v13, %v3849_v37  ;;  %3274 = vpow2.f32 %v2901_v6  ;;  %v2912_v13 = vmul.f32 -1.442695, %v1479_v59 }
 0x661   :  { %v1715_v17 = vsel %vm1714_vm7, %v1713_v14, %v1708_v11  ;;  %v1723_v35 = vrot.slane %v3249_v15, %v4102_v54  ;;  %v1481_v11 = vadd.f32 %v1468_v9, %v1459_v18  ;;  %v3251_v14 = vpop.eup %3250  ;;  %3276 = vpow2.f32 %v2909_v7 }
 0x662   :  { %v3253_v15 = vpop.eup %3252  ;;  %3278 = vpow2.f32 %v2910_v8 }
 0x663   :  { %v1724_v19 = vsel %vm1714_vm7, %v1723_v35, %v1719_v16  ;;  %v3255_v16 = vpop.eup %3254  ;;  %3280 = vpow2.f32 %v2911_v0  ;;  %v2914_v1 = vmul.f32 -1.442695, %v1481_v11  ;;  %v1593_v33 = vadd.f32 1.0, %v3253_v15 }
 0x664   :  { %v4111_v39 = vsel %vm665_vm3, %v1724_v19, %v1715_v17  ;;  %v3257_v56 = vpop.eup %3256  ;;  %v1591_v17 = vadd.f32 1.0, %v3251_v14  ;;  %3282 = vpow2.f32 %v2912_v13  ;;  %v1595_v18 = vadd.f32 1.0, %v3255_v16 }
 0x665   :  { %v3259_v35 = vpop.eup %3258  ;;  %3284 = vpow2.f32 %v2902_v2  ;;  %v1522_v55 = vadd.f32 1.0, %v3257_v56 }
 0x666   :  { %v3261_v19 = vpop.eup %3260  ;;  %3286 = vpow2.f32 %v2913_v50  ;;  %v1523_v42 = vadd.f32 1.0, %v3259_v35 }
 0x667   :  { %v3263_v9 = vpop.eup %3262  ;;  %3288 = vpow2.f32 %v2914_v1  ;;  %v1590_v58 = vadd.f32 1.0, %v3261_v19 }
 0x668   :  { %3290 = vrcp.f32 %v1591_v17  ;;  %v1592_v24 = vadd.f32 1.0, %v3263_v9 }
 0x669   :  { %3292 = vrcp.f32 %v1593_v33 }
 0x66a   :  { %3294 = vrcp.f32 %v1595_v18 }
 0x66f   :  { %1908 = vperm.xlu0 %3083, %v148_v51   ;;  %v3265_v51 = vpop.eup %3264  ;;  %3296 = vrcp.f32 %v1522_v55 }
 0x670   :  { %v3267_v21 = vpop.eup %3266  ;;  %v1594_v26 = vadd.f32 1.0, %v3265_v51  ;;  %3298 = vrcp.f32 %v1523_v42 }
 0x671   :  { %v3269_v23 = vpop.eup %3268  ;;  %v1524_v62 = vadd.f32 1.0, %v3267_v21  ;;  %3300 = vrcp.f32 %v1590_v58 }
 0x672   :  { %v3271_v25 = vpop.eup %3270  ;;  %v1525_v31 = vadd.f32 1.0, %v3269_v23  ;;  %3302 = vrcp.f32 %v1592_v24 }
 0x673   :  { %v3273_v28 = vpop.eup %3272  ;;  %v1526_v48 = vadd.f32 1.0, %v3271_v25  ;;  %3304 = vrcp.f32 %v1594_v26 }
 0x674   :  { %v3275_v30 = vpop.eup %3274  ;;  %v1527_v4 = vadd.f32 1.0, %v3273_v28  ;;  %3306 = vrcp.f32 %v1524_v62 }
 0x675   :  { %v3277_v12 = vpop.eup %3276  ;;  %v1528_v29 = vadd.f32 1.0, %v3275_v30  ;;  %3308 = vrcp.f32 %v1525_v31 }
 0x676   :  { %v3279_v47 = vpop.eup %3278  ;;  %v1596_v57 = vadd.f32 1.0, %v3277_v12  ;;  %3310 = vrcp.f32 %v1526_v48 }
 0x677   :  { %v3281_v40 = vpop.eup %3280  ;;  %v1597_v27 = vadd.f32 1.0, %v3279_v47  ;;  %3312 = vrcp.f32 %v1527_v4 }
 0x678   :  { %v3283_v32 = vpop.eup %3282  ;;  %v1598_v52 = vadd.f32 1.0, %v3281_v40  ;;  %3314 = vrcp.f32 %v1528_v29 }
 0x679   :  { %v3285_v43 = vpop.eup %3284  ;;  %v1599_v60 = vadd.f32 1.0, %v3283_v32  ;;  %3316 = vrcp.f32 %v1596_v57 }
 0x67a   :  { %v3287_v46 = vpop.eup %3286  ;;  %v1529_v5 = vadd.f32 1.0, %v3285_v43  ;;  %3318 = vrcp.f32 %v1597_v27 }
 0x67b   :  { %v3289_v36 = vpop.eup %3288  ;;  %v1600_v59 = vadd.f32 1.0, %v3287_v46  ;;  %3320 = vrcp.f32 %v1598_v52 }
 0x67c   :  { %v3291_v61 = vpop.eup %3290  ;;  %v1601_v7 = vadd.f32 1.0, %v3289_v36  ;;  %3322 = vrcp.f32 %v1599_v60 }
 0x67d   :  { %v3293_v6 = vpop.eup %3292  ;;  %3324 = vrcp.f32 %v1529_v5  ;;  %v1800_v56 = vrot.slane %v3291_v61, %v4102_v54 }
 0x67e   :  { %v3295_v49 = vpop.eup %3294  ;;  %3326 = vrcp.f32 %v1600_v59  ;;  %v1809_v17 = vrot.slane %v3293_v6, %v4102_v54 }
 0x67f   :  { %v3297_v10 = vpop.eup %3296  ;;  %3328 = vrcp.f32 %v1601_v7  ;;  %v1818_v21 = vrot.slane %v3295_v49, %v4102_v54 }
 0x680   :  { %v3299_v8 = vpop.eup %3298  ;;  %v1728_v55 = vrot.slane %v3297_v10, %v3849_v37 }
 0x681   :  { %v3301_v11 = vpop.eup %3300  ;;  %v1732_v51 = vrot.slane %v3299_v8, %v4102_v54 }
 0x682   :  { %v3303_v0 = vpop.eup %3302  ;;  %v1796_v35 = vrot.slane %v3301_v11, %v3849_v37 }
 0x683   :  { %v3305_v13 = vpop.eup %3304  ;;  %v1805_v33 = vrot.slane %v3303_v0, %v3849_v37  ;;  %v1733_v40 = vsel %vm1714_vm7, %v1732_v51, %v1728_v55 }
 0x684   :  { %v3307_v14 = vpop.eup %3306  ;;  %v1801_v58 = vsel %vm1714_vm7, %v1800_v56, %v1796_v35  ;;  %v1814_v24 = vrot.slane %v3305_v13, %v3849_v37  ;;  %v1762_v6 = vsel %vm667_vm4, %v1733_v40, %v4111_v39 }
 0x685   :  { %v3309_v2 = vpop.eup %3308  ;;  %v1810_v23 = vsel %vm1714_vm7, %v1809_v17, %v1805_v33  ;;  %v1737_v26 = vrot.slane %v3307_v14, %v3849_v37 }
 0x686   :  { %v3311_v15 = vpop.eup %3310  ;;  %v1741_v28 = vrot.slane %v3309_v2, %v4102_v54  ;;  %v1819_v32 = vsel %vm1714_vm7, %v1818_v21, %v1814_v24  ;;  %v1847_v57 = vsel %vm665_vm3, %v1810_v23, %v1801_v58 }
 0x687   :  { %v3313_v50 = vpop.eup %3312  ;;  %v1746_v62 = vrot.slane %v3311_v15, %v3849_v37  ;;  %v1848_v49 = vsel %vm667_vm4, %v1819_v32, %v1847_v57 }
 0x688   :  { %v3315_v16 = vpop.eup %3314  ;;  %v1750_v30 = vrot.slane %v3313_v50, %v4102_v54  ;;  %v1742_v46 = vsel %vm1714_vm7, %v1741_v28, %v1737_v26 }
 0x689   :  { %v3317_v1 = vpop.eup %3316  ;;  %v1755_v43 = vrot.slane %v3315_v16, %v3849_v37 }
 0x68a   :  { %v3319_v19 = vpop.eup %3318  ;;  %v1823_v12 = vrot.slane %v3317_v1, %v3849_v37  ;;  %v1751_v52 = vsel %vm1714_vm7, %v1750_v30, %v1746_v62 }
 0x68b   :  { %v3321_v18 = vpop.eup %3320  ;;  %v1827_v48 = vrot.slane %v3319_v19, %v4102_v54  ;;  %v1763_v10 = vsel %vm665_vm3, %v1751_v52, %v1742_v46 }
 0x68c   :  { %v3323_v9 = vpop.eup %3322  ;;  %v1832_v47 = vrot.slane %v3321_v18, %v3849_v37 }
 0x68d   :  { %v3325_v42 = vpop.eup %3324  ;;  %v1836_v4 = vrot.slane %v3323_v9, %v4102_v54  ;;  %v1828_v61 = vsel %vm1714_vm7, %v1827_v48, %v1823_v12 }
 0x68e   :  { %v3327_v25 = vpop.eup %3326  ;;  %v1759_v27 = vrot.slane %v3325_v42, %v4102_v54 }
 0x68f   :  { %v3329_v31 = vpop.eup %3328  ;;  %v1841_v36 = vrot.slane %v3327_v25, %v3849_v37  ;;  %v1837_v5 = vsel %vm1714_vm7, %v1836_v4, %v1832_v47 }
 0x690   :  { %v1845_v60 = vrot.slane %v3329_v31, %v4102_v54  ;;  %v1760_v7 = vsel %vm1714_vm7, %v1759_v27, %v1755_v43  ;;  %v1849_v14 = vsel %vm665_vm3, %v1837_v5, %v1828_v61  ;;  %v3362_v27 = vld [vmem:[#allocation8] sm:$0xff]   ;;  %v3363_v5 = vld [vmem:[#allocation8 + $0x8] sm:$0xff]  }
 0x691   :  { %v1764_v15 = vsel %vm667_vm4, %v1760_v7, %v1763_v10  ;;  %v4217_v46 = vunpack.c.l.bf16 %v3362_v27  ;;  %v4219_v52 = vunpack.c.h.bf16 %v3362_v27 }
 0x692   :  { %v1846_v13 = vsel %vm1714_vm7, %v1845_v60, %v1841_v36 }
 0x693   :  { %v1850_v39 = vsel %vm667_vm4, %v1846_v13, %v1849_v14 }
 0x6a9   :  { %v1686_v29 = vpop.permute.xlu1 %1685 }
 0x6aa   :  { %v1767_v11 = vmul.f32 %v1762_v6, %v1686_v29  ;;  %v4223_v6 = vunpack.c.l.bf16 %v3363_v5 }
 0x6ad   :  { %v1774_v59 = vpop.permute.xlu1 %1773  ;;  %v1691_v8 = vpop.permute.xlu0 %1690 }
 0x6ae   :  { %v1853_v0 = vmul.f32 %v1848_v49, %v1774_v59  ;;  %v1768_v16 = vmul.f32 %v1764_v15, %v1691_v8  ;;  %v4225_v59 = vunpack.c.h.bf16 %v3363_v5 }
 0x6b0   :  { %v4177_v2 = vadd.f32 %v1853_v0, %v1767_v11 }
 0x6b1   :  { %v1779_v50 = vpop.permute.xlu0 %1778 }
 0x6b2   :  { %v1854_v1 = vmul.f32 %v1850_v39, %v1779_v50  ;;  %v1937_v56 = vrot.slane %v4177_v2, %v3787_v41  ;;  %v2234_v57 = vrot.slane %v4177_v2, %v3795_v45 }
 0x6b4   :  { %v4183_v17 = vadd.f32 %v1854_v1, %v1768_v16  ;;  %1939 = vbcast.lane.b32.xlu1 %v1937_v56, 256 }
 0x6b6   :  { %v1948_v35 = vrot.slane %v4183_v17, %v3787_v41 }
 0x6b8   :  { %1943 = vbcast.lane.b32.xlu1 %v1937_v56, 264  ;;  %1950 = vbcast.lane.b32.xlu0 %v1948_v35, 256 }
 0x6bc   :  { %1954 = vbcast.lane.b32.xlu1 %v1948_v35, 264 }
 0x6de   :  { %v1901_v33 = vpop.xlane.xlu0 %1900 }
 0x6df   :  { %v1899_v55 = vpop.xlane.xlu1 %1898 }
 0x6e2   :  { %v1903_v19 = vpop.xlane.xlu0 %1902 }
 0x6e3   :  { %v1905_v58 = vpop.xlane.xlu1 %1904 }
 0x6ea   :  { %v1909_v18 = vpop.permute.xlu0 %1908 }
 0x6eb   :  { %v4188_v9 = vrot.slane %v1909_v18, %v3787_v41  ;;  %v4201_v23 = vrot.slane %v1909_v18, %v3795_v45 }
 0x6ed   :  { %vm1920_vm8 = vcmp.gt.f32.partialorder %v1899_v55, %v4188_v9  ;;  %vm1921_vm9 = vcmp.gt.f32.partialorder %v1901_v33, %v4188_v9  ;;  %vm1922_vm10 = vcmp.gt.f32.partialorder %v1903_v19, %v4201_v23  ;;  %vm1923_vm11 = vcmp.gt.f32.partialorder %v1905_v58, %v4201_v23 }
 0x6ee   :  { %v4193_v51 = vsel %vm1920_vm8, 1.0, %v3567_v3  ;;  %v4196_v42 = vsel %vm1921_vm9, 1.0, %v3567_v3  ;;  %v4206_v12 = vsel %vm1922_vm10, 1.0, %v3567_v3  ;;  %v4212_v29 = vsel %vm1923_vm11, 1.0, %v3567_v3 }
 0x6ef   :  { %v3085_v21 = vpack.i.bf16 %v4196_v42, %v4193_v51  ;;  %vm297_vm8 = vcmask 9216  }
 0x726   :  { %v1940_v24 = vpop.permute.xlu1 %1939 }
 0x727   :  { %v1960_v25 = vmul.f32 %v1940_v24, %v1899_v55 }
 0x729   :  { %v1964_v26 = vmul.f32 %v4193_v51, %v1960_v25 }
 0x72a   :  { %v1944_v28 = vpop.permute.xlu1 %1943  ;;  %v1951_v62 = vpop.permute.xlu0 %1950 }
 0x72b   :  { %v1961_v30 = vmul.f32 %v1944_v28, %v1901_v33  ;;  %v1962_v31 = vmul.f32 %v1951_v62, %v1903_v19  ;;  %2012 = vperm.xlu0 %3083, %v1964_v26  }
 0x72d   :  { %v1965_v48 = vmul.f32 %v4196_v42, %v1961_v30  ;;  %v1966_v47 = vmul.f32 %v4206_v12, %v1962_v31 }
 0x72e   :  { %v1955_v4 = vpop.permute.xlu1 %1954 }
 0x72f   :  { %v1963_v40 = vmul.f32 %v1955_v4, %v1905_v58  ;;  %2017 = vperm.xlu1 %3084, %v1965_v48   ;;  %2022 = vperm.xlu0 %3083, %v1966_v47  }
 0x731   :  { %v1967_v32 = vmul.f32 %v4212_v29, %v1963_v40 }
 0x733   :  { %2027 = vperm.xlu1 %3084, %v1967_v32  }
 0x737   :  { %2240 = vbcast.lane.b32.xlu1 %v2234_v57, 264 }
 0x7a6   :  { %v2013_v43 = vpop.permute.xlu0 %2012 }
 0x7a7   :  { %v2030_v60 = vmul.f32 %v2013_v43, %v4217_v46 }
 0x7aa   :  { %v2018_v36 = vpop.permute.xlu1 %2017  ;;  %v2023_v49 = vpop.permute.xlu0 %2022 }
 0x7ab   :  { %v2031_v61 = vmul.f32 %v2018_v36, %v4219_v52  ;;  %v2032_v11 = vmul.f32 %v2023_v49, %v4223_v6 }
 0x7ad   :  { %v2034_v7 = vadd.f32 %v2031_v61, %v2030_v60 }
 0x7ae   :  { %v2028_v10 = vpop.permute.xlu1 %2027 }
 0x7af   :  { %v2035_v8 = vrot.slane %v2034_v7, 4  ;;  %v2033_v0 = vmul.f32 %v2028_v10, %v4225_v59 }
 0x7b1   :  { %v2036_v13 = vadd.f32 %v2035_v8, %v2034_v7  ;;  %v2041_v14 = vadd.f32 %v2033_v0, %v2032_v11  ;;  %v2245_v0 = vrot.slane %v4183_v17, %v3795_v45 }
 0x7b3   :  { %v2037_v15 = vrot.slane %v2036_v13, 2  ;;  %v2042_v39 = vrot.slane %v2041_v14, 4 }
 0x7b5   :  { %v2038_v50 = vadd.f32 %v2037_v15, %v2036_v13  ;;  %v2043_v16 = vadd.f32 %v2042_v39, %v2041_v14  ;;  %v2241_v13 = vpop.permute.xlu1 %2240 }
 0x7b7   :  { %v2039_v1 = vrot.slane %v2038_v50, 1  ;;  %v2044_v56 = vrot.slane %v2043_v16, 2 }
 0x7b9   :  { %v2045_v35 = vadd.f32 %v2044_v56, %v2043_v16  ;;  %v2040_v19 = vadd.f32 %v2039_v1, %v2038_v50 }
 0x7bb   :  { %v2046_v33 = vrot.slane %v2045_v35, 1  ;;  %v2092_v55 = vand.u32 2147483647, %v2040_v19 }
 0x7bd   :  { %v2047_v18 = vadd.f32 %v2046_v33, %v2045_v35 }
 0x7bf   :  { %v2093_v58 = vand.u32 2147483647, %v2047_v18 }
 0x7c1   :  { %v2096_v24 = vsel %vm665_vm3, %v2093_v58, %v2092_v55 }
 0x7c2   :  { %v2099_v25 = vsel %vm2098_vm12, %v2096_v24, 0.0 }
 0x7c3   :  { %2100 = vadd.xlane.f32.xlu0 %v2099_v25 }
 0x7d9   :  { %2236 = vbcast.lane.b32.xlu0 %v2234_v57, 256 }
 0x84c   :  { %v2101_v26 = vpop.xlane.xlu0 %2100 }
 0x84d   :  { %v2102_v28 = vmax.f32 %v2101_v26, 1e-12 }
 0x84f   :  { %v2104_v62 = vrot.slane %v2102_v28, 1  ;;  %3330 = vrcp.f32 %v2102_v28 }
 0x850   :  { %v2237_v14 = vpop.permute.xlu0 %2236 }
 0x851   :  { %3332 = vrcp.f32 %v2104_v62 }
 0x85c   :  { %v3331_v30 = vpop.eup %3330 }
 0x85d   :  { %v2108_v31 = vmul.f32 %v3331_v30, %v2040_v19 }
 0x85e   :  { %v3333_v48 = vpop.eup %3332 }
 0x85f   :  { %v2202_v47 = vrot.slane %v2108_v31, %v3787_v41  ;;  %v2110_v4 = vmul.f32 %v3333_v48, %v2047_v18  ;;  %v2137_v36 = vrot.slane %v2108_v31, %v3831_v22 }
 0x861   :  { %v2208_v40 = vmul.f32 %v4084_v20, %v2202_v47  ;;  %v2207_v32 = vmul.f32 %v4087_v53, %v2202_v47  ;;  %v2206_v43 = vrot.slane %v2110_v4, %v3787_v41  ;;  %v2144_v27 = vrot.slane %v2110_v4, %v3831_v22 }
 0x862   :  { %v2189_v57 = vrot.slane %v2110_v4, 7  ;;  %v275_v47 = vsel %vm274_vm5, %v3792_v44, -inf }
 0x863   :  { %2213 = vadd.xlane.f32.xlu0 %v2208_v40  ;;  %2211 = vadd.xlane.f32.xlu1 %v2207_v32  ;;  %v2149_v60 = vrot.slane %v2144_v27, 7  ;;  %v2210_v5 = vmul.f32 %v4094_v38, %v2206_v43  ;;  %v2209_v49 = vmul.f32 %v4090_v34, %v2206_v43 }
 0x864   :  { %v4238_v61 = vsel %vm665_vm3, %v2189_v57, %v2108_v31 }
 0x865   :  { %v2150_v7 = vsel %vm665_vm3, %v2149_v60, %v2137_v36 }
 0x866   :  { %v2152_v10 = vsel %vm2151_vm13, %v2149_v60, %v2150_v7 }
 0x867   :  { %2217 = vadd.xlane.f32.xlu1 %v2210_v5  ;;  %2215 = vadd.xlane.f32.xlu0 %v2209_v49  ;;  %v2154_v8 = vsel %vm2153_vm14, %v2149_v60, %v2152_v10 }
 0x868   :  { %v2156_v11 = vsel %vm2155_vm15, %v2149_v60, %v2154_v8 }
 0x869   :  { %2158 = vst [vmem:[#allocation17] sm:$0x3] %v2156_v11 }
 0x878   :  { %2247 = vbcast.lane.b32.xlu1 %v2245_v0, 256 }
 0x87d   :  { %2251 = vbcast.lane.b32.xlu0 %v2245_v0, 264 }
 0x8ec   :  { %v2212_v15 = vpop.xlane.xlu1 %2211  ;;  %v2214_v39 = vpop.xlane.xlu0 %2213 }
 0x8ed   :  { %vm2219_vm0 = vcmp.gt.f32.partialorder %v2212_v15, %v4188_v9  ;;  %v2257_v50 = vmul.f32 %v2237_v14, %v2212_v15  ;;  %vm2220_vm1 = vcmp.gt.f32.partialorder %v2214_v39, %v4188_v9  ;;  %v2258_v16 = vmul.f32 %v2241_v13, %v2214_v39 }
 0x8ee   :  { %v4251_v1 = vsel %vm2219_vm0, 1.0, %v3567_v3  ;;  %v4254_v56 = vsel %vm2220_vm1, 1.0, %v3567_v3 }
 0x8ef   :  { %v2261_v35 = vmul.f32 %v4251_v1, %v2257_v50  ;;  %v3095_v33 = vpack.i.bf16 %v4254_v56, %v4251_v1  ;;  %v2262_v19 = vmul.f32 %v4254_v56, %v2258_v16 }
 0x8f0   :  { %v2218_v18 = vpop.xlane.xlu1 %2217  ;;  %v2216_v55 = vpop.xlane.xlu0 %2215 }
 0x8f1   :  { %vm2222_vm2 = vcmp.gt.f32.partialorder %v2218_v18, %v4201_v23  ;;  %vm2221_vm4 = vcmp.gt.f32.partialorder %v2216_v55, %v4201_v23  ;;  %2305 = vperm.xlu1 %3084, %v2261_v35   ;;  %2310 = vperm.xlu0 %3083, %v2262_v19  }
 0x8f2   :  { %v4263_v58 = vsel %vm2222_vm2, 1.0, %v3567_v3  ;;  %v4266_v24 = vsel %vm2221_vm4, 1.0, %v3567_v3 }
 0x8f3   :  { %v3100_v25 = vpack.i.bf16 %v4263_v58, %v4266_v24 }
 0x8f4   :  { %v2248_v26 = vpop.permute.xlu1 %2247  ;;  %v2252_v28 = vpop.permute.xlu0 %2251 }
 0x8f5   :  { %v2259_v62 = vmul.f32 %v2248_v26, %v2216_v55  ;;  %v2260_v30 = vmul.f32 %v2252_v28, %v2218_v18  ;;  %v287_v28 = vsel %vm286_vm6, %v3792_v44, -inf }
 0x8f7   :  { %v2263_v31 = vmul.f32 %v4266_v24, %v2259_v62  ;;  %v2264_v48 = vmul.f32 %v4263_v58, %v2260_v30 }
 0x8f9   :  { %2315 = vperm.xlu1 %3084, %v2263_v31   ;;  %2320 = vperm.xlu0 %3083, %v2264_v48  }
 0x918   :  { %276 = vmax.xlane.f32.xlu0 %v275_v47 }
 0x96c   :  { %v2306_v4 = vpop.permute.xlu1 %2305  ;;  %v2311_v40 = vpop.permute.xlu0 %2310 }
 0x96d   :  { %v2323_v32 = vmul.f32 %v2306_v4, %v4217_v46  ;;  %v2324_v43 = vmul.f32 %v2311_v40, %v4219_v52 }
 0x96f   :  { %v2327_v27 = vadd.f32 %v2324_v43, %v2323_v32 }
 0x971   :  { %v2328_v57 = vrot.slane %v2327_v27, 4 }
 0x973   :  { %v2329_v36 = vadd.f32 %v2328_v57, %v2327_v27 }
 0x974   :  { %v2316_v60 = vpop.permute.xlu1 %2315  ;;  %v2321_v5 = vpop.permute.xlu0 %2320 }
 0x975   :  { %v2330_v49 = vrot.slane %v2329_v36, 2  ;;  %v2325_v7 = vmul.f32 %v2316_v60, %v4223_v6  ;;  %v2326_v10 = vmul.f32 %v2321_v5, %v4225_v59 }
 0x977   :  { %v2334_v8 = vadd.f32 %v2326_v10, %v2325_v7  ;;  %v2331_v11 = vadd.f32 %v2330_v49, %v2329_v36 }
 0x979   :  { %v2335_v0 = vrot.slane %v2334_v8, 4  ;;  %v2332_v14 = vrot.slane %v2331_v11, 1 }
 0x97b   :  { %v2336_v13 = vadd.f32 %v2335_v0, %v2334_v8  ;;  %v2333_v16 = vadd.f32 %v2332_v14, %v2331_v11 }
 0x97d   :  { %v2337_v15 = vrot.slane %v2336_v13, 2  ;;  %v2381_v19 = vand.u32 2147483647, %v2333_v16 }
 0x97f   :  { %v2338_v39 = vadd.f32 %v2337_v15, %v2336_v13 }
 0x981   :  { %v2339_v50 = vrot.slane %v2338_v39, 1 }
 0x983   :  { %v2340_v35 = vadd.f32 %v2339_v50, %v2338_v39 }
 0x985   :  { %v2382_v18 = vand.u32 2147483647, %v2340_v35 }
 0x987   :  { %v2385_v55 = vsel %vm665_vm3, %v2382_v18, %v2381_v19 }
 0x988   :  { %v2387_v26 = vsel %vm2098_vm12, %v2385_v55, 0.0 }
 0x989   :  { %2388 = vadd.xlane.f32.xlu1 %v2387_v26 }
 0x98d   :  { %288 = vmax.xlane.f32.xlu1 %v287_v28 }
 0x9a1   :  { %v277_v62 = vpop.xlane.xlu0 %276 }
 0x9a2   :  { %v278_v30 = vsub.f32 %v3792_v44, %v277_v62 }
 0x9a4   :  { %v279_v31 = vmul.f32 1.442695, %v278_v30 }
 0x9a6   :  { %3334 = vpow2.f32 %v279_v31 }
 0x9b3   :  { %v4282_v48 = vpop.eup %3334 }
 0x9b4   :  { %v281_v47 = vsel %vm274_vm5, %v4282_v48, 0.0 }
 0x9b5   :  { %282 = vadd.xlane.f32.xlu0 %v281_v47 }
 0xa12   :  { %v2389_v4 = vpop.xlane.xlu1 %2388 }
 0xa13   :  { %v2390_v40 = vmax.f32 %v2389_v4, 1e-12 }
 0xa15   :  { %v2392_v32 = vrot.slane %v2390_v40, 1  ;;  %3336 = vrcp.f32 %v2390_v40 }
 0xa16   :  { %v289_v43 = vpop.xlane.xlu1 %288 }
 0xa17   :  { %3338 = vrcp.f32 %v2392_v32  ;;  %v290_v27 = vsub.f32 %v3792_v44, %v289_v43 }
 0xa19   :  { %v291_v57 = vmul.f32 1.442695, %v290_v27 }
 0xa1b   :  { %3340 = vpow2.f32 %v291_v57 }
 0xa22   :  { %v3337_v36 = vpop.eup %3336 }
 0xa23   :  { %v2396_v60 = vmul.f32 %v3337_v36, %v2333_v16 }
 0xa24   :  { %v3339_v5 = vpop.eup %3338 }
 0xa25   :  { %v2484_v49 = vrot.slane %v2396_v60, %v3787_v41  ;;  %v2398_v7 = vmul.f32 %v3339_v5, %v2340_v35  ;;  %v2425_v13 = vrot.slane %v2396_v60, %v3831_v22 }
 0xa27   :  { %v2489_v10 = vmul.f32 %v4087_v53, %v2484_v49  ;;  %v2432_v8 = vrot.slane %v2398_v7, %v3831_v22  ;;  %v2471_v0 = vrot.slane %v2398_v7, 7  ;;  %v2490_v15 = vmul.f32 %v4084_v20, %v2484_v49 }
 0xa28   :  { %v4290_v11 = vpop.eup %3340  ;;  %v2488_v39 = vrot.slane %v2398_v7, %v3787_v41  ;;  %v2516_v7 = vrot.slane %v4177_v2, %v3810_v63 }
 0xa29   :  { %2493 = vadd.xlane.f32.xlu1 %v2489_v10  ;;  %294 = vrot.lane.b32.xlu0 %v4290_v11, %s3573_s23  ;;  %v2435_v44 = vrot.slane %v2432_v8, 7  ;;  %v4295_v14 = vsel %vm665_vm3, %v2471_v0, %v2396_v60  ;;  %v3364_v10 = vld [vmem:[#allocation10] sm:$0xff]  }
 0xa2a   :  { %v2491_v19 = vmul.f32 %v4090_v34, %v2488_v39  ;;  %v2492_v20 = vmul.f32 %v4094_v38, %v2488_v39  ;;  %v3090_v34 = vpack.i.bf16 %v4212_v29, %v4206_v12  ;;  %v4366_v8 = vunpack.c.h.bf16 %v3364_v10 }
 0xa2b   :  { %v2436_v53 = vsel %vm665_vm3, %v2435_v44, %v2425_v13  ;;  %v4368_v13 = vunpack.c.l.bf16 %v3364_v10 }
 0xa2c   :  { %v2437_v50 = vsel %vm2151_vm13, %v2435_v44, %v2436_v53 }
 0xa2d   :  { %2495 = vadd.xlane.f32.xlu1 %v2490_v15  ;;  %3086 = vperm.xlu0 %3083, %v3085_v21   ;;  %v2438_v16 = vsel %vm2153_vm14, %v2435_v44, %v2437_v50  ;;  %v3365_v50 = vld [vmem:[#allocation10 + $0x8] sm:$0xff]  }
 0xa2e   :  { %v2439_v35 = vsel %vm2155_vm15, %v2435_v44, %v2438_v16  ;;  %v4372_v16 = vunpack.c.l.bf16 %v3365_v50 }
 0xa2f   :  { %2441 = vst [vmem:[#allocation17 + $0x2] sm:$0x3] %v2439_v35  ;;  %v4374_v35 = vunpack.c.h.bf16 %v3365_v50 }
 0xa31   :  { %2497 = vadd.xlane.f32.xlu1 %v2491_v19 }
 0xa35   :  { %2499 = vadd.xlane.f32.xlu1 %v2492_v20 }
 0xa3e   :  { %v4308_v18 = vpop.xlane.xlu0 %282 }
 0xa3f   :  { %3342 = vrcp.f32 %v4308_v18 }
 0xa9b   :  { %v295_v55 = vpop.permute.xlu0 %294 }
 0xa9c   :  { %v298_v26 = vsel %vm297_vm8, %v295_v55, 0.0 }
 0xa9d   :  { %299 = vadd.xlane.f32.xlu1 %v298_v26 }
 0xaa8   :  { %v3087_v28 = vpop.permute.xlu0 %3086 }
 0xaa9   :  { %v3089_v51 = vunpack.i.h.bf16 %v3087_v28  ;;  %v3088_v42 = vunpack.i.l.bf16 %v3087_v28 }
 0xaab   :  { %v1991_v21 = vrot.slane %v3089_v51, %v4102_v54  ;;  %v1987_v62 = vrot.slane %v3088_v42, %v3849_v37 }
 0xaad   :  { %v1992_v30 = vsel %vm1714_vm7, %v1991_v21, %v1987_v62 }
 0xaae   :  { %3091 = vperm.xlu1 %3084, %v3090_v34   ;;  %v2004_v38 = vmul.f32 %v1992_v30, %v4177_v2 }
 0xab0   :  { %v2051_v31 = vrot.slane %v2004_v38, %v3787_v41 }
 0xab2   :  { %2053 = vbcast.lane.b32.xlu0 %v2051_v31, 256  ;;  %v4317_v47 = vpop.xlane.xlu1 %2493 }
 0xab3   :  { %vm2501_vm10 = vcmp.gt.f32.partialorder %v4317_v47, %v4188_v9 }
 0xab4   :  { %v4352_v56 = vsel %vm2501_vm10, 1.0, %v3567_v3 }
 0xab6   :  { %2057 = vbcast.lane.b32.xlu0 %v2051_v31, 264  ;;  %v4319_v4 = vpop.xlane.xlu1 %2495 }
 0xab7   :  { %vm2502_vm9 = vcmp.gt.f32.partialorder %v4319_v4, %v4188_v9 }
 0xab8   :  { %v4347_v1 = vsel %vm2502_vm9, 1.0, %v3567_v3 }
 0xaba   :  { %v4321_v40 = vpop.xlane.xlu1 %2497 }
 0xabb   :  { %vm2503_vm0 = vcmp.gt.f32.partialorder %v4321_v40, %v4201_v23 }
 0xabc   :  { %v4362_v58 = vsel %vm2503_vm0, 1.0, %v3567_v3 }
 0xabe   :  { %v4323_v32 = vpop.xlane.xlu1 %2499 }
 0xabf   :  { %vm2504_vm11 = vcmp.gt.f32.partialorder %v4323_v32, %v4201_v23 }
 0xac0   :  { %v4359_v9 = vsel %vm2504_vm11, 1.0, %v3567_v3 }
 0xac1   :  { %v3110_v24 = vpack.i.bf16 %v4359_v9, %v4362_v58 }
 0xb26   :  { %v4325_v43 = vpop.xlane.xlu1 %299 }
 0xb2a   :  { %v3092_v12 = vpop.permute.xlu1 %3091 }
 0xb2b   :  { %v3094_v29 = vunpack.i.h.bf16 %v3092_v12  ;;  %v3093_v27 = vunpack.i.l.bf16 %v3092_v12 }
 0xb2d   :  { %v2000_v57 = vrot.slane %v3094_v29, %v4102_v54  ;;  %v1996_v36 = vrot.slane %v3093_v27, %v3849_v37 }
 0xb2f   :  { %v2001_v60 = vsel %vm1714_vm7, %v2000_v57, %v1996_v36 }
 0xb30   :  { %v2005_v5 = vmul.f32 %v2001_v60, %v4183_v17 }
 0xb32   :  { %v2062_v49 = vrot.slane %v2005_v5, %v3787_v41  ;;  %v2527_v41 = vrot.slane %v4183_v17, %v3810_v63 }
 0xb34   :  { %2064 = vbcast.lane.b32.xlu0 %v2062_v49, 256 }
 0xb38   :  { %2068 = vbcast.lane.b32.xlu0 %v2062_v49, 264 }
 0xb3c   :  { %3096 = vperm.xlu0 %3083, %v3095_v33   ;;  %v3105_v33 = vpack.i.bf16 %v4347_v1, %v4352_v56 }
 0xb40   :  { %3101 = vperm.xlu0 %3083, %v3100_v25   ;;  %v2054_v25 = vpop.permute.xlu0 %2053 }
 0xb41   :  { %v2074_v44 = vmul.f32 %v4368_v13, %v2054_v25 }
 0xb44   :  { %2518 = vbcast.lane.b32.xlu0 %v2516_v7, 256  ;;  %v2058_v0 = vpop.permute.xlu0 %2057 }
 0xb45   :  { %v2075_v23 = vmul.f32 %v4366_v8, %v2058_v0 }
 0xb47   :  { %v2078_v15 = vadd.f32 %v2075_v23, %v2074_v44 }
 0xb48   :  { %2522 = vbcast.lane.b32.xlu0 %v2516_v7, 264 }
 0xb49   :  { %v2079_v39 = vrot.slane %v2078_v15, 4 }
 0xb4b   :  { %v2080_v53 = vadd.f32 %v2079_v39, %v2078_v15 }
 0xb4c   :  { %2529 = vbcast.lane.b32.xlu0 %v2527_v41, 256 }
 0xb4d   :  { %v2081_v20 = vrot.slane %v2080_v53, 2 }
 0xb4f   :  { %v2082_v51 = vadd.f32 %v2081_v20, %v2080_v53 }
 0xb50   :  { %3106 = vperm.xlu0 %3083, %v3105_v33  }
 0xb51   :  { %v2083_v62 = vrot.slane %v2082_v51, 1 }
 0xb53   :  { %v4378_v38 = vadd.f32 %v2083_v62, %v2082_v51 }
 0xb54   :  { %3111 = vperm.xlu0 %3083, %v3110_v24  }
 0xb55   :  { %v2111_v49 = vand.u32 2147483647, %v4378_v38 }
 0xb58   :  { %2533 = vbcast.lane.b32.xlu0 %v2527_v41, 264 }
 0xba6   :  { %v2065_v3 = vpop.permute.xlu0 %2064 }
 0xba7   :  { %v2076_v55 = vmul.f32 %v4372_v16, %v2065_v3 }
 0xbaa   :  { %v2069_v19 = vpop.permute.xlu0 %2068 }
 0xbab   :  { %v2077_v26 = vmul.f32 %v4374_v35, %v2069_v19 }
 0xbad   :  { %v2085_v28 = vadd.f32 %v2077_v26, %v2076_v55 }
 0xbaf   :  { %v2086_v42 = vrot.slane %v2085_v28, 4 }
 0xbb1   :  { %v2087_v21 = vadd.f32 %v2086_v42, %v2085_v28 }
 0xbb3   :  { %v2088_v34 = vrot.slane %v2087_v21, 2 }
 0xbb5   :  { %v2089_v30 = vadd.f32 %v2088_v34, %v2087_v21 }
 0xbb7   :  { %v2090_v31 = vrot.slane %v2089_v30, 1  ;;  %v3097_v12 = vpop.permute.xlu0 %3096 }
 0xbb8   :  { %v3099_v29 = vunpack.i.h.bf16 %v3097_v12  ;;  %v3098_v27 = vunpack.i.l.bf16 %v3097_v12 }
 0xbb9   :  { %v4380_v57 = vadd.f32 %v2090_v31, %v2089_v30 }
 0xbba   :  { %v2288_v36 = vrot.slane %v3099_v29, %v4102_v54  ;;  %v2284_v60 = vrot.slane %v3098_v27, %v3849_v37 }
 0xbbb   :  { %v3102_v5 = vpop.permute.xlu0 %3101  ;;  %v2112_v7 = vand.u32 2147483647, %v4380_v57 }
 0xbbc   :  { %v3104_v41 = vunpack.i.h.bf16 %v3102_v5  ;;  %v3103_v33 = vunpack.i.l.bf16 %v3102_v5  ;;  %v2289_v24 = vsel %vm1714_vm7, %v2288_v36, %v2284_v60 }
 0xbbd   :  { %v2115_v25 = vsel %vm665_vm3, %v2112_v7, %v2111_v49  ;;  %v2301_v10 = vmul.f32 %v2289_v24, %v4177_v2 }
 0xbbe   :  { %v2297_v0 = vrot.slane %v3104_v41, %v4102_v54  ;;  %v2293_v23 = vrot.slane %v3103_v33, %v3849_v37  ;;  %v2117_v44 = vsel %vm2098_vm12, %v2115_v25, 0.0 }
 0xbbf   :  { %2118 = vadd.xlane.f32.xlu1 %v2117_v44  ;;  %v2519_v15 = vpop.permute.xlu0 %2518  ;;  %v2344_v39 = vrot.slane %v2301_v10, %v3795_v45 }
 0xbc0   :  { %v2298_v3 = vsel %vm1714_vm7, %v2297_v0, %v2293_v23  ;;  %v2539_v19 = vmul.f32 %v2519_v15, %v4317_v47 }
 0xbc1   :  { %2346 = vbcast.lane.b32.xlu0 %v2344_v39, 256  ;;  %v2302_v50 = vmul.f32 %v2298_v3, %v4183_v17 }
 0xbc2   :  { %v2543_v26 = vmul.f32 %v4352_v56, %v2539_v19 }
 0xbc3   :  { %v2523_v53 = vpop.permute.xlu0 %2522  ;;  %v2355_v55 = vrot.slane %v2302_v50, %v3795_v45 }
 0xbc4   :  { %v2540_v62 = vmul.f32 %v2523_v53, %v4319_v4 }
 0xbc5   :  { %2350 = vbcast.lane.b32.xlu0 %v2344_v39, 264 }
 0xbc6   :  { %v2544_v56 = vmul.f32 %v4347_v1, %v2540_v62  ;;  %v3343_v1 = vpop.eup %3342 }
 0xbc7   :  { %v2530_v20 = vpop.permute.xlu0 %2529 }
 0xbc8   :  { %v2541_v28 = vmul.f32 %v2530_v20, %v4321_v40 }
 0xbc9   :  { %2361 = vbcast.lane.b32.xlu0 %v2355_v55, 264 }
 0xbca   :  { %v2545_v30 = vmul.f32 %v4362_v58, %v2541_v28 }
 0xbcb   :  { %v3107_v51 = vpop.permute.xlu0 %3106 }
 0xbcc   :  { %v3109_v42 = vunpack.i.h.bf16 %v3107_v51  ;;  %v3108_v21 = vunpack.i.l.bf16 %v3107_v51 }
 0xbcd   :  { %2587 = vperm.xlu0 %3083, %v2543_v26  }
 0xbce   :  { %v2570_v34 = vrot.slane %v3109_v42, %v4102_v54  ;;  %v2566_v47 = vrot.slane %v3108_v21, %v3849_v37 }
 0xbcf   :  { %v3112_v45 = vpop.permute.xlu0 %3111 }
 0xbd0   :  { %v3114_v31 = vunpack.i.h.bf16 %v3112_v45  ;;  %v3113_v12 = vunpack.i.l.bf16 %v3112_v45  ;;  %2357 = vbcast.lane.b32.xlu1 %v2355_v55, 256  ;;  %v2571_v40 = vsel %vm1714_vm7, %v2570_v34, %v2566_v47 }
 0xbd1   :  { %2597 = vperm.xlu0 %3083, %v2545_v30   ;;  %v2583_v4 = vmul.f32 %v2571_v40, %v4177_v2  ;;  %v3574_v2 = vmov 1  }
 0xbd2   :  { %v2579_v29 = vrot.slane %v3114_v31, %v4102_v54  ;;  %v2575_v18 = vrot.slane %v3113_v12, %v3849_v37  ;;  %v4416_v37 = vmul.f32 %v3343_v1, %v4282_v48 }
 0xbd3   :  { %v2534_v27 = vpop.permute.xlu0 %2533  ;;  %v2626_v5 = vrot.slane %v2583_v4, %v3810_v63 }
 0xbd4   :  { %v2542_v36 = vmul.f32 %v2534_v27, %v4323_v32  ;;  %2592 = vperm.xlu1 %3084, %v2544_v56   ;;  %v2580_v58 = vsel %vm1714_vm7, %v2579_v29, %v2575_v18  ;;  %v3575_v32 = vmov 3  }
 0xbd5   :  { %v2584_v49 = vmul.f32 %v2580_v58, %v4183_v17  ;;  %v3576_v17 = vmov 2  }
 0xbd6   :  { %v2546_v60 = vmul.f32 %v4359_v9, %v2542_v36 }
 0xbd7   :  { %v2637_v54 = vrot.slane %v2584_v49, %v3810_v63 }
 0xbd8   :  { %2628 = vbcast.lane.b32.xlu1 %v2626_v5, 256  ;;  %2602 = vperm.xlu0 %3083, %v2546_v60  }
 0xbdc   :  { %2639 = vbcast.lane.b32.xlu1 %v2637_v54, 256  ;;  %2632 = vbcast.lane.b32.xlu0 %v2626_v5, 264 }
 0xbdd   :  { %3116 = vset.pattern.permute.xlu0 %v3576_v17 }
 0xbe0   :  { %2186 = vperm.xlu1 %3084, %v4416_v37   ;;  %2643 = vbcast.lane.b32.xlu0 %v2637_v54, 264 }
 0xbe4   :  { %3115 = vset.pattern.permute.xlu1 %v3574_v2 }
 0xbe5   :  { %2468 = vperm.xlu1 %3115, %v4416_v37  }
 0xbe9   :  { %3117 = vset.pattern.permute.xlu1 %v3575_v32 }
 0xc33   :  { %v2347_v9 = vpop.permute.xlu0 %2346 }
 0xc34   :  { %v2363_v41 = vmul.f32 %v2347_v9, %v4368_v13 }
 0xc37   :  { %v2351_v7 = vpop.permute.xlu0 %2350 }
 0xc38   :  { %v2364_v63 = vmul.f32 %v2351_v7, %v4366_v8 }
 0xc3a   :  { %v2367_v33 = vadd.f32 %v2364_v63, %v2363_v41 }
 0xc3b   :  { %v2362_v24 = vpop.permute.xlu0 %2361 }
 0xc3c   :  { %v2368_v48 = vrot.slane %v2367_v33, 4  ;;  %v2366_v3 = vmul.f32 %v2362_v24, %v4374_v35 }
 0xc3e   :  { %v2369_v10 = vadd.f32 %v2368_v48, %v2367_v33 }
 0xc40   :  { %v2370_v39 = vrot.slane %v2369_v10, 2 }
 0xc42   :  { %v2371_v55 = vadd.f32 %v2370_v39, %v2369_v10 }
 0xc44   :  { %v2372_v45 = vrot.slane %v2371_v55, 1 }
 0xc46   :  { %v4430_v58 = vadd.f32 %v2372_v45, %v2371_v55 }
 0xc48   :  { %v2119_v25 = vpop.xlane.xlu1 %2118  ;;  %v2588_v23 = vpop.permute.xlu0 %2587  ;;  %v2399_v24 = vand.u32 2147483647, %v4430_v58 }
 0xc49   :  { %v2120_v0 = vmax.f32 %v2119_v25, 1e-12  ;;  %v2605_v26 = vmul.f32 %v2588_v23, %v4217_v46 }
 0xc4b   :  { %v2122_v44 = vrot.slane %v2120_v0, 1  ;;  %3344 = vrcp.f32 %v2120_v0 }
 0xc4c   :  { %v2358_v15 = vpop.permute.xlu1 %2357  ;;  %v2598_v19 = vpop.permute.xlu0 %2597 }
 0xc4d   :  { %3346 = vrcp.f32 %v2122_v44  ;;  %v2365_v53 = vmul.f32 %v2358_v15, %v4372_v16  ;;  %v2607_v34 = vmul.f32 %v2598_v19, %v4223_v6 }
 0xc4e   :  { %3348 = vrcp.f32 %v4325_v43 }
 0xc4f   :  { %v2374_v50 = vadd.f32 %v2366_v3, %v2365_v53 }
 0xc50   :  { %v2593_v20 = vpop.permute.xlu1 %2592 }
 0xc51   :  { %v2375_v28 = vrot.slane %v2374_v50, 4  ;;  %v2606_v51 = vmul.f32 %v2593_v20, %v4219_v52 }
 0xc53   :  { %v2376_v42 = vadd.f32 %v2375_v28, %v2374_v50  ;;  %v2609_v21 = vadd.f32 %v2606_v51, %v2605_v26  ;;  %v2603_v62 = vpop.permute.xlu0 %2602 }
 0xc54   :  { %v2608_v47 = vmul.f32 %v2603_v62, %v4225_v59  ;;  %v2629_v30 = vpop.permute.xlu1 %2628 }
 0xc55   :  { %v2377_v31 = vrot.slane %v2376_v42, 2  ;;  %v2610_v12 = vrot.slane %v2609_v21, 4  ;;  %v2645_v27 = vmul.f32 %v2629_v30, %v4368_v13 }
 0xc56   :  { %v2616_v40 = vadd.f32 %v2608_v47, %v2607_v34 }
 0xc57   :  { %v2378_v56 = vadd.f32 %v2377_v31, %v2376_v42  ;;  %v2611_v29 = vadd.f32 %v2610_v12, %v2609_v21  ;;  %v2633_v18 = vpop.permute.xlu0 %2632 }
 0xc58   :  { %v3345_v4 = vpop.eup %3344  ;;  %v2617_v46 = vrot.slane %v2616_v40, 4  ;;  %v2646_v52 = vmul.f32 %v2633_v18, %v4366_v8  ;;  %v2640_v36 = vpop.permute.xlu1 %2639 }
 0xc59   :  { %v2379_v6 = vrot.slane %v2378_v56, 1  ;;  %v2612_v60 = vrot.slane %v2611_v29, 2  ;;  %v2126_v32 = vmul.f32 %v3345_v4, %v4378_v38  ;;  %v2647_v8 = vmul.f32 %v2640_v36, %v4372_v16 }
 0xc5a   :  { %v3347_v59 = vpop.eup %3346  ;;  %v2618_v5 = vadd.f32 %v2617_v46, %v2616_v40  ;;  %v2649_v49 = vadd.f32 %v2646_v52, %v2645_v27  ;;  %v3577_v36 = vmov 4  }
 0xc5b   :  { %v4432_v54 = vadd.f32 %v2379_v6, %v2378_v56  ;;  %v2613_v1 = vadd.f32 %v2612_v60, %v2611_v29  ;;  %v2644_v2 = vpop.permute.xlu0 %2643  ;;  %v2128_v17 = vmul.f32 %v3347_v59, %v4380_v57  ;;  %v2167_v23 = vrot.slane %v2126_v32, %v3831_v22  ;;  %v3349_v52 = vpop.eup %3348 }
 0xc5c   :  { %v2619_v9 = vrot.slane %v2618_v5, 2  ;;  %v2650_v13 = vrot.slane %v2649_v49, 4  ;;  %v2648_v7 = vmul.f32 %v2644_v2, %v4374_v35  ;;  %v4438_v63 = vpop.permute.xlu1 %2186  ;;  %v302_v43 = vmul.f32 %v3349_v52, %v4290_v11 }
 0xc5d   :  { %v2614_v41 = vrot.slane %v2613_v1, 1  ;;  %v2174_v33 = vrot.slane %v2128_v17, %v3831_v22  ;;  %v2194_v48 = vrot.slane %v2128_v17, 7  ;;  %v2400_v38 = vand.u32 2147483647, %v4432_v54 }
 0xc5e   :  { %v2620_v25 = vadd.f32 %v2619_v9, %v2618_v5  ;;  %v2651_v10 = vadd.f32 %v2650_v13, %v2649_v49  ;;  %v2656_v0 = vadd.f32 %v2648_v7, %v2647_v8  ;;  %v2192_v53 = vmul.f32 %v4238_v61, %v4438_v63 }
 0xc5f   :  { %v4443_v57 = vadd.f32 %v2614_v41, %v2613_v1  ;;  %v2177_v16 = vrot.slane %v2174_v33, 7  ;;  %v4447_v35 = vsel %vm665_vm3, %v2194_v48, %v2126_v32  ;;  %v2403_v19 = vsel %vm665_vm3, %v2400_v38, %v2399_v24 }
 0xc60   :  { %v2621_v44 = vrot.slane %v2620_v25, 1  ;;  %v2652_v15 = vrot.slane %v2651_v10, 2  ;;  %v2657_v39 = vrot.slane %v2656_v0, 4  ;;  %v4449_v3 = vpop.permute.xlu1 %2468  ;;  %v2405_v51 = vsel %vm2098_vm12, %v2403_v19, 0.0 }
 0xc61   :  { %v2474_v50 = vmul.f32 %v4295_v14, %v4449_v3  ;;  %v2178_v20 = vsel %vm665_vm3, %v2177_v16, %v2167_v23  ;;  %2406 = vadd.xlane.f32.xlu0 %v2405_v51  ;;  %v2663_v21 = vand.u32 2147483647, %v4443_v57 }
 0xc62   :  { %v4457_v55 = vadd.f32 %v2621_v44, %v2620_v25  ;;  %v2653_v26 = vadd.f32 %v2652_v15, %v2651_v10  ;;  %v2658_v28 = vadd.f32 %v2657_v39, %v2656_v0  ;;  %v2179_v61 = vsel %vm2151_vm13, %v2177_v16, %v2178_v20 }
 0xc63   :  { %v4460_v42 = vadd.f32 %v2474_v50, %v2192_v53  ;;  %v2180_v47 = vsel %vm2153_vm14, %v2177_v16, %v2179_v61 }
 0xc64   :  { %v2654_v62 = vrot.slane %v2653_v26, 1  ;;  %v2659_v34 = vrot.slane %v2658_v28, 2  ;;  %v2664_v14 = vand.u32 2147483647, %v4457_v55  ;;  %v2181_v30 = vsel %vm2155_vm15, %v2177_v16, %v2180_v47 }
 0xc65   :  { %2183 = vst [vmem:[#allocation18] sm:$0x3] %v2181_v30 }
 0xc66   :  { %v2660_v45 = vadd.f32 %v2659_v34, %v2658_v28  ;;  %v2667_v31 = vsel %vm665_vm3, %v2664_v14, %v2663_v21  ;;  %v4470_v40 = vadd.f32 %v2654_v62, %v2653_v26 }
 0xc67   :  { %v2669_v12 = vsel %vm2098_vm12, %v2667_v31, 0.0 }
 0xc68   :  { %v2661_v56 = vrot.slane %v2660_v45, 1  ;;  %2670 = vadd.xlane.f32.xlu1 %v2669_v12  ;;  %v2681_v18 = vand.u32 2147483647, %v4470_v40 }
 0xc6a   :  { %v4472_v29 = vadd.f32 %v2661_v56, %v2660_v45 }
 0xc6c   :  { %v2682_v4 = vand.u32 2147483647, %v4472_v29 }
 0xc6e   :  { %v2685_v46 = vsel %vm665_vm3, %v2682_v4, %v2681_v18 }
 0xc6f   :  { %v2687_v27 = vsel %vm2098_vm12, %v2685_v46, 0.0 }
 0xc70   :  { %2688 = vadd.xlane.f32.xlu0 %v2687_v27 }
 0xc79   :  { %2765 = vperm.xlu1 %3117, %v302_v43  }
 0xc7d   :  { %3118 = vset.pattern.permute.xlu1 %v3577_v36 }
 0xc7e   :  { %2771 = vperm.xlu1 %3118, %v302_v43  }
 0xc86   :  { %2750 = vperm.xlu0 %3116, %v4416_v37  }
 0xc8a   :  { %3119 = vset.pattern.permute.xlu0 %v3577_v36 }
 0xc8b   :  { %3477 = shalt.err (!%p3474_p1)
}
 0xc8c   :  { %2795 = dma.vmem_to_hbm [thread:$0]  %s2793_s12, 32, %s4541_s20, [#allocation16]  }
 0xc8d   :  { %s3579_s20 = smov [#allocation17]  }
 0xc8e   :  { %s2802_s5 = sshll.u32 %s3579_s20, 4  ;;  %s2803_s5 = int_to_ptr.vmem [resolvable:$true] %s2802_s5 }
 0xc8f   :  { %s3486_s25 = scalar_lea.vmem %s2803_s5, 96  ;;  %p3491_p3 = scmp.lt.s32.totalorder %s2803_s5, %s2803_s5 }
 0xc90   :  { %p3487_p2 = scmp.ne.s32.totalorder %s2803_s5, %s3486_s25  ;;  %p3492_p4 = scmp.lt.s32.totalorder %s3486_s25, %s3486_s25 }
 0xc92   :  { %p3493_p5 = por %p3492_p4, %p3491_p3 }
 0xc94   :  { %p3494_p6 = pnand %p3493_p5, %p3487_p2 }
 0xcea   :  { %v2407_v11 = vpop.xlane.xlu0 %2406 }
 0xceb   :  { %v2408_v6 = vmax.f32 %v2407_v11, 1e-12 }
 0xced   :  { %v2410_v60 = vrot.slane %v2408_v6, 1  ;;  %3350 = vrcp.f32 %v2408_v6 }
 0xcef   :  { %3352 = vrcp.f32 %v2410_v60 }
 0xcf1   :  { %v2671_v37 = vpop.xlane.xlu1 %2670 }
 0xcf2   :  { %v2672_v59 = vmax.f32 %v2671_v37, 1e-12 }
 0xcf4   :  { %v2674_v5 = vrot.slane %v2672_v59, 1  ;;  %3354 = vrcp.f32 %v2672_v59 }
 0xcf5   :  { %v2766_v51 = vpop.permute.xlu1 %2765 }
 0xcf6   :  { %3356 = vrcp.f32 %v2674_v5 }
 0xcf9   :  { %v2689_v49 = vpop.xlane.xlu0 %2688 }
 0xcfa   :  { %v2690_v1 = vmax.f32 %v2689_v49, 1e-12  ;;  %v3351_v2 = vpop.eup %3350 }
 0xcfb   :  { %v2414_v9 = vmul.f32 %v3351_v2, %v4430_v58 }
 0xcfc   :  { %v2692_v32 = vrot.slane %v2690_v1, 1  ;;  %3358 = vrcp.f32 %v2690_v1  ;;  %v3353_v17 = vpop.eup %3352 }
 0xcfd   :  { %v2416_v13 = vmul.f32 %v3353_v17, %v4432_v54  ;;  %v2450_v33 = vrot.slane %v2414_v9, %v3831_v22 }
 0xcfe   :  { %3360 = vrcp.f32 %v2692_v32 }
 0xcff   :  { %v2457_v7 = vrot.slane %v2416_v13, %v3831_v22  ;;  %v2476_v0 = vrot.slane %v2416_v13, 7 }
 0xd01   :  { %v3355_v8 = vpop.eup %3354  ;;  %v2460_v48 = vrot.slane %v2457_v7, 7  ;;  %v2751_v39 = vpop.permute.xlu0 %2750  ;;  %v2477_v19 = vsel %vm665_vm3, %v2476_v0, %v2414_v9 }
 0xd02   :  { %v2678_v24 = vmul.f32 %v3355_v8, %v4443_v57  ;;  %v2479_v34 = vmul.f32 %v2477_v19, %v4449_v3 }
 0xd03   :  { %v3357_v41 = vpop.eup %3356  ;;  %v2461_v10 = vsel %vm665_vm3, %v2460_v48, %v2450_v33 }
 0xd04   :  { %v2680_v25 = vmul.f32 %v3357_v41, %v4457_v55  ;;  %v2462_v58 = vsel %vm2151_vm13, %v2460_v48, %v2461_v10  ;;  %v2707_v16 = vrot.slane %v2678_v24, %v3831_v22 }
 0xd05   :  { %v2463_v54 = vsel %vm2153_vm14, %v2460_v48, %v2462_v58 }
 0xd06   :  { %v2714_v38 = vrot.slane %v2680_v25, %v3831_v22  ;;  %v2753_v23 = vrot.slane %v2680_v25, 7  ;;  %v2464_v57 = vsel %vm2155_vm15, %v2460_v48, %v2463_v54 }
 0xd07   :  { %2466 = vst [vmem:[#allocation18 + $0x2] sm:$0x3] %v2464_v57 }
 0xd08   :  { %v2717_v44 = vrot.slane %v2714_v38, 7  ;;  %v2754_v15 = vsel %vm665_vm3, %v2753_v23, %v2678_v24 }
 0xd09   :  { %v3359_v53 = vpop.eup %3358  ;;  %v2756_v50 = vmul.f32 %v2754_v15, %v2751_v39 }
 0xd0a   :  { %v2718_v20 = vsel %vm665_vm3, %v2717_v44, %v2707_v16  ;;  %v2696_v21 = vmul.f32 %v3359_v53, %v4470_v40 }
 0xd0b   :  { %v3361_v55 = vpop.eup %3360  ;;  %v2757_v26 = vadd.f32 %v2756_v50, %v4460_v42  ;;  %v2719_v28 = vsel %vm2151_vm13, %v2717_v44, %v2718_v20  ;;  %v2197_v42 = vmul.f32 %v4447_v35, %v4438_v63 }
 0xd0c   :  { %v2698_v61 = vmul.f32 %v3361_v55, %v4472_v29  ;;  %v2720_v62 = vsel %vm2153_vm14, %v2717_v44, %v2719_v28 }
 0xd0d   :  { %v2768_v14 = vmul.f32 %v2766_v51, %v2757_v26  ;;  %v2721_v47 = vsel %vm2155_vm15, %v2717_v44, %v2720_v62 }
 0xd0e   :  { %v2739_v30 = vrot.slane %v2698_v61, %v3831_v22  ;;  %v2758_v45 = vrot.slane %v2698_v61, 7  ;;  %2723 = vst [vmem:[#allocation17 + $0x4] sm:$0x3] %v2721_v47 }
 0xd0f   :  { %2769 = vst [vmem:[#allocation14] sm:$0x3] %v2768_v14 }
 0xd10   :  { %3497 = shalt.err (!%p3494_p6)
}
 0xd11   :  { %2805 = dma.vmem_to_hbm [thread:$0]  %s2803_s5, 96, %s4542_s21, [#allocation16]   ;;  %v2732_v3 = vrot.slane %v2696_v21, %v3831_v22  ;;  %v2742_v31 = vrot.slane %v2739_v30, 7  ;;  %v2759_v12 = vsel %vm665_vm3, %v2758_v45, %v2696_v21  ;;  %v2480_v40 = vadd.f32 %v2479_v34, %v2197_v42  ;;  %v2772_v18 = vpop.permute.xlu1 %2771 }
 0xd12   :  { %v2761_v56 = vmul.f32 %v2759_v12, %v2751_v39  ;;  %s3580_s27 = smov [#allocation18]   ;;  %s3581_s28 = smov [#allocation14]  }
 0xd13   :  { %s2812_s3 = sshll.u32 %s3580_s27, 4  ;;  %v2743_v63 = vsel %vm665_vm3, %v2742_v31, %v2732_v3  ;;  %s2782_s17 = sshll.u32 %s3581_s28, 4  ;;  %s2813_s3 = int_to_ptr.vmem [resolvable:$true] %s2812_s3  ;;  %s2783_s17 = int_to_ptr.vmem [resolvable:$true] %s2782_s17 }
 0xd14   :  { %v2762_v35 = vadd.f32 %v2761_v56, %v2480_v40  ;;  %v2744_v29 = vsel %vm2151_vm13, %v2742_v31, %v2743_v63  ;;  %s3506_s21 = scalar_lea.vmem %s2813_s3, 96  ;;  %p3511_p8 = scmp.lt.s32.totalorder %s2813_s3, %s2813_s3 }
 0xd15   :  { %v2745_v4 = vsel %vm2153_vm14, %v2742_v31, %v2744_v29  ;;  %p3507_p7 = scmp.ne.s32.totalorder %s2813_s3, %s3506_s21  ;;  %p3512_p9 = scmp.lt.s32.totalorder %s3506_s21, %s3506_s21 }
 0xd16   :  { %v2774_v46 = vmul.f32 %v2772_v18, %v2762_v35  ;;  %v2746_v22 = vsel %vm2155_vm15, %v2742_v31, %v2745_v4 }
 0xd17   :  { %2748 = vst [vmem:[#allocation18 + $0x4] sm:$0x3] %v2746_v22  ;;  %p3513_p10 = por %p3512_p9, %p3511_p8 }
 0xd18   :  { %2775 = vst [vmem:[#allocation14 + $0x2] sm:$0x3] %v2774_v46 }
 0xd19   :  { %p3514_p11 = pnand %p3513_p10, %p3507_p7 }
 0xd1b   :  { %3517 = shalt.err (!%p3514_p11)
}
 0xd1c   :  { %2815 = dma.vmem_to_hbm [thread:$0]  %s2813_s3, 96, %s4543_s22, [#allocation19]  }
 0xd1d   :  { %s3526_s30 = scalar_lea.vmem %s2783_s17, 64  ;;  %p3531_p13 = scmp.lt.s32.totalorder %s2783_s17, %s2783_s17 }
 0xd1e   :  { %p3527_p12 = scmp.ne.s32.totalorder %s2783_s17, %s3526_s30  ;;  %p3532_p0 = scmp.lt.s32.totalorder %s3526_s30, %s3526_s30 }
 0xd20   :  { %p3533_p1 = por %p3532_p0, %p3531_p13 }
 0xd22   :  { %p3534_p2 = pnand %p3533_p1, %p3527_p12 }
 0xd24   :  { %3537 = shalt.err (!%p3534_p2)
}
 0xd25   :  { %2785 = dma.vmem_to_hbm [thread:$0]  %s2783_s17, 64, %s4540_s19, [#allocation7]  }
 0xd26   :  { %3552 = dma.done.wait [#allocation7], 64  }
 0xd27   :  { %3553 = vsyncadd [#allocation7], 4294967232 }
 0xd28   :  { %3554 = dma.done.wait [#allocation16], 128  }
 0xd29   :  { %3555 = vsyncadd [#allocation16], 4294967168 }
 0xd2a   :  { %3556 = dma.done.wait [#allocation19], 96  }
 0xd2b   :  { %3557 = vsyncadd [#allocation19], 4294967200 }
 0xd2c   :  { %2828 = vsyncpa [#allocation6], 1 }
 0xd2d   :  { %2829 = vsyncpa [#allocation9], 1 }
 0xd2e   :  { %2830 = vsyncpa [#allocation12], 1 }
 0xd2f   :  { %2831 = vsyncpa [#allocation7], 1 }
 0xd30   :  { %2832 = vsyncpa [#allocation16], 1 }
 0xd31   :  { %2833 = vsyncpa [#allocation19], 1 }

</bundles_post_ra>
